<compile_context>
chip_gen: v7x
topology: tpu7x:2x2x1
jax: 0.10.0
libtpu: 0.0.40
codegen_flags: <defaults>
</compile_context>

<pallas_src>
import math
import functools

import jax
import jax.numpy as jnp
from jax import lax
from jax.experimental import pallas as pl
from jax.experimental.pallas import tpu as pltpu

NEG_INF_FILL = -1000000.0     # matches masked_fill(-1000000.0) in the PyTorch code
LN_EPS = 1e-5                 # nn.LayerNorm default


# ---------------------------------------------------------------------------
# chip-aware VMEM budgets & tiling helpers
# ---------------------------------------------------------------------------
def _chip_vmem_limit():
    cap = 128 * 1024 * 1024
    try:
        info = pltpu.get_tpu_info()
        c = getattr(info, "vmem_capacity_bytes", None)
        if c:
            cap = int(c)
    except Exception:
        pass
    # leave headroom for Mosaic internal scratch; clamp to a sane range
    return int(min(max(cap - 16 * 1024 * 1024, 32 * 1024 * 1024), 112 * 1024 * 1024))


_VMEM_LIMIT = _chip_vmem_limit()
_TILE_BUDGET = _VMEM_LIMIT // 4          # per-grid-step working-set target


def _mosaic_params(*dim_semantics):
    return pltpu.CompilerParams(dimension_semantics=dim_semantics,
                                vmem_limit_bytes=_VMEM_LIMIT)


def _pick_dim_tile(n, candidates, fits=lambda c: True):
    """Largest candidate that divides n and fits the budget; else smallest divisor; else n."""
    ok = [c for c in candidates if c <= n and n % c == 0]
    for c in ok:
        if fits(c):
            return c
    return ok[-1] if ok else n


def _pick_row_tile(R, bytes_per_row, budget):
    cands = (2048, 1024, 512, 256, 128, 64, 32, 16, 8)
    ok = [c for c in cands if c <= R and R % c == 0]
    for c in ok:
        if c * bytes_per_row <= budget:
            return c
    return ok[-1] if ok else R


# ---------------------------------------------------------------------------
# fused multi-projection kernel: out_i = x @ w_i  (x read from HBM once)
# ---------------------------------------------------------------------------
def _make_multi_proj_kernel(n):
    def kernel(*refs):
        x = refs[0][...]
        for idx in range(n):
            w_ref = refs[1 + idx]
            o_ref = refs[1 + n + idx]
            o_ref[...] = jnp.dot(x, w_ref[...],
                                 preferred_element_type=jnp.float32).astype(o_ref.dtype)
    return kernel


def multi_project(x, weights):
    """Compute x @ w for every w in `weights` inside a single pallas_call."""
    d_in = x.shape[-1]
    lead = x.shape[:-1]
    d_out = weights[0].shape[1]
    n = len(weights)
    isz = x.dtype.itemsize
    x2 = x.reshape(-1, d_in)
    R = x2.shape[0]

    TN = _pick_dim_tile(d_out, (512, 256, 128),
                        fits=lambda c: 2 * n * d_in * c * isz <= _TILE_BUDGET // 2)
    fixed = 2 * n * d_in * TN * isz
    per_row = 2 * isz * (d_in + n * TN)
    TR = _pick_row_tile(R, per_row, max(_TILE_BUDGET - fixed, 8 * per_row))

    grid = (R // TR, d_out // TN)
    in_specs = [pl.BlockSpec((TR, d_in), lambda i, j: (i, 0))]
    in_specs += [pl.BlockSpec((d_in, TN), lambda i, j: (0, j)) for _ in range(n)]
    out_specs = [pl.BlockSpec((TR, TN), lambda i, j: (i, j)) for _ in range(n)]
    out_shape = tuple(jax.ShapeDtypeStruct((R, d_out), x.dtype) for _ in range(n))

    outs = pl.pallas_call(
        _make_multi_proj_kernel(n),
        out_shape=out_shape,
        grid_spec=pltpu.PrefetchScalarGridSpec(
            num_scalar_prefetch=0, grid=grid,
            in_specs=in_specs, out_specs=out_specs),
        compiler_params=_mosaic_params("parallel", "arbitrary"),
    )(x2, *weights)
    return [o.reshape(lead + (d_out,)) for o in outs]


# ---------------------------------------------------------------------------
# fused W_o projection + AddNorm: LayerNorm(residual + a @ w)
# ---------------------------------------------------------------------------
def _proj_addnorm_kernel(a_ref, w_ref, res_ref, g_ref, b_ref, o_ref, acc_ref):
    k = pl.program_id(1)

    @pl.when(k == 0)
    def _():
        acc_ref[...] = jnp.zeros_like(acc_ref)

    acc_ref[...] += jnp.dot(a_ref[...], w_ref[...],
                            preferred_element_type=jnp.float32)

    @pl.when(k == pl.num_programs(1) - 1)
    def _():
        z = acc_ref[...] + res_ref[...].astype(jnp.float32)
        mu = jnp.mean(z, axis=-1, keepdims=True)
        zc = z - mu
        var = jnp.mean(zc * zc, axis=-1, keepdims=True)
        y = zc * lax.rsqrt(var + LN_EPS)
        y = y * g_ref[...].astype(jnp.float32) + b_ref[...].astype(jnp.float32)
        o_ref[...] = y.astype(o_ref.dtype)


def proj_addnorm(a, w, residual, gamma, beta):
    d_in, d_out = w.shape
    lead = a.shape[:-1]
    a2 = a.reshape(-1, d_in)
    r2 = residual.reshape(-1, d_out)
    R = a2.shape[0]
    isz = a.dtype.itemsize

    TK = _pick_dim_tile(d_in, (512, 256, 128),
                        fits=lambda c: 2 * c * d_out * isz <= _TILE_BUDGET // 2)
    fixed = 2 * TK * d_out * isz
    per_row = 2 * isz * (TK + 2 * d_out) + 4 * d_out
    TR = _pick_row_tile(R, per_row, max(_TILE_BUDGET - fixed, 8 * per_row))

    grid = (R // TR, d_in // TK)
    out = pl.pallas_call(
        _proj_addnorm_kernel,
        out_shape=jax.ShapeDtypeStruct((R, d_out), a.dtype),
        grid_spec=pltpu.PrefetchScalarGridSpec(
            num_scalar_prefetch=0, grid=grid,
            in_specs=[pl.BlockSpec((TR, TK), lambda i, k: (i, k)),
                      pl.BlockSpec((TK, d_out), lambda i, k: (k, 0)),
                      pl.BlockSpec((TR, d_out), lambda i, k: (i, 0)),
                      pl.BlockSpec((1, d_out), lambda i, k: (0, 0)),
                      pl.BlockSpec((1, d_out), lambda i, k: (0, 0))],
            out_specs=pl.BlockSpec((TR, d_out), lambda i, k: (i, 0)),
            scratch_shapes=[pltpu.VMEM((TR, d_out), jnp.float32)]),
        compiler_params=_mosaic_params("parallel", "arbitrary"),
    )(a2, w, r2, gamma, beta)
    return out.reshape(lead + (d_out,))


# ---------------------------------------------------------------------------
# fused PositionWiseFFN + AddNorm: LayerNorm(x + relu(x @ w1 + b1) @ w2 + b2)
# ---------------------------------------------------------------------------
def _ffn_addnorm_kernel(x_ref, w1_ref, b1_ref, w2_ref, b2_ref, g_ref, bb_ref,
                        o_ref, acc_ref):
    j = pl.program_id(1)

    @pl.when(j == 0)
    def _():
        acc_ref[...] = jnp.zeros_like(acc_ref)

    x = x_ref[...]
    h = jnp.dot(x, w1_ref[...], preferred_element_type=jnp.float32)
    h = jnp.maximum(h + b1_ref[...].astype(jnp.float32), 0.0)
    acc_ref[...] += jnp.dot(h.astype(x.dtype), w2_ref[...],
                            preferred_element_type=jnp.float32)

    @pl.when(j == pl.num_programs(1) - 1)
    def _():
        z = acc_ref[...] + b2_ref[...].astype(jnp.float32) + x.astype(jnp.float32)
        mu = jnp.mean(z, axis=-1, keepdims=True)
        zc = z - mu
        var = jnp.mean(zc * zc, axis=-1, keepdims=True)
        y = zc * lax.rsqrt(var + LN_EPS)
        y = y * g_ref[...].astype(jnp.float32) + bb_ref[...].astype(jnp.float32)
        o_ref[...] = y.astype(o_ref.dtype)


def ffn_addnorm(x, w1, b1, w2, b2, gamma, beta):
    d_in, d_hid = w1.shape
    d_out = w2.shape[1]
    lead = x.shape[:-1]
    x2 = x.reshape(-1, d_in)
    R = x2.shape[0]
    isz = x.dtype.itemsize

    TH = _pick_dim_tile(d_hid, (512, 256, 128),
                        fits=lambda c: 2 * c * (d_in + d_out) * isz <= _TILE_BUDGET // 2)
    fixed = 2 * TH * (d_in + d_out) * isz
    per_row = 2 * isz * (d_in + d_out) + 4 * (d_out + TH)
    TR = _pick_row_tile(R, per_row, max(_TILE_BUDGET - fixed, 8 * per_row))

    grid = (R // TR, d_hid // TH)
    out = pl.pallas_call(
        _ffn_addnorm_kernel,
        out_shape=jax.ShapeDtypeStruct((R, d_out), x.dtype),
        grid_spec=pltpu.PrefetchScalarGridSpec(
            num_scalar_prefetch=0, grid=grid,
            in_specs=[pl.BlockSpec((TR, d_in), lambda i, j: (i, 0)),
                      pl.BlockSpec((d_in, TH), lambda i, j: (0, j)),
                      pl.BlockSpec((1, TH), lambda i, j: (0, j)),
                      pl.BlockSpec((TH, d_out), lambda i, j: (j, 0)),
                      pl.BlockSpec((1, d_out), lambda i, j: (0, 0)),
                      pl.BlockSpec((1, d_out), lambda i, j: (0, 0)),
                      pl.BlockSpec((1, d_out), lambda i, j: (0, 0))],
            out_specs=pl.BlockSpec((TR, d_out), lambda i, j: (i, 0)),
            scratch_shapes=[pltpu.VMEM((TR, d_out), jnp.float32)]),
        compiler_params=_mosaic_params("parallel", "arbitrary"),
    )(x2, w1, b1, w2, b2, gamma, beta)
    return out.reshape(lead + (d_out,))


# ---------------------------------------------------------------------------
# flash-style scaled dot-product attention (DotProductAttention.forward)
# ---------------------------------------------------------------------------
def _pick_attn_tiles(Lq, Lk, Dh, isz, budget):
    q_ok = [c for c in (256, 128, 64, 32) if c <= Lq and Lq % c == 0] or [Lq]
    k_ok = [c for c in (512, 256, 128) if c <= Lk and Lk % c == 0] or [Lk]

    def cost(tq, tk):
        return (2 * isz * 2 * (tq + tk) * Dh            # q/o and k/v blocks, double-buffered
                + 4 * (tq * Dh + 2 * tq)                 # f32 scratch (acc, m, l)
                + (3 * 4 + 2) * tq * tk)                 # score/prob intermediates + int8 mask

    tq, tk = q_ok[0], k_ok[0]
    for c in k_ok:
        tk = c
        if cost(tq, tk) <= budget:
            break
    for c in q_ok:
        tq = c
        if cost(tq, tk) <= budget:
            break
    return tq, tk


def _make_flash_kernel(mask_mode, scale, tk):
    """mask_mode: 'none' | 'valid_len' | 'shared2d' | 'per_batch3d'."""

    def kernel(*refs):
        if mask_mode == "valid_len":
            vl_ref, q_ref, k_ref, v_ref, o_ref, m_sc, l_sc, acc_sc = refs
            mk_ref = None
        elif mask_mode in ("shared2d", "per_batch3d"):
            q_ref, k_ref, v_ref, mk_ref, o_ref, m_sc, l_sc, acc_sc = refs
            vl_ref = None
        else:
            q_ref, k_ref, v_ref, o_ref, m_sc, l_sc, acc_sc = refs
            vl_ref = mk_ref = None

        ki = pl.program_id(3)

        @pl.when(ki == 0)
        def _():
            m_sc[...] = jnp.full(m_sc.shape, -jnp.inf, jnp.float32)
            l_sc[...] = jnp.zeros_like(l_sc)
            acc_sc[...] = jnp.zeros_like(acc_sc)

        q = q_ref[...]                                    # (1, TQ, Dh)
        k = k_ref[...]                                    # (1, TK, Dh)
        v = v_ref[...]                                    # (1, TK, Dh)

        # QK^T without an explicit transpose (contract last dims, batch dim 0).
        s = lax.dot_general(q, k, (((2,), (2,)), ((0,), (0,))),
                            preferred_element_type=jnp.float32)
        s = s * jnp.float32(scale)                        # (1, TQ, TK)

        if mask_mode == "valid_len":
            vl = vl_ref[pl.program_id(0)]
            col = lax.broadcasted_iota(jnp.int32, s.shape, 2) + ki * tk
            s = jnp.where(col >= vl, jnp.float32(NEG_INF_FILL), s)
        elif mask_mode == "shared2d":
            s = jnp.where((mk_ref[...] != 0)[None, :, :],
                          jnp.float32(NEG_INF_FILL), s)
        elif mask_mode == "per_batch3d":
            s = jnp.where(mk_ref[...] != 0, jnp.float32(NEG_INF_FILL), s)

        # online softmax along the key axis (matches torch.softmax(dim=-1) with
        # the -1e6 masked fill, since masked logits never dominate valid ones)
        m_prev = m_sc[...]
        m_new = jnp.maximum(m_prev, jnp.max(s, axis=-1, keepdims=True))
        alpha = jnp.exp(m_prev - m_new)
        p = jnp.exp(s - m_new)
        l_sc[...] = alpha * l_sc[...] + jnp.sum(p, axis=-1, keepdims=True)
        acc_sc[...] = alpha * acc_sc[...] + lax.dot_general(
            p.astype(v.dtype), v, (((2,), (1,)), ((0,), (0,))),
            preferred_element_type=jnp.float32)
        m_sc[...] = m_new

        # TODO(synk): training-mode nn.Dropout on the attention weights is not
        # implemented; only eval-mode (identity dropout) semantics are provided.
        @pl.when(ki == pl.num_programs(3) - 1)
        def _():
            # exact normalization at finalize (runs once per output tile)
            o_ref[...] = (acc_sc[...] / l_sc[...]).astype(o_ref.dtype)

    return kernel


def _flash_attention(q, k, v, n_head_blocks, mask=None, mask_mode="none"):
    """q/k/v: (Bg, L, n_head_blocks*Dh); per-head attention, heads stay in lanes."""
    Bg, Lq, D = q.shape
    _, Lk, _ = k.shape
    nh = n_head_blocks
    Dh = D // nh
    scale = 1.0 / math.sqrt(Dh)
    TQ, TK = _pick_attn_tiles(Lq, Lk, Dh, q.dtype.itemsize, _TILE_BUDGET)
    grid = (Bg, nh, Lq // TQ, Lk // TK)

    in_specs = [
        pl.BlockSpec((1, TQ, Dh), lambda b, h, qi, ki, *_: (b, qi, h)),
        pl.BlockSpec((1, TK, Dh), lambda b, h, qi, ki, *_: (b, ki, h)),
        pl.BlockSpec((1, TK, Dh), lambda b, h, qi, ki, *_: (b, ki, h)),
    ]
    inputs = [q, k, v]
    num_prefetch = 0
    if mask_mode == "valid_len":
        num_prefetch = 1                                  # (Bg,) int32 lengths in SMEM
        inputs = [mask] + inputs
    elif mask_mode == "shared2d":
        in_specs.append(pl.BlockSpec((TQ, TK),
                                     lambda b, h, qi, ki, *_: (qi, ki)))
        inputs.append(mask)
    elif mask_mode == "per_batch3d":
        in_specs.append(pl.BlockSpec((1, TQ, TK),
                                     lambda b, h, qi, ki, *_: (b * nh + h, qi, ki)))
        inputs.append(mask)

    return pl.pallas_call(
        _make_flash_kernel(mask_mode, scale, TK),
        out_shape=jax.ShapeDtypeStruct((Bg, Lq, D), q.dtype),
        grid_spec=pltpu.PrefetchScalarGridSpec(
            num_scalar_prefetch=num_prefetch,
            grid=grid,
            in_specs=in_specs,
            out_specs=pl.BlockSpec((1, TQ, Dh), lambda b, h, qi, ki, *_: (b, qi, h)),
            scratch_shapes=[pltpu.VMEM((1, TQ, 1), jnp.float32),
                            pltpu.VMEM((1, TQ, 1), jnp.float32),
                            pltpu.VMEM((1, TQ, Dh), jnp.float32)]),
        compiler_params=_mosaic_params("parallel", "parallel", "arbitrary", "arbitrary"),
    )(*inputs)


# ---------------------------------------------------------------------------
# MultiHeadAttention / DecoderBlock wrappers
# ---------------------------------------------------------------------------
def transpose_qkv(X, num_heads):
    b, l, d = X.shape
    X = X.reshape(b, l, num_heads, d // num_heads)
    X = jnp.transpose(X, (0, 2, 1, 3))
    return X.reshape(b * num_heads, l, d // num_heads)


def transpose_output(X, num_heads):
    bh, l, hd = X.shape
    b = bh // num_heads
    X = X.reshape(b, num_heads, l, hd)
    X = jnp.transpose(X, (0, 2, 1, 3))
    return X.reshape(b, l, num_heads * hd)


def multi_head_attention(params, queries, keys, values, num_heads,
                         valid_len=None, is_causal_scenario=False):
    """Per-head attention; returns merged heads (B, Lq, d_model) BEFORE W_o
    (W_o is fused with the following AddNorm in the decoder block)."""
    B, Lq, d_model = queries.shape
    Lk = keys.shape[1]
    Dh = d_model // num_heads

    # fused projections: each activation tensor is read from HBM exactly once
    wq, wk, wv = params["w_q"], params["w_k"], params["w_v"]
    if queries is keys and keys is values:
        q, k, v = multi_project(queries, [wq, wk, wv])
    elif keys is values:
        (q,) = multi_project(queries, [wq])
        k, v = multi_project(keys, [wk, wv])
    else:
        (q,) = multi_project(queries, [wq])
        (k,) = multi_project(keys, [wk])
        (v,) = multi_project(values, [wv])

    # heads-in-lane layout (no transposes) when the per-head lane slice is legal;
    # otherwise fall back to the flattened (B*H, L, Dh) layout.
    headed = (num_heads == 1) or (Dh % 128 == 0)
    if headed:
        qa, ka, va, nhb = q, k, v, num_heads
    else:
        qa = transpose_qkv(q, num_heads)
        ka = transpose_qkv(k, num_heads)
        va = transpose_qkv(v, num_heads)
        nhb = 1

    if is_causal_scenario:
        m = valid_len                      # boolean mask (Lq, Lk) or (B*H, Lq, Lk)
        mask_input = m.astype(jnp.int8)
        mask_mode = "shared2d" if m.ndim == 2 else "per_batch3d"
    elif valid_len is not None:
        vl = valid_len
        if vl.ndim == 2 and vl.shape[1] > 1:
            # per-query valid lengths -> expand to a boolean padding mask
            pad = jnp.arange(Lk, dtype=jnp.int32)[None, None, :] >= vl[:, :, None]
            mask_input = jnp.repeat(pad, num_heads, axis=0).astype(jnp.int8)
            mask_mode = "per_batch3d"
        else:
            vl = jnp.reshape(vl, (-1,)).astype(jnp.int32)           # (B,)
            mask_input = vl if headed else jnp.repeat(vl, num_heads, axis=0)
            mask_mode = "valid_len"
    else:
        mask_input = None
        mask_mode = "none"

    ctx = _flash_attention(qa, ka, va, nhb, mask=mask_input, mask_mode=mask_mode)
    if not headed:
        ctx = transpose_output(ctx, num_heads)
    return ctx


@functools.partial(jax.jit, static_argnames=("num_heads",))
def decoder_block(params, X, enc_output, num_heads,
                  cross_attention_valid_len=None, self_attention_causal_mask=None):
    p1 = params["masked_attention"]
    ctx1 = multi_head_attention(p1, X, X, X, num_heads,
                                valid_len=self_attention_causal_mask,
                                is_causal_scenario=True)
    X1 = proj_addnorm(ctx1, p1["w_o"], X,
                      params["addnorm1"]["gamma"], params["addnorm1"]["beta"])

    p2 = params["attention"]
    ctx2 = multi_head_attention(p2, X1, enc_output, enc_output, num_heads,
                                valid_len=cross_attention_valid_len,
                                is_causal_scenario=False)
    X2 = proj_addnorm(ctx2, p2["w_o"], X1,
                      params["addnorm2"]["gamma"], params["addnorm2"]["beta"])

    return ffn_addnorm(X2, params["ffn"]["w1"], params["ffn"]["b1"],
                       params["ffn"]["w2"], params["ffn"]["b2"],
                       params["addnorm3"]["gamma"], params["addnorm3"]["beta"])


# ---------------------------------------------------------------------------
# Pure-JAX reference (mirrors the PyTorch forward, eval mode)
# ---------------------------------------------------------------------------
def _ref_masked_softmax(X, vl_or_mask, is_causal):
    if is_causal:
        return jax.nn.softmax(jnp.where(vl_or_mask.astype(bool), NEG_INF_FILL, X), axis=-1)
    if vl_or_mask is not None:
        vl = vl_or_mask
        if vl.ndim == 1:
            vl = vl[:, None]
        idx = jnp.arange(X.shape[-1])[None, None, :]
        pad = idx >= vl[:, :, None]
        return jax.nn.softmax(jnp.where(jnp.broadcast_to(pad, X.shape),
                                        NEG_INF_FILL, X), axis=-1)
    return jax.nn.softmax(X, axis=-1)


def _ref_attention(q, k, v, vl_or_mask=None, is_causal=False):
    d = q.shape[-1]
    scores = jnp.einsum("bqd,bkd->bqk", q, k) / math.sqrt(d)
    w = _ref_masked_softmax(scores, vl_or_mask, is_causal)
    return jnp.einsum("bqk,bkd->bqd", w, v)


def _ref_mha(p, queries, keys, values, num_heads, valid_len=None, is_causal=False):
    q = transpose_qkv(queries @ p["w_q"], num_heads)
    k = transpose_qkv(keys @ p["w_k"], num_heads)
    v = transpose_qkv(values @ p["w_v"], num_heads)
    if (not is_causal) and (valid_len is not None):
        m = jnp.repeat(valid_len, num_heads, axis=0)
    else:
        m = valid_len
    out = _ref_attention(q, k, v, m, is_causal)
    return transpose_output(out, num_heads) @ p["w_o"]


def _ref_addnorm(p, Y, X):
    z = X + Y
    mu = jnp.mean(z, axis=-1, keepdims=True)
    var = jnp.mean((z - mu) ** 2, axis=-1, keepdims=True)
    return (z - mu) / jnp.sqrt(var + LN_EPS) * p["gamma"] + p["beta"]


def _ref_ffn(p, x):
    return jnp.maximum(x @ p["w1"] + p["b1"], 0.0) @ p["w2"] + p["b2"]


def _ref_decoder_block(params, X, enc_output, num_heads,
                       cross_attention_valid_len=None, self_attention_causal_mask=None):
    Y = _ref_mha(params["masked_attention"], X, X, X, num_heads,
                 self_attention_causal_mask, True)
    X1 = _ref_addnorm(params["addnorm1"], Y, X)
    Y2 = _ref_mha(params["attention"], X1, enc_output, enc_output, num_heads,
                  cross_attention_valid_len, False)
    X2 = _ref_addnorm(params["addnorm2"], Y2, X1)
    return _ref_addnorm(params["addnorm3"], _ref_ffn(params["ffn"], X2), X2)


# ---------------------------------------------------------------------------
# parameter init + demo
# ---------------------------------------------------------------------------
def _init_params(key, d_model, ffn_hidden, dtype=jnp.float32):
    def w(k, shape):
        return (jax.random.normal(k, shape) / math.sqrt(shape[0])).astype(dtype)

    def mha(k):
        k1, k2, k3, k4 = jax.random.split(k, 4)
        return {"w_q": w(k1, (d_model, d_model)), "w_k": w(k2, (d_model, d_model)),
                "w_v": w(k3, (d_model, d_model)), "w_o": w(k4, (d_model, d_model))}

    def ln(k):
        kg, kb = jax.random.split(k)
        return {"gamma": (1.0 + 0.1 * jax.random.normal(kg, (1, d_model))).astype(dtype),
                "beta": (0.1 * jax.random.normal(kb, (1, d_model))).astype(dtype)}

    k1, k2, kf, kl1, kl2, kl3 = jax.random.split(key, 6)
    kf1, kf2, kf3, kf4 = jax.random.split(kf, 4)
    return {
        "masked_attention": mha(k1),
        "attention": mha(k2),
        "ffn": {"w1": w(kf1, (d_model, ffn_hidden)),
                "b1": (0.1 * jax.random.normal(kf2, (1, ffn_hidden))).astype(dtype),
                "w2": w(kf3, (ffn_hidden, d_model)),
                "b2": (0.1 * jax.random.normal(kf4, (1, d_model))).astype(dtype)},
        "addnorm1": ln(kl1), "addnorm2": ln(kl2), "addnorm3": ln(kl3),
    }


if __name__ == "__main__":
    root = jax.random.PRNGKey(0)
    key_a, key_b = jax.random.split(root)

    # ---- primary check: heads-in-lane attention path (head_dim = 128) ----
    batch, seq_len, enc_len = 2, 8, 8
    d_model, num_heads, ffn_hidden = 256, 2, 512
    kp, kx, ke = jax.random.split(key_a, 3)
    params = _init_params(kp, d_model, ffn_hidden)
    X = jax.random.normal(kx, (batch, seq_len, d_model), dtype=jnp.float32)
    enc_out = jax.random.normal(ke, (batch, enc_len, d_model), dtype=jnp.float32)

    causal2d = jnp.triu(jnp.ones((seq_len, seq_len), dtype=bool), k=1)
    causal3d = jnp.broadcast_to(causal2d, (batch * num_heads, seq_len, seq_len))
    cross_valid_len = jnp.array([5, 3], dtype=jnp.int32)

    out = decoder_block(params, X, enc_out, num_heads,
                        cross_attention_valid_len=cross_valid_len,
                        self_attention_causal_mask=causal3d)
    jax.block_until_ready(out)
    ref = _ref_decoder_block(params, X, enc_out, num_heads,
                             cross_attention_valid_len=cross_valid_len,
                             self_attention_causal_mask=causal3d)
    assert out.shape == (batch, seq_len, d_model)
    err = float(jnp.max(jnp.abs(out - ref)))
    assert jnp.allclose(out, ref, atol=2e-2, rtol=2e-2), \
        "primary DecoderBlock mismatch, max err %e" % err

    # ---- secondary check: fallback head layout (head_dim = 16), 2-D causal mask,
    #      and unmasked cross-attention ----
    d_model2, num_heads2, ffn_hidden2 = 64, 4, 128
    kp2, kx2, ke2 = jax.random.split(key_b, 3)
    params2 = _init_params(kp2, d_model2, ffn_hidden2)
    X2 = jax.random.normal(kx2, (batch, seq_len, d_model2), dtype=jnp.float32)
    enc2 = jax.random.normal(ke2, (batch, enc_len, d_model2), dtype=jnp.float32)

    out2 = decoder_block(params2, X2, enc2, num_heads2,
                         cross_attention_valid_len=None,
                         self_attention_causal_mask=causal2d)
    jax.block_until_ready(out2)
    ref2 = _ref_decoder_block(params2, X2, enc2, num_heads2,
                              cross_attention_valid_len=None,
                              self_attention_causal_mask=causal2d)
    err2 = float(jnp.max(jnp.abs(out2 - ref2)))
    assert jnp.allclose(out2, ref2, atol=2e-2, rtol=2e-2), \
        "secondary DecoderBlock mismatch, max err %e" % err2

    print("KERNEL_OK")
</pallas_src>

<mosaic_0001>
module attributes {stable_mosaic.version = 11 : i64} {
  func.func @kernel(%arg0: i32, %arg1: i32, %arg2: i32, %arg3: i32, %arg4: memref<1x8x128xf32, #tpu.memory_space<vmem>>, %arg5: memref<1x8x128xf32, #tpu.memory_space<vmem>>, %arg6: memref<1x8x128xf32, #tpu.memory_space<vmem>>, %arg7: memref<1x8x8xi8, #tpu.memory_space<vmem>>, %arg8: memref<1x8x128xf32, #tpu.memory_space<vmem>>, %arg9: memref<1x8x1xf32, #tpu.memory_space<vmem>>, %arg10: memref<1x8x1xf32, #tpu.memory_space<vmem>>, %arg11: memref<1x8x128xf32, #tpu.memory_space<vmem>>) attributes {dimension_semantics = [#tpu.dimension_semantics<parallel>, #tpu.dimension_semantics<parallel>, #tpu.dimension_semantics<arbitrary>, #tpu.dimension_semantics<arbitrary>], iteration_bounds = array<i64: 2, 2, 1, 1>, scalar_prefetch = 0 : i64, scratch_operands = 3 : i64, tpu.core_type = #tpu.core_type<tc>, window_params = [{transform_indices = @transform_0, window_bounds = array<i64: 1, 8, 128>}, {transform_indices = @transform_1, window_bounds = array<i64: 1, 8, 128>}, {transform_indices = @transform_2, window_bounds = array<i64: 1, 8, 128>}, {transform_indices = @transform_3, window_bounds = array<i64: 1, 8, 8>}, {transform_indices = @transform_4, window_bounds = array<i64: 1, 8, 128>}]} {
    %c0_i32 = arith.constant 0 : i32
    %0 = arith.cmpi eq, %arg3, %c0_i32 : i32
    %1 = arith.extui %0 : i1 to i32
    %c0_i32_0 = arith.constant 0 : i32
    %2 = arith.cmpi ne, %1, %c0_i32_0 : i32
    scf.if %2 {
      %cst_37 = arith.constant 0xFF800000 : f32
      %39 = vector.broadcast %cst_37 : f32 to vector<1x8x1xf32>
      %c0_38 = arith.constant 0 : index
      %c0_39 = arith.constant 0 : index
      %c0_40 = arith.constant 0 : index
      %40 = vector.load %arg9[%c0_38, %c0_39, %c0_40] : memref<1x8x1xf32, #tpu.memory_space<vmem>>, vector<1x8x1xf32>
      tpu.vector_store %arg9[%c0_38, %c0_39, %c0_40], %39 {strides = array<i32>} : memref<1x8x1xf32, #tpu.memory_space<vmem>>, vector<1x8x1xf32>,
      %cst_41 = arith.constant 0.000000e+00 : f32
      %41 = vector.broadcast %cst_41 : f32 to vector<1x8x1xf32>
      %c0_42 = arith.constant 0 : index
      %c0_43 = arith.constant 0 : index
      %c0_44 = arith.constant 0 : index
      %42 = vector.load %arg10[%c0_42, %c0_43, %c0_44] : memref<1x8x1xf32, #tpu.memory_space<vmem>>, vector<1x8x1xf32>
      tpu.vector_store %arg10[%c0_42, %c0_43, %c0_44], %41 {strides = array<i32>} : memref<1x8x1xf32, #tpu.memory_space<vmem>>, vector<1x8x1xf32>,
      %cst_45 = arith.constant 0.000000e+00 : f32
      %43 = vector.broadcast %cst_45 : f32 to vector<1x8x128xf32>
      %c0_46 = arith.constant 0 : index
      %c0_47 = arith.constant 0 : index
      %c0_48 = arith.constant 0 : index
      %44 = vector.load %arg11[%c0_46, %c0_47, %c0_48] : memref<1x8x128xf32, #tpu.memory_space<vmem>>, vector<1x8x128xf32>
      tpu.vector_store %arg11[%c0_46, %c0_47, %c0_48], %43 {strides = array<i32>} : memref<1x8x128xf32, #tpu.memory_space<vmem>>, vector<1x8x128xf32>,
    } else {
    }
    %c0 = arith.constant 0 : index
    %c0_1 = arith.constant 0 : index
    %c0_2 = arith.constant 0 : index
    %3 = vector.load %arg4[%c0, %c0_1, %c0_2] : memref<1x8x128xf32, #tpu.memory_space<vmem>>, vector<1x8x128xf32>
    %c0_3 = arith.constant 0 : index
    %c0_4 = arith.constant 0 : index
    %c0_5 = arith.constant 0 : index
    %4 = vector.load %arg5[%c0_3, %c0_4, %c0_5] : memref<1x8x128xf32, #tpu.memory_space<vmem>>, vector<1x8x128xf32>
    %c0_6 = arith.constant 0 : index
    %c0_7 = arith.constant 0 : index
    %c0_8 = arith.constant 0 : index
    %5 = vector.load %arg6[%c0_6, %c0_7, %c0_8] : memref<1x8x128xf32, #tpu.memory_space<vmem>>, vector<1x8x128xf32>
    %cst = arith.constant dense<0.000000e+00> : vector<1x8x8xf32>
    %6 = tpu.matmul %3, %4, %cst {dimension_numbers = #tpu.dot_dimension_numbers<[2], [2], [1], [1], [0, 0, 0, 1, 1, 1], [0], [0]>} : vector<1x8x128xf32>, vector<1x8x128xf32>, vector<1x8x8xf32> -> vector<1x8x8xf32>
    %cst_9 = arith.constant 0.0883883461 : f32
    %7 = vector.broadcast %cst_9 : f32 to vector<1x8x8xf32>
    %8 = arith.mulf %6, %7 : vector<1x8x8xf32>
    %c0_10 = arith.constant 0 : index
    %c0_11 = arith.constant 0 : index
    %c0_12 = arith.constant 0 : index
    %9 = vector.load %arg7[%c0_10, %c0_11, %c0_12] : memref<1x8x8xi8, #tpu.memory_space<vmem>>, vector<1x8x8xi8>
    %c0_i8 = arith.constant 0 : i8
    %10 = vector.broadcast %c0_i8 : i8 to vector<1x8x8xi8>
    %11 = arith.cmpi ne, %9, %10 : vector<1x8x8xi8>
    %cst_13 = arith.constant -1.000000e+06 : f32
    %12 = vector.broadcast %cst_13 : f32 to vector<1x8x8xf32>
    %13 = arith.select %11, %12, %8 : vector<1x8x8xi1>, vector<1x8x8xf32>
    %c0_14 = arith.constant 0 : index
    %c0_15 = arith.constant 0 : index
    %c0_16 = arith.constant 0 : index
    %14 = vector.load %arg9[%c0_14, %c0_15, %c0_16] : memref<1x8x1xf32, #tpu.memory_space<vmem>>, vector<1x8x1xf32>
    %cst_17 = arith.constant dense<0xFF800000> : vector<1x8xf32>
    %15 = vector.multi_reduction <maximumf>, %13, %cst_17 [2] : vector<1x8x8xf32> to vector<1x8xf32>
    %16 = vector.shape_cast %15 : vector<1x8xf32> to vector<1x8x1xf32>
    %17 = arith.maximumf %14, %16 : vector<1x8x1xf32>
    %18 = arith.subf %14, %17 : vector<1x8x1xf32>
    %19 = math.exp %18 : vector<1x8x1xf32>
    %20 = vector.broadcast %17 : vector<1x8x1xf32> to vector<1x8x8xf32>
    %21 = arith.subf %13, %20 : vector<1x8x8xf32>
    %22 = math.exp %21 : vector<1x8x8xf32>
    %c0_18 = arith.constant 0 : index
    %c0_19 = arith.constant 0 : index
    %c0_20 = arith.constant 0 : index
    %23 = vector.load %arg10[%c0_18, %c0_19, %c0_20] : memref<1x8x1xf32, #tpu.memory_space<vmem>>, vector<1x8x1xf32>
    %24 = arith.mulf %19, %23 : vector<1x8x1xf32>
    %cst_21 = arith.constant dense<0.000000e+00> : vector<1x8xf32>
    %25 = vector.multi_reduction <add>, %22, %cst_21 [2] : vector<1x8x8xf32> to vector<1x8xf32>
    %26 = vector.shape_cast %25 : vector<1x8xf32> to vector<1x8x1xf32>
    %27 = arith.addf %24, %26 : vector<1x8x1xf32>
    %c0_22 = arith.constant 0 : index
    %c0_23 = arith.constant 0 : index
    %c0_24 = arith.constant 0 : index
    %28 = vector.load %arg10[%c0_22, %c0_23, %c0_24] : memref<1x8x1xf32, #tpu.memory_space<vmem>>, vector<1x8x1xf32>
    tpu.vector_store %arg10[%c0_22, %c0_23, %c0_24], %27 {strides = array<i32>} : memref<1x8x1xf32, #tpu.memory_space<vmem>>, vector<1x8x1xf32>,
    %c0_25 = arith.constant 0 : index
    %c0_26 = arith.constant 0 : index
    %c0_27 = arith.constant 0 : index
    %29 = vector.load %arg11[%c0_25, %c0_26, %c0_27] : memref<1x8x128xf32, #tpu.memory_space<vmem>>, vector<1x8x128xf32>
    %30 = vector.broadcast %19 : vector<1x8x1xf32> to vector<1x8x128xf32>
    %31 = arith.mulf %30, %29 : vector<1x8x128xf32>
    %cst_28 = arith.constant dense<0.000000e+00> : vector<1x8x128xf32>
    %32 = tpu.matmul %22, %5, %cst_28 {dimension_numbers = #tpu.dot_dimension_numbers<[2], [1], [1], [2], [0, 0, 0, 1, 1, 2], [0], [0]>} : vector<1x8x8xf32>, vector<1x8x128xf32>, vector<1x8x128xf32> -> vector<1x8x128xf32>
    %33 = arith.addf %31, %32 : vector<1x8x128xf32>
    %c0_29 = arith.constant 0 : index
    %c0_30 = arith.constant 0 : index
    %c0_31 = arith.constant 0 : index
    %34 = vector.load %arg11[%c0_29, %c0_30, %c0_31] : memref<1x8x128xf32, #tpu.memory_space<vmem>>, vector<1x8x128xf32>
    tpu.vector_store %arg11[%c0_29, %c0_30, %c0_31], %33 {strides = array<i32>} : memref<1x8x128xf32, #tpu.memory_space<vmem>>, vector<1x8x128xf32>,
    %c0_32 = arith.constant 0 : index
    %c0_33 = arith.constant 0 : index
    %c0_34 = arith.constant 0 : index
    %35 = vector.load %arg9[%c0_32, %c0_33, %c0_34] : memref<1x8x1xf32, #tpu.memory_space<vmem>>, vector<1x8x1xf32>
    tpu.vector_store %arg9[%c0_32, %c0_33, %c0_34], %17 {strides = array<i32>} : memref<1x8x1xf32, #tpu.memory_space<vmem>>, vector<1x8x1xf32>,
    %c0_i32_35 = arith.constant 0 : i32
    %36 = arith.cmpi eq, %arg3, %c0_i32_35 : i32
    %37 = arith.extui %36 : i1 to i32
    %c0_i32_36 = arith.constant 0 : i32
    %38 = arith.cmpi ne, %37, %c0_i32_36 : i32
    scf.if %38 {
      %c0_37 = arith.constant 0 : index
      %c0_38 = arith.constant 0 : index
      %c0_39 = arith.constant 0 : index
      %39 = vector.load %arg11[%c0_37, %c0_38, %c0_39] : memref<1x8x128xf32, #tpu.memory_space<vmem>>, vector<1x8x128xf32>
      %c0_40 = arith.constant 0 : index
      %c0_41 = arith.constant 0 : index
      %c0_42 = arith.constant 0 : index
      %40 = vector.load %arg10[%c0_40, %c0_41, %c0_42] : memref<1x8x1xf32, #tpu.memory_space<vmem>>, vector<1x8x1xf32>
      %41 = vector.broadcast %40 : vector<1x8x1xf32> to vector<1x8x128xf32>
      %42 = arith.divf %39, %41 : vector<1x8x128xf32>
      %c0_43 = arith.constant 0 : index
      %c0_44 = arith.constant 0 : index
      %c0_45 = arith.constant 0 : index
      %43 = vector.load %arg8[%c0_43, %c0_44, %c0_45] : memref<1x8x128xf32, #tpu.memory_space<vmem>>, vector<1x8x128xf32>
      tpu.vector_store %arg8[%c0_43, %c0_44, %c0_45], %42 {strides = array<i32>} : memref<1x8x128xf32, #tpu.memory_space<vmem>>, vector<1x8x128xf32>,
    } else {
    }
    return
  }
  func.func @transform_0(%arg0: i32, %arg1: i32, %arg2: i32, %arg3: i32) -> (i32, i32, i32) {
    %c0_i32 = arith.constant 0 : i32
    return %arg0, %arg2, %arg1 : i32, i32, i32
  }
  func.func @transform_1(%arg0: i32, %arg1: i32, %arg2: i32, %arg3: i32) -> (i32, i32, i32) {
    %c0_i32 = arith.constant 0 : i32
    return %arg0, %arg3, %arg1 : i32, i32, i32
  }
  func.func @transform_2(%arg0: i32, %arg1: i32, %arg2: i32, %arg3: i32) -> (i32, i32, i32) {
    %c0_i32 = arith.constant 0 : i32
    return %arg0, %arg3, %arg1 : i32, i32, i32
  }
  func.func @transform_3(%arg0: i32, %arg1: i32, %arg2: i32, %arg3: i32) -> (i32, i32, i32) {
    %c2_i32 = arith.constant 2 : i32
    %0 = arith.muli %arg0, %c2_i32 : i32
    %1 = arith.addi %0, %arg1 : i32
    %c0_i32 = arith.constant 0 : i32
    return %1, %arg2, %arg3 : i32, i32, i32
  }
  func.func @transform_4(%arg0: i32, %arg1: i32, %arg2: i32, %arg3: i32) -> (i32, i32, i32) {
    %c0_i32 = arith.constant 0 : i32
    return %arg0, %arg2, %arg1 : i32, i32, i32
  }
}

module attributes {stable_mosaic.version = 11 : i64} {
  func.func @_proj_addnorm_kernel(%arg0: i32, %arg1: i32, %arg2: memref<16x256xf32, #tpu.memory_space<vmem>>, %arg3: memref<256x256xf32, #tpu.memory_space<vmem>>, %arg4: memref<16x256xf32, #tpu.memory_space<vmem>>, %arg5: memref<1x256xf32, #tpu.memory_space<vmem>>, %arg6: memref<1x256xf32, #tpu.memory_space<vmem>>, %arg7: memref<16x256xf32, #tpu.memory_space<vmem>>, %arg8: memref<16x256xf32, #tpu.memory_space<vmem>>) attributes {dimension_semantics = [#tpu.dimension_semantics<parallel>, #tpu.dimension_semantics<arbitrary>], iteration_bounds = array<i64: 1, 1>, scalar_prefetch = 0 : i64, scratch_operands = 1 : i64, tpu.core_type = #tpu.core_type<tc>, window_params = [{transform_indices = @transform_0, window_bounds = array<i64: 16, 256>}, {transform_indices = @transform_1, window_bounds = array<i64: 256, 256>}, {transform_indices = @transform_2, window_bounds = array<i64: 16, 256>}, {pipeline_mode = #tpu.pipeline_mode<synchronous>, transform_indices = @transform_3, window_bounds = array<i64: 1, 256>}, {pipeline_mode = #tpu.pipeline_mode<synchronous>, transform_indices = @transform_4, window_bounds = array<i64: 1, 256>}, {transform_indices = @transform_5, window_bounds = array<i64: 16, 256>}]} {
    %c0_i32 = arith.constant 0 : i32
    %0 = arith.cmpi eq, %arg1, %c0_i32 : i32
    %1 = arith.extui %0 : i1 to i32
    %c0_i32_0 = arith.constant 0 : i32
    %2 = arith.cmpi ne, %1, %c0_i32_0 : i32
    scf.if %2 {
      %cst_10 = arith.constant 0.000000e+00 : f32
      %12 = vector.broadcast %cst_10 : f32 to vector<16x256xf32>
      %c0_11 = arith.constant 0 : index
      %c0_12 = arith.constant 0 : index
      %13 = vector.load %arg8[%c0_11, %c0_12] : memref<16x256xf32, #tpu.memory_space<vmem>>, vector<16x256xf32>
      tpu.vector_store %arg8[%c0_11, %c0_12], %12 {strides = array<i32>} : memref<16x256xf32, #tpu.memory_space<vmem>>, vector<16x256xf32>,
    } else {
    }
    %c0 = arith.constant 0 : index
    %c0_1 = arith.constant 0 : index
    %3 = vector.load %arg8[%c0, %c0_1] : memref<16x256xf32, #tpu.memory_space<vmem>>, vector<16x256xf32>
    %c0_2 = arith.constant 0 : index
    %c0_3 = arith.constant 0 : index
    %4 = vector.load %arg2[%c0_2, %c0_3] : memref<16x256xf32, #tpu.memory_space<vmem>>, vector<16x256xf32>
    %c0_4 = arith.constant 0 : index
    %c0_5 = arith.constant 0 : index
    %5 = vector.load %arg3[%c0_4, %c0_5] : memref<256x256xf32, #tpu.memory_space<vmem>>, vector<256x256xf32>
    %cst = arith.constant dense<0.000000e+00> : vector<16x256xf32>
    %6 = tpu.matmul %4, %5, %cst {dimension_numbers = #tpu.dot_dimension_numbers<[1], [0], [0], [1], [0, 0, 1, 1], [], []>} : vector<16x256xf32>, vector<256x256xf32>, vector<16x256xf32> -> vector<16x256xf32>
    %7 = arith.addf %3, %6 : vector<16x256xf32>
    %c0_6 = arith.constant 0 : index
    %c0_7 = arith.constant 0 : index
    %8 = vector.load %arg8[%c0_6, %c0_7] : memref<16x256xf32, #tpu.memory_space<vmem>>, vector<16x256xf32>
    tpu.vector_store %arg8[%c0_6, %c0_7], %7 {strides = array<i32>} : memref<16x256xf32, #tpu.memory_space<vmem>>, vector<16x256xf32>,
    %c0_i32_8 = arith.constant 0 : i32
    %9 = arith.cmpi eq, %arg1, %c0_i32_8 : i32
    %10 = arith.extui %9 : i1 to i32
    %c0_i32_9 = arith.constant 0 : i32
    %11 = arith.cmpi ne, %10, %c0_i32_9 : i32
    scf.if %11 {
      %c0_10 = arith.constant 0 : index
      %c0_11 = arith.constant 0 : index
      %12 = vector.load %arg8[%c0_10, %c0_11] : memref<16x256xf32, #tpu.memory_space<vmem>>, vector<16x256xf32>
      %c0_12 = arith.constant 0 : index
      %c0_13 = arith.constant 0 : index
      %13 = vector.load %arg4[%c0_12, %c0_13] : memref<16x256xf32, #tpu.memory_space<vmem>>, vector<16x256xf32>
      %14 = arith.addf %12, %13 : vector<16x256xf32>
      %cst_14 = arith.constant dense<0.000000e+00> : vector<16xf32>
      %15 = vector.multi_reduction <add>, %14, %cst_14 [1] : vector<16x256xf32> to vector<16xf32>
      %16 = vector.shape_cast %15 : vector<16xf32> to vector<16x1xf32>
      %cst_15 = arith.constant 2.560000e+02 : f32
      %17 = vector.broadcast %cst_15 : f32 to vector<16x1xf32>
      %18 = arith.divf %16, %17 : vector<16x1xf32>
      %19 = vector.broadcast %18 : vector<16x1xf32> to vector<16x256xf32>
      %20 = arith.subf %14, %19 : vector<16x256xf32>
      %21 = arith.mulf %20, %20 : vector<16x256xf32>
      %cst_16 = arith.constant dense<0.000000e+00> : vector<16xf32>
      %22 = vector.multi_reduction <add>, %21, %cst_16 [1] : vector<16x256xf32> to vector<16xf32>
      %23 = vector.shape_cast %22 : vector<16xf32> to vector<16x1xf32>
      %cst_17 = arith.constant 2.560000e+02 : f32
      %24 = vector.broadcast %cst_17 : f32 to vector<16x1xf32>
      %25 = arith.divf %23, %24 : vector<16x1xf32>
      %cst_18 = arith.constant 9.99999974E-6 : f32
      %26 = vector.broadcast %cst_18 : f32 to vector<16x1xf32>
      %27 = arith.addf %25, %26 : vector<16x1xf32>
      %28 = math.rsqrt %27 : vector<16x1xf32>
      %29 = vector.broadcast %28 : vector<16x1xf32> to vector<16x256xf32>
      %30 = arith.mulf %20, %29 : vector<16x256xf32>
      %c0_19 = arith.constant 0 : index
      %c0_20 = arith.constant 0 : index
      %31 = vector.load %arg5[%c0_19, %c0_20] : memref<1x256xf32, #tpu.memory_space<vmem>>, vector<1x256xf32>
      %32 = vector.broadcast %31 : vector<1x256xf32> to vector<16x256xf32>
      %33 = arith.mulf %30, %32 : vector<16x256xf32>
      %c0_21 = arith.constant 0 : index
      %c0_22 = arith.constant 0 : index
      %34 = vector.load %arg6[%c0_21, %c0_22] : memref<1x256xf32, #tpu.memory_space<vmem>>, vector<1x256xf32>
      %35 = vector.broadcast %34 : vector<1x256xf32> to vector<16x256xf32>
      %36 = arith.addf %33, %35 : vector<16x256xf32>
      %c0_23 = arith.constant 0 : index
      %c0_24 = arith.constant 0 : index
      %37 = vector.load %arg7[%c0_23, %c0_24] : memref<16x256xf32, #tpu.memory_space<vmem>>, vector<16x256xf32>
      tpu.vector_store %arg7[%c0_23, %c0_24], %36 {strides = array<i32>} : memref<16x256xf32, #tpu.memory_space<vmem>>, vector<16x256xf32>,
    } else {
    }
    return
  }
  func.func @transform_0(%arg0: i32, %arg1: i32) -> (i32, i32) {
    %c0_i32 = arith.constant 0 : i32
    return %arg0, %arg1 : i32, i32
  }
  func.func @transform_1(%arg0: i32, %arg1: i32) -> (i32, i32) {
    %c0_i32 = arith.constant 0 : i32
    %c0_i32_0 = arith.constant 0 : i32
    return %arg1, %c0_i32 : i32, i32
  }
  func.func @transform_2(%arg0: i32, %arg1: i32) -> (i32, i32) {
    %c0_i32 = arith.constant 0 : i32
    %c0_i32_0 = arith.constant 0 : i32
    return %arg0, %c0_i32 : i32, i32
  }
  func.func @transform_3(%arg0: i32, %arg1: i32) -> (i32, i32) {
    %c0_i32 = arith.constant 0 : i32
    %c0_i32_0 = arith.constant 0 : i32
    %c0_i32_1 = arith.constant 0 : i32
    return %c0_i32, %c0_i32_0 : i32, i32
  }
  func.func @transform_4(%arg0: i32, %arg1: i32) -> (i32, i32) {
    %c0_i32 = arith.constant 0 : i32
    %c0_i32_0 = arith.constant 0 : i32
    %c0_i32_1 = arith.constant 0 : i32
    return %c0_i32, %c0_i32_0 : i32, i32
  }
  func.func @transform_5(%arg0: i32, %arg1: i32) -> (i32, i32) {
    %c0_i32 = arith.constant 0 : i32
    %c0_i32_0 = arith.constant 0 : i32
    return %arg0, %c0_i32 : i32, i32
  }
}

module attributes {stable_mosaic.version = 11 : i64} {
  func.func @kernel(%arg0: i32, %arg1: i32, %arg2: memref<16x256xf32, #tpu.memory_space<vmem>>, %arg3: memref<256x256xf32, #tpu.memory_space<vmem>>, %arg4: memref<256x256xf32, #tpu.memory_space<vmem>>, %arg5: memref<256x256xf32, #tpu.memory_space<vmem>>, %arg6: memref<16x256xf32, #tpu.memory_space<vmem>>, %arg7: memref<16x256xf32, #tpu.memory_space<vmem>>, %arg8: memref<16x256xf32, #tpu.memory_space<vmem>>) attributes {dimension_semantics = [#tpu.dimension_semantics<parallel>, #tpu.dimension_semantics<arbitrary>], iteration_bounds = array<i64: 1, 1>, scalar_prefetch = 0 : i64, scratch_operands = 0 : i64, tpu.core_type = #tpu.core_type<tc>, window_params = [{transform_indices = @transform_0, window_bounds = array<i64: 16, 256>}, {transform_indices = @transform_1, window_bounds = array<i64: 256, 256>}, {transform_indices = @transform_2, window_bounds = array<i64: 256, 256>}, {transform_indices = @transform_3, window_bounds = array<i64: 256, 256>}, {transform_indices = @transform_4, window_bounds = array<i64: 16, 256>}, {transform_indices = @transform_5, window_bounds = array<i64: 16, 256>}, {transform_indices = @transform_6, window_bounds = array<i64: 16, 256>}]} {
    %c0 = arith.constant 0 : index
    %c0_0 = arith.constant 0 : index
    %0 = vector.load %arg2[%c0, %c0_0] : memref<16x256xf32, #tpu.memory_space<vmem>>, vector<16x256xf32>
    %c0_1 = arith.constant 0 : index
    %c0_2 = arith.constant 0 : index
    %1 = vector.load %arg3[%c0_1, %c0_2] : memref<256x256xf32, #tpu.memory_space<vmem>>, vector<256x256xf32>
    %cst = arith.constant dense<0.000000e+00> : vector<16x256xf32>
    %2 = tpu.matmul %0, %1, %cst {dimension_numbers = #tpu.dot_dimension_numbers<[1], [0], [0], [1], [0, 0, 1, 1], [], []>} : vector<16x256xf32>, vector<256x256xf32>, vector<16x256xf32> -> vector<16x256xf32>
    %c0_3 = arith.constant 0 : index
    %c0_4 = arith.constant 0 : index
    %3 = vector.load %arg6[%c0_3, %c0_4] : memref<16x256xf32, #tpu.memory_space<vmem>>, vector<16x256xf32>
    tpu.vector_store %arg6[%c0_3, %c0_4], %2 {strides = array<i32>} : memref<16x256xf32, #tpu.memory_space<vmem>>, vector<16x256xf32>,
    %c0_5 = arith.constant 0 : index
    %c0_6 = arith.constant 0 : index
    %4 = vector.load %arg4[%c0_5, %c0_6] : memref<256x256xf32, #tpu.memory_space<vmem>>, vector<256x256xf32>
    %cst_7 = arith.constant dense<0.000000e+00> : vector<16x256xf32>
    %5 = tpu.matmul %0, %4, %cst_7 {dimension_numbers = #tpu.dot_dimension_numbers<[1], [0], [0], [1], [0, 0, 1, 1], [], []>} : vector<16x256xf32>, vector<256x256xf32>, vector<16x256xf32> -> vector<16x256xf32>
    %c0_8 = arith.constant 0 : index
    %c0_9 = arith.constant 0 : index
    %6 = vector.load %arg7[%c0_8, %c0_9] : memref<16x256xf32, #tpu.memory_space<vmem>>, vector<16x256xf32>
    tpu.vector_store %arg7[%c0_8, %c0_9], %5 {strides = array<i32>} : memref<16x256xf32, #tpu.memory_space<vmem>>, vector<16x256xf32>,
    %c0_10 = arith.constant 0 : index
    %c0_11 = arith.constant 0 : index
    %7 = vector.load %arg5[%c0_10, %c0_11] : memref<256x256xf32, #tpu.memory_space<vmem>>, vector<256x256xf32>
    %cst_12 = arith.constant dense<0.000000e+00> : vector<16x256xf32>
    %8 = tpu.matmul %0, %7, %cst_12 {dimension_numbers = #tpu.dot_dimension_numbers<[1], [0], [0], [1], [0, 0, 1, 1], [], []>} : vector<16x256xf32>, vector<256x256xf32>, vector<16x256xf32> -> vector<16x256xf32>
    %c0_13 = arith.constant 0 : index
    %c0_14 = arith.constant 0 : index
    %9 = vector.load %arg8[%c0_13, %c0_14] : memref<16x256xf32, #tpu.memory_space<vmem>>, vector<16x256xf32>
    tpu.vector_store %arg8[%c0_13, %c0_14], %8 {strides = array<i32>} : memref<16x256xf32, #tpu.memory_space<vmem>>, vector<16x256xf32>,
    return
  }
  func.func @transform_0(%arg0: i32, %arg1: i32) -> (i32, i32) {
    %c0_i32 = arith.constant 0 : i32
    %c0_i32_0 = arith.constant 0 : i32
    return %arg0, %c0_i32 : i32, i32
  }
  func.func @transform_1(%arg0: i32, %arg1: i32) -> (i32, i32) {
    %c0_i32 = arith.constant 0 : i32
    %c0_i32_0 = arith.constant 0 : i32
    return %c0_i32, %arg1 : i32, i32
  }
  func.func @transform_2(%arg0: i32, %arg1: i32) -> (i32, i32) {
    %c0_i32 = arith.constant 0 : i32
    %c0_i32_0 = arith.constant 0 : i32
    return %c0_i32, %arg1 : i32, i32
  }
  func.func @transform_3(%arg0: i32, %arg1: i32) -> (i32, i32) {
    %c0_i32 = arith.constant 0 : i32
    %c0_i32_0 = arith.constant 0 : i32
    return %c0_i32, %arg1 : i32, i32
  }
  func.func @transform_4(%arg0: i32, %arg1: i32) -> (i32, i32) {
    %c0_i32 = arith.constant 0 : i32
    return %arg0, %arg1 : i32, i32
  }
  func.func @transform_5(%arg0: i32, %arg1: i32) -> (i32, i32) {
    %c0_i32 = arith.constant 0 : i32
    return %arg0, %arg1 : i32, i32
  }
  func.func @transform_6(%arg0: i32, %arg1: i32) -> (i32, i32) {
    %c0_i32 = arith.constant 0 : i32
    return %arg0, %arg1 : i32, i32
  }
}

module attributes {stable_mosaic.version = 11 : i64} {
  func.func @kernel(%arg0: i32, %arg1: i32, %arg2: memref<16x256xf32, #tpu.memory_space<vmem>>, %arg3: memref<256x256xf32, #tpu.memory_space<vmem>>, %arg4: memref<16x256xf32, #tpu.memory_space<vmem>>) attributes {dimension_semantics = [#tpu.dimension_semantics<parallel>, #tpu.dimension_semantics<arbitrary>], iteration_bounds = array<i64: 1, 1>, scalar_prefetch = 0 : i64, scratch_operands = 0 : i64, tpu.core_type = #tpu.core_type<tc>, window_params = [{transform_indices = @transform_0, window_bounds = array<i64: 16, 256>}, {transform_indices = @transform_1, window_bounds = array<i64: 256, 256>}, {transform_indices = @transform_2, window_bounds = array<i64: 16, 256>}]} {
    %c0 = arith.constant 0 : index
    %c0_0 = arith.constant 0 : index
    %0 = vector.load %arg2[%c0, %c0_0] : memref<16x256xf32, #tpu.memory_space<vmem>>, vector<16x256xf32>
    %c0_1 = arith.constant 0 : index
    %c0_2 = arith.constant 0 : index
    %1 = vector.load %arg3[%c0_1, %c0_2] : memref<256x256xf32, #tpu.memory_space<vmem>>, vector<256x256xf32>
    %cst = arith.constant dense<0.000000e+00> : vector<16x256xf32>
    %2 = tpu.matmul %0, %1, %cst {dimension_numbers = #tpu.dot_dimension_numbers<[1], [0], [0], [1], [0, 0, 1, 1], [], []>} : vector<16x256xf32>, vector<256x256xf32>, vector<16x256xf32> -> vector<16x256xf32>
    %c0_3 = arith.constant 0 : index
    %c0_4 = arith.constant 0 : index
    %3 = vector.load %arg4[%c0_3, %c0_4] : memref<16x256xf32, #tpu.memory_space<vmem>>, vector<16x256xf32>
    tpu.vector_store %arg4[%c0_3, %c0_4], %2 {strides = array<i32>} : memref<16x256xf32, #tpu.memory_space<vmem>>, vector<16x256xf32>,
    return
  }
  func.func @transform_0(%arg0: i32, %arg1: i32) -> (i32, i32) {
    %c0_i32 = arith.constant 0 : i32
    %c0_i32_0 = arith.constant 0 : i32
    return %arg0, %c0_i32 : i32, i32
  }
  func.func @transform_1(%arg0: i32, %arg1: i32) -> (i32, i32) {
    %c0_i32 = arith.constant 0 : i32
    %c0_i32_0 = arith.constant 0 : i32
    return %c0_i32, %arg1 : i32, i32
  }
  func.func @transform_2(%arg0: i32, %arg1: i32) -> (i32, i32) {
    %c0_i32 = arith.constant 0 : i32
    return %arg0, %arg1 : i32, i32
  }
}

module attributes {stable_mosaic.version = 11 : i64} {
  func.func @kernel(%arg0: i32, %arg1: i32, %arg2: memref<16x256xf32, #tpu.memory_space<vmem>>, %arg3: memref<256x256xf32, #tpu.memory_space<vmem>>, %arg4: memref<256x256xf32, #tpu.memory_space<vmem>>, %arg5: memref<16x256xf32, #tpu.memory_space<vmem>>, %arg6: memref<16x256xf32, #tpu.memory_space<vmem>>) attributes {dimension_semantics = [#tpu.dimension_semantics<parallel>, #tpu.dimension_semantics<arbitrary>], iteration_bounds = array<i64: 1, 1>, scalar_prefetch = 0 : i64, scratch_operands = 0 : i64, tpu.core_type = #tpu.core_type<tc>, window_params = [{transform_indices = @transform_0, window_bounds = array<i64: 16, 256>}, {transform_indices = @transform_1, window_bounds = array<i64: 256, 256>}, {transform_indices = @transform_2, window_bounds = array<i64: 256, 256>}, {transform_indices = @transform_3, window_bounds = array<i64: 16, 256>}, {transform_indices = @transform_4, window_bounds = array<i64: 16, 256>}]} {
    %c0 = arith.constant 0 : index
    %c0_0 = arith.constant 0 : index
    %0 = vector.load %arg2[%c0, %c0_0] : memref<16x256xf32, #tpu.memory_space<vmem>>, vector<16x256xf32>
    %c0_1 = arith.constant 0 : index
    %c0_2 = arith.constant 0 : index
    %1 = vector.load %arg3[%c0_1, %c0_2] : memref<256x256xf32, #tpu.memory_space<vmem>>, vector<256x256xf32>
    %cst = arith.constant dense<0.000000e+00> : vector<16x256xf32>
    %2 = tpu.matmul %0, %1, %cst {dimension_numbers = #tpu.dot_dimension_numbers<[1], [0], [0], [1], [0, 0, 1, 1], [], []>} : vector<16x256xf32>, vector<256x256xf32>, vector<16x256xf32> -> vector<16x256xf32>
    %c0_3 = arith.constant 0 : index
    %c0_4 = arith.constant 0 : index
    %3 = vector.load %arg5[%c0_3, %c0_4] : memref<16x256xf32, #tpu.memory_space<vmem>>, vector<16x256xf32>
    tpu.vector_store %arg5[%c0_3, %c0_4], %2 {strides = array<i32>} : memref<16x256xf32, #tpu.memory_space<vmem>>, vector<16x256xf32>,
    %c0_5 = arith.constant 0 : index
    %c0_6 = arith.constant 0 : index
    %4 = vector.load %arg4[%c0_5, %c0_6] : memref<256x256xf32, #tpu.memory_space<vmem>>, vector<256x256xf32>
    %cst_7 = arith.constant dense<0.000000e+00> : vector<16x256xf32>
    %5 = tpu.matmul %0, %4, %cst_7 {dimension_numbers = #tpu.dot_dimension_numbers<[1], [0], [0], [1], [0, 0, 1, 1], [], []>} : vector<16x256xf32>, vector<256x256xf32>, vector<16x256xf32> -> vector<16x256xf32>
    %c0_8 = arith.constant 0 : index
    %c0_9 = arith.constant 0 : index
    %6 = vector.load %arg6[%c0_8, %c0_9] : memref<16x256xf32, #tpu.memory_space<vmem>>, vector<16x256xf32>
    tpu.vector_store %arg6[%c0_8, %c0_9], %5 {strides = array<i32>} : memref<16x256xf32, #tpu.memory_space<vmem>>, vector<16x256xf32>,
    return
  }
  func.func @transform_0(%arg0: i32, %arg1: i32) -> (i32, i32) {
    %c0_i32 = arith.constant 0 : i32
    %c0_i32_0 = arith.constant 0 : i32
    return %arg0, %c0_i32 : i32, i32
  }
  func.func @transform_1(%arg0: i32, %arg1: i32) -> (i32, i32) {
    %c0_i32 = arith.constant 0 : i32
    %c0_i32_0 = arith.constant 0 : i32
    return %c0_i32, %arg1 : i32, i32
  }
  func.func @transform_2(%arg0: i32, %arg1: i32) -> (i32, i32) {
    %c0_i32 = arith.constant 0 : i32
    %c0_i32_0 = arith.constant 0 : i32
    return %c0_i32, %arg1 : i32, i32
  }
  func.func @transform_3(%arg0: i32, %arg1: i32) -> (i32, i32) {
    %c0_i32 = arith.constant 0 : i32
    return %arg0, %arg1 : i32, i32
  }
  func.func @transform_4(%arg0: i32, %arg1: i32) -> (i32, i32) {
    %c0_i32 = arith.constant 0 : i32
    return %arg0, %arg1 : i32, i32
  }
}

module attributes {stable_mosaic.version = 11 : i64} {
  func.func @kernel(%arg0: i32, %arg1: i32, %arg2: i32, %arg3: i32, %arg4: memref<2xi32, #tpu.memory_space<smem>>, %arg5: memref<1x8x128xf32, #tpu.memory_space<vmem>>, %arg6: memref<1x8x128xf32, #tpu.memory_space<vmem>>, %arg7: memref<1x8x128xf32, #tpu.memory_space<vmem>>, %arg8: memref<1x8x128xf32, #tpu.memory_space<vmem>>, %arg9: memref<1x8x1xf32, #tpu.memory_space<vmem>>, %arg10: memref<1x8x1xf32, #tpu.memory_space<vmem>>, %arg11: memref<1x8x128xf32, #tpu.memory_space<vmem>>) attributes {dimension_semantics = [#tpu.dimension_semantics<parallel>, #tpu.dimension_semantics<parallel>, #tpu.dimension_semantics<arbitrary>, #tpu.dimension_semantics<arbitrary>], iteration_bounds = array<i64: 2, 2, 1, 1>, scalar_prefetch = 1 : i64, scratch_operands = 3 : i64, tpu.core_type = #tpu.core_type<tc>, window_params = [{transform_indices = @transform_0, window_bounds = array<i64: 1, 8, 128>}, {transform_indices = @transform_1, window_bounds = array<i64: 1, 8, 128>}, {transform_indices = @transform_2, window_bounds = array<i64: 1, 8, 128>}, {transform_indices = @transform_3, window_bounds = array<i64: 1, 8, 128>}]} {
    %c0_i32 = arith.constant 0 : i32
    %0 = arith.cmpi eq, %arg3, %c0_i32 : i32
    %1 = arith.extui %0 : i1 to i32
    %c0_i32_0 = arith.constant 0 : i32
    %2 = arith.cmpi ne, %1, %c0_i32_0 : i32
    scf.if %2 {
      %cst_34 = arith.constant 0xFF800000 : f32
      %44 = vector.broadcast %cst_34 : f32 to vector<1x8x1xf32>
      %c0_35 = arith.constant 0 : index
      %c0_36 = arith.constant 0 : index
      %c0_37 = arith.constant 0 : index
      %45 = vector.load %arg9[%c0_35, %c0_36, %c0_37] : memref<1x8x1xf32, #tpu.memory_space<vmem>>, vector<1x8x1xf32>
      tpu.vector_store %arg9[%c0_35, %c0_36, %c0_37], %44 {strides = array<i32>} : memref<1x8x1xf32, #tpu.memory_space<vmem>>, vector<1x8x1xf32>,
      %cst_38 = arith.constant 0.000000e+00 : f32
      %46 = vector.broadcast %cst_38 : f32 to vector<1x8x1xf32>
      %c0_39 = arith.constant 0 : index
      %c0_40 = arith.constant 0 : index
      %c0_41 = arith.constant 0 : index
      %47 = vector.load %arg10[%c0_39, %c0_40, %c0_41] : memref<1x8x1xf32, #tpu.memory_space<vmem>>, vector<1x8x1xf32>
      tpu.vector_store %arg10[%c0_39, %c0_40, %c0_41], %46 {strides = array<i32>} : memref<1x8x1xf32, #tpu.memory_space<vmem>>, vector<1x8x1xf32>,
      %cst_42 = arith.constant 0.000000e+00 : f32
      %48 = vector.broadcast %cst_42 : f32 to vector<1x8x128xf32>
      %c0_43 = arith.constant 0 : index
      %c0_44 = arith.constant 0 : index
      %c0_45 = arith.constant 0 : index
      %49 = vector.load %arg11[%c0_43, %c0_44, %c0_45] : memref<1x8x128xf32, #tpu.memory_space<vmem>>, vector<1x8x128xf32>
      tpu.vector_store %arg11[%c0_43, %c0_44, %c0_45], %48 {strides = array<i32>} : memref<1x8x128xf32, #tpu.memory_space<vmem>>, vector<1x8x128xf32>,
    } else {
    }
    %c0 = arith.constant 0 : index
    %c0_1 = arith.constant 0 : index
    %c0_2 = arith.constant 0 : index
    %3 = vector.load %arg5[%c0, %c0_1, %c0_2] : memref<1x8x128xf32, #tpu.memory_space<vmem>>, vector<1x8x128xf32>
    %c0_3 = arith.constant 0 : index
    %c0_4 = arith.constant 0 : index
    %c0_5 = arith.constant 0 : index
    %4 = vector.load %arg6[%c0_3, %c0_4, %c0_5] : memref<1x8x128xf32, #tpu.memory_space<vmem>>, vector<1x8x128xf32>
    %c0_6 = arith.constant 0 : index
    %c0_7 = arith.constant 0 : index
    %c0_8 = arith.constant 0 : index
    %5 = vector.load %arg7[%c0_6, %c0_7, %c0_8] : memref<1x8x128xf32, #tpu.memory_space<vmem>>, vector<1x8x128xf32>
    %cst = arith.constant dense<0.000000e+00> : vector<1x8x8xf32>
    %6 = tpu.matmul %3, %4, %cst {dimension_numbers = #tpu.dot_dimension_numbers<[2], [2], [1], [1], [0, 0, 0, 1, 1, 1], [0], [0]>} : vector<1x8x128xf32>, vector<1x8x128xf32>, vector<1x8x8xf32> -> vector<1x8x8xf32>
    %cst_9 = arith.constant 0.0883883461 : f32
    %7 = vector.broadcast %cst_9 : f32 to vector<1x8x8xf32>
    %8 = arith.mulf %6, %7 : vector<1x8x8xf32>
    %9 = arith.index_cast %arg0 : i32 to index
    %10 = memref.load %arg4[%9] : memref<2xi32, #tpu.memory_space<smem>>
    %11 = tpu.iota {dimensions = array<i32: 2>} : vector<1x8x8xi32>
    %c8_i32 = arith.constant 8 : i32
    %12 = arith.muli %arg3, %c8_i32 : i32
    %13 = vector.broadcast %12 : i32 to vector<1x8x8xi32>
    %14 = arith.addi %11, %13 : vector<1x8x8xi32>
    %15 = vector.broadcast %10 : i32 to vector<1x8x8xi32>
    %16 = arith.cmpi sge, %14, %15 : vector<1x8x8xi32>
    %cst_10 = arith.constant -1.000000e+06 : f32
    %17 = vector.broadcast %cst_10 : f32 to vector<1x8x8xf32>
    %18 = arith.select %16, %17, %8 : vector<1x8x8xi1>, vector<1x8x8xf32>
    %c0_11 = arith.constant 0 : index
    %c0_12 = arith.constant 0 : index
    %c0_13 = arith.constant 0 : index
    %19 = vector.load %arg9[%c0_11, %c0_12, %c0_13] : memref<1x8x1xf32, #tpu.memory_space<vmem>>, vector<1x8x1xf32>
    %cst_14 = arith.constant dense<0xFF800000> : vector<1x8xf32>
    %20 = vector.multi_reduction <maximumf>, %18, %cst_14 [2] : vector<1x8x8xf32> to vector<1x8xf32>
    %21 = vector.shape_cast %20 : vector<1x8xf32> to vector<1x8x1xf32>
    %22 = arith.maximumf %19, %21 : vector<1x8x1xf32>
    %23 = arith.subf %19, %22 : vector<1x8x1xf32>
    %24 = math.exp %23 : vector<1x8x1xf32>
    %25 = vector.broadcast %22 : vector<1x8x1xf32> to vector<1x8x8xf32>
    %26 = arith.subf %18, %25 : vector<1x8x8xf32>
    %27 = math.exp %26 : vector<1x8x8xf32>
    %c0_15 = arith.constant 0 : index
    %c0_16 = arith.constant 0 : index
    %c0_17 = arith.constant 0 : index
    %28 = vector.load %arg10[%c0_15, %c0_16, %c0_17] : memref<1x8x1xf32, #tpu.memory_space<vmem>>, vector<1x8x1xf32>
    %29 = arith.mulf %24, %28 : vector<1x8x1xf32>
    %cst_18 = arith.constant dense<0.000000e+00> : vector<1x8xf32>
    %30 = vector.multi_reduction <add>, %27, %cst_18 [2] : vector<1x8x8xf32> to vector<1x8xf32>
    %31 = vector.shape_cast %30 : vector<1x8xf32> to vector<1x8x1xf32>
    %32 = arith.addf %29, %31 : vector<1x8x1xf32>
    %c0_19 = arith.constant 0 : index
    %c0_20 = arith.constant 0 : index
    %c0_21 = arith.constant 0 : index
    %33 = vector.load %arg10[%c0_19, %c0_20, %c0_21] : memref<1x8x1xf32, #tpu.memory_space<vmem>>, vector<1x8x1xf32>
    tpu.vector_store %arg10[%c0_19, %c0_20, %c0_21], %32 {strides = array<i32>} : memref<1x8x1xf32, #tpu.memory_space<vmem>>, vector<1x8x1xf32>,
    %c0_22 = arith.constant 0 : index
    %c0_23 = arith.constant 0 : index
    %c0_24 = arith.constant 0 : index
    %34 = vector.load %arg11[%c0_22, %c0_23, %c0_24] : memref<1x8x128xf32, #tpu.memory_space<vmem>>, vector<1x8x128xf32>
    %35 = vector.broadcast %24 : vector<1x8x1xf32> to vector<1x8x128xf32>
    %36 = arith.mulf %35, %34 : vector<1x8x128xf32>
    %cst_25 = arith.constant dense<0.000000e+00> : vector<1x8x128xf32>
    %37 = tpu.matmul %27, %5, %cst_25 {dimension_numbers = #tpu.dot_dimension_numbers<[2], [1], [1], [2], [0, 0, 0, 1, 1, 2], [0], [0]>} : vector<1x8x8xf32>, vector<1x8x128xf32>, vector<1x8x128xf32> -> vector<1x8x128xf32>
    %38 = arith.addf %36, %37 : vector<1x8x128xf32>
    %c0_26 = arith.constant 0 : index
    %c0_27 = arith.constant 0 : index
    %c0_28 = arith.constant 0 : index
    %39 = vector.load %arg11[%c0_26, %c0_27, %c0_28] : memref<1x8x128xf32, #tpu.memory_space<vmem>>, vector<1x8x128xf32>
    tpu.vector_store %arg11[%c0_26, %c0_27, %c0_28], %38 {strides = array<i32>} : memref<1x8x128xf32, #tpu.memory_space<vmem>>, vector<1x8x128xf32>,
    %c0_29 = arith.constant 0 : index
    %c0_30 = arith.constant 0 : index
    %c0_31 = arith.constant 0 : index
    %40 = vector.load %arg9[%c0_29, %c0_30, %c0_31] : memref<1x8x1xf32, #tpu.memory_space<vmem>>, vector<1x8x1xf32>
    tpu.vector_store %arg9[%c0_29, %c0_30, %c0_31], %22 {strides = array<i32>} : memref<1x8x1xf32, #tpu.memory_space<vmem>>, vector<1x8x1xf32>,
    %c0_i32_32 = arith.constant 0 : i32
    %41 = arith.cmpi eq, %arg3, %c0_i32_32 : i32
    %42 = arith.extui %41 : i1 to i32
    %c0_i32_33 = arith.constant 0 : i32
    %43 = arith.cmpi ne, %42, %c0_i32_33 : i32
    scf.if %43 {
      %c0_34 = arith.constant 0 : index
      %c0_35 = arith.constant 0 : index
      %c0_36 = arith.constant 0 : index
      %44 = vector.load %arg11[%c0_34, %c0_35, %c0_36] : memref<1x8x128xf32, #tpu.memory_space<vmem>>, vector<1x8x128xf32>
      %c0_37 = arith.constant 0 : index
      %c0_38 = arith.constant 0 : index
      %c0_39 = arith.constant 0 : index
      %45 = vector.load %arg10[%c0_37, %c0_38, %c0_39] : memref<1x8x1xf32, #tpu.memory_space<vmem>>, vector<1x8x1xf32>
      %46 = vector.broadcast %45 : vector<1x8x1xf32> to vector<1x8x128xf32>
      %47 = arith.divf %44, %46 : vector<1x8x128xf32>
      %c0_40 = arith.constant 0 : index
      %c0_41 = arith.constant 0 : index
      %c0_42 = arith.constant 0 : index
      %48 = vector.load %arg8[%c0_40, %c0_41, %c0_42] : memref<1x8x128xf32, #tpu.memory_space<vmem>>, vector<1x8x128xf32>
      tpu.vector_store %arg8[%c0_40, %c0_41, %c0_42], %47 {strides = array<i32>} : memref<1x8x128xf32, #tpu.memory_space<vmem>>, vector<1x8x128xf32>,
    } else {
    }
    return
  }
  func.func @transform_0(%arg0: i32, %arg1: i32, %arg2: i32, %arg3: i32, %arg4: memref<2xi32, #tpu.memory_space<smem>>) -> (i32, i32, i32) {
    %c0_i32 = arith.constant 0 : i32
    return %arg0, %arg2, %arg1 : i32, i32, i32
  }
  func.func @transform_1(%arg0: i32, %arg1: i32, %arg2: i32, %arg3: i32, %arg4: memref<2xi32, #tpu.memory_space<smem>>) -> (i32, i32, i32) {
    %c0_i32 = arith.constant 0 : i32
    return %arg0, %arg3, %arg1 : i32, i32, i32
  }
  func.func @transform_2(%arg0: i32, %arg1: i32, %arg2: i32, %arg3: i32, %arg4: memref<2xi32, #tpu.memory_space<smem>>) -> (i32, i32, i32) {
    %c0_i32 = arith.constant 0 : i32
    return %arg0, %arg3, %arg1 : i32, i32, i32
  }
  func.func @transform_3(%arg0: i32, %arg1: i32, %arg2: i32, %arg3: i32, %arg4: memref<2xi32, #tpu.memory_space<smem>>) -> (i32, i32, i32) {
    %c0_i32 = arith.constant 0 : i32
    return %arg0, %arg2, %arg1 : i32, i32, i32
  }
}

module attributes {stable_mosaic.version = 11 : i64} {
  func.func @_ffn_addnorm_kernel(%arg0: i32, %arg1: i32, %arg2: memref<16x256xf32, #tpu.memory_space<vmem>>, %arg3: memref<256x512xf32, #tpu.memory_space<vmem>>, %arg4: memref<1x512xf32, #tpu.memory_space<vmem>>, %arg5: memref<512x256xf32, #tpu.memory_space<vmem>>, %arg6: memref<1x256xf32, #tpu.memory_space<vmem>>, %arg7: memref<1x256xf32, #tpu.memory_space<vmem>>, %arg8: memref<1x256xf32, #tpu.memory_space<vmem>>, %arg9: memref<16x256xf32, #tpu.memory_space<vmem>>, %arg10: memref<16x256xf32, #tpu.memory_space<vmem>>) attributes {dimension_semantics = [#tpu.dimension_semantics<parallel>, #tpu.dimension_semantics<arbitrary>], iteration_bounds = array<i64: 1, 1>, scalar_prefetch = 0 : i64, scratch_operands = 1 : i64, tpu.core_type = #tpu.core_type<tc>, window_params = [{transform_indices = @transform_0, window_bounds = array<i64: 16, 256>}, {transform_indices = @transform_1, window_bounds = array<i64: 256, 512>}, {transform_indices = @transform_2, window_bounds = array<i64: 1, 512>}, {transform_indices = @transform_3, window_bounds = array<i64: 512, 256>}, {pipeline_mode = #tpu.pipeline_mode<synchronous>, transform_indices = @transform_4, window_bounds = array<i64: 1, 256>}, {pipeline_mode = #tpu.pipeline_mode<synchronous>, transform_indices = @transform_5, window_bounds = array<i64: 1, 256>}, {pipeline_mode = #tpu.pipeline_mode<synchronous>, transform_indices = @transform_6, window_bounds = array<i64: 1, 256>}, {transform_indices = @transform_7, window_bounds = array<i64: 16, 256>}]} {
    %c0_i32 = arith.constant 0 : i32
    %0 = arith.cmpi eq, %arg1, %c0_i32 : i32
    %1 = arith.extui %0 : i1 to i32
    %c0_i32_0 = arith.constant 0 : i32
    %2 = arith.cmpi ne, %1, %c0_i32_0 : i32
    scf.if %2 {
      %cst_16 = arith.constant 0.000000e+00 : f32
      %19 = vector.broadcast %cst_16 : f32 to vector<16x256xf32>
      %c0_17 = arith.constant 0 : index
      %c0_18 = arith.constant 0 : index
      %20 = vector.load %arg10[%c0_17, %c0_18] : memref<16x256xf32, #tpu.memory_space<vmem>>, vector<16x256xf32>
      tpu.vector_store %arg10[%c0_17, %c0_18], %19 {strides = array<i32>} : memref<16x256xf32, #tpu.memory_space<vmem>>, vector<16x256xf32>,
    } else {
    }
    %c0 = arith.constant 0 : index
    %c0_1 = arith.constant 0 : index
    %3 = vector.load %arg2[%c0, %c0_1] : memref<16x256xf32, #tpu.memory_space<vmem>>, vector<16x256xf32>
    %c0_2 = arith.constant 0 : index
    %c0_3 = arith.constant 0 : index
    %4 = vector.load %arg3[%c0_2, %c0_3] : memref<256x512xf32, #tpu.memory_space<vmem>>, vector<256x512xf32>
    %cst = arith.constant dense<0.000000e+00> : vector<16x512xf32>
    %5 = tpu.matmul %3, %4, %cst {dimension_numbers = #tpu.dot_dimension_numbers<[1], [0], [0], [1], [0, 0, 1, 1], [], []>} : vector<16x256xf32>, vector<256x512xf32>, vector<16x512xf32> -> vector<16x512xf32>
    %c0_4 = arith.constant 0 : index
    %c0_5 = arith.constant 0 : index
    %6 = vector.load %arg4[%c0_4, %c0_5] : memref<1x512xf32, #tpu.memory_space<vmem>>, vector<1x512xf32>
    %7 = vector.broadcast %6 : vector<1x512xf32> to vector<16x512xf32>
    %8 = arith.addf %5, %7 : vector<16x512xf32>
    %cst_6 = arith.constant 0.000000e+00 : f32
    %9 = vector.broadcast %cst_6 : f32 to vector<16x512xf32>
    %10 = arith.maximumf %8, %9 : vector<16x512xf32>
    %c0_7 = arith.constant 0 : index
    %c0_8 = arith.constant 0 : index
    %11 = vector.load %arg10[%c0_7, %c0_8] : memref<16x256xf32, #tpu.memory_space<vmem>>, vector<16x256xf32>
    %c0_9 = arith.constant 0 : index
    %c0_10 = arith.constant 0 : index
    %12 = vector.load %arg5[%c0_9, %c0_10] : memref<512x256xf32, #tpu.memory_space<vmem>>, vector<512x256xf32>
    %cst_11 = arith.constant dense<0.000000e+00> : vector<16x256xf32>
    %13 = tpu.matmul %10, %12, %cst_11 {dimension_numbers = #tpu.dot_dimension_numbers<[1], [0], [0], [1], [0, 0, 1, 1], [], []>} : vector<16x512xf32>, vector<512x256xf32>, vector<16x256xf32> -> vector<16x256xf32>
    %14 = arith.addf %11, %13 : vector<16x256xf32>
    %c0_12 = arith.constant 0 : index
    %c0_13 = arith.constant 0 : index
    %15 = vector.load %arg10[%c0_12, %c0_13] : memref<16x256xf32, #tpu.memory_space<vmem>>, vector<16x256xf32>
    tpu.vector_store %arg10[%c0_12, %c0_13], %14 {strides = array<i32>} : memref<16x256xf32, #tpu.memory_space<vmem>>, vector<16x256xf32>,
    %c0_i32_14 = arith.constant 0 : i32
    %16 = arith.cmpi eq, %arg1, %c0_i32_14 : i32
    %17 = arith.extui %16 : i1 to i32
    %c0_i32_15 = arith.constant 0 : i32
    %18 = arith.cmpi ne, %17, %c0_i32_15 : i32
    scf.if %18 {
      %c0_16 = arith.constant 0 : index
      %c0_17 = arith.constant 0 : index
      %19 = vector.load %arg10[%c0_16, %c0_17] : memref<16x256xf32, #tpu.memory_space<vmem>>, vector<16x256xf32>
      %c0_18 = arith.constant 0 : index
      %c0_19 = arith.constant 0 : index
      %20 = vector.load %arg6[%c0_18, %c0_19] : memref<1x256xf32, #tpu.memory_space<vmem>>, vector<1x256xf32>
      %21 = vector.broadcast %20 : vector<1x256xf32> to vector<16x256xf32>
      %22 = arith.addf %19, %21 : vector<16x256xf32>
      %23 = arith.addf %22, %3 : vector<16x256xf32>
      %cst_20 = arith.constant dense<0.000000e+00> : vector<16xf32>
      %24 = vector.multi_reduction <add>, %23, %cst_20 [1] : vector<16x256xf32> to vector<16xf32>
      %25 = vector.shape_cast %24 : vector<16xf32> to vector<16x1xf32>
      %cst_21 = arith.constant 2.560000e+02 : f32
      %26 = vector.broadcast %cst_21 : f32 to vector<16x1xf32>
      %27 = arith.divf %25, %26 : vector<16x1xf32>
      %28 = vector.broadcast %27 : vector<16x1xf32> to vector<16x256xf32>
      %29 = arith.subf %23, %28 : vector<16x256xf32>
      %30 = arith.mulf %29, %29 : vector<16x256xf32>
      %cst_22 = arith.constant dense<0.000000e+00> : vector<16xf32>
      %31 = vector.multi_reduction <add>, %30, %cst_22 [1] : vector<16x256xf32> to vector<16xf32>
      %32 = vector.shape_cast %31 : vector<16xf32> to vector<16x1xf32>
      %cst_23 = arith.constant 2.560000e+02 : f32
      %33 = vector.broadcast %cst_23 : f32 to vector<16x1xf32>
      %34 = arith.divf %32, %33 : vector<16x1xf32>
      %cst_24 = arith.constant 9.99999974E-6 : f32
      %35 = vector.broadcast %cst_24 : f32 to vector<16x1xf32>
      %36 = arith.addf %34, %35 : vector<16x1xf32>
      %37 = math.rsqrt %36 : vector<16x1xf32>
      %38 = vector.broadcast %37 : vector<16x1xf32> to vector<16x256xf32>
      %39 = arith.mulf %29, %38 : vector<16x256xf32>
      %c0_25 = arith.constant 0 : index
      %c0_26 = arith.constant 0 : index
      %40 = vector.load %arg7[%c0_25, %c0_26] : memref<1x256xf32, #tpu.memory_space<vmem>>, vector<1x256xf32>
      %41 = vector.broadcast %40 : vector<1x256xf32> to vector<16x256xf32>
      %42 = arith.mulf %39, %41 : vector<16x256xf32>
      %c0_27 = arith.constant 0 : index
      %c0_28 = arith.constant 0 : index
      %43 = vector.load %arg8[%c0_27, %c0_28] : memref<1x256xf32, #tpu.memory_space<vmem>>, vector<1x256xf32>
      %44 = vector.broadcast %43 : vector<1x256xf32> to vector<16x256xf32>
      %45 = arith.addf %42, %44 : vector<16x256xf32>
      %c0_29 = arith.constant 0 : index
      %c0_30 = arith.constant 0 : index
      %46 = vector.load %arg9[%c0_29, %c0_30] : memref<16x256xf32, #tpu.memory_space<vmem>>, vector<16x256xf32>
      tpu.vector_store %arg9[%c0_29, %c0_30], %45 {strides = array<i32>} : memref<16x256xf32, #tpu.memory_space<vmem>>, vector<16x256xf32>,
    } else {
    }
    return
  }
  func.func @transform_0(%arg0: i32, %arg1: i32) -> (i32, i32) {
    %c0_i32 = arith.constant 0 : i32
    %c0_i32_0 = arith.constant 0 : i32
    return %arg0, %c0_i32 : i32, i32
  }
  func.func @transform_1(%arg0: i32, %arg1: i32) -> (i32, i32) {
    %c0_i32 = arith.constant 0 : i32
    %c0_i32_0 = arith.constant 0 : i32
    return %c0_i32, %arg1 : i32, i32
  }
  func.func @transform_2(%arg0: i32, %arg1: i32) -> (i32, i32) {
    %c0_i32 = arith.constant 0 : i32
    %c0_i32_0 = arith.constant 0 : i32
    return %c0_i32, %arg1 : i32, i32
  }
  func.func @transform_3(%arg0: i32, %arg1: i32) -> (i32, i32) {
    %c0_i32 = arith.constant 0 : i32
    %c0_i32_0 = arith.constant 0 : i32
    return %arg1, %c0_i32 : i32, i32
  }
  func.func @transform_4(%arg0: i32, %arg1: i32) -> (i32, i32) {
    %c0_i32 = arith.constant 0 : i32
    %c0_i32_0 = arith.constant 0 : i32
    %c0_i32_1 = arith.constant 0 : i32
    return %c0_i32, %c0_i32_0 : i32, i32
  }
  func.func @transform_5(%arg0: i32, %arg1: i32) -> (i32, i32) {
    %c0_i32 = arith.constant 0 : i32
    %c0_i32_0 = arith.constant 0 : i32
    %c0_i32_1 = arith.constant 0 : i32
    return %c0_i32, %c0_i32_0 : i32, i32
  }
  func.func @transform_6(%arg0: i32, %arg1: i32) -> (i32, i32) {
    %c0_i32 = arith.constant 0 : i32
    %c0_i32_0 = arith.constant 0 : i32
    %c0_i32_1 = arith.constant 0 : i32
    return %c0_i32, %c0_i32_0 : i32, i32
  }
  func.func @transform_7(%arg0: i32, %arg1: i32) -> (i32, i32) {
    %c0_i32 = arith.constant 0 : i32
    %c0_i32_0 = arith.constant 0 : i32
    return %arg0, %c0_i32 : i32, i32
  }
}

</mosaic_0001>

<bundles_post_ra>
// kernel: decoder_block.10
= control target key start
LH: loop header
LB: loop body
LE: loop exit
PB: predicated region body
PF: predicated region fallthrough
CT: control target
= control target key end

     0   :  { %10 = vsyncpa [#allocation4], 0  ;;  %s730_s0 = inlined_call_operand.hbm [shape: f32[16,256], index: 0, kind: input, shape index: {}]   ;;  %s731_s1 = inlined_call_operand.hbm [shape: f32[256,256], index: 1, kind: input, shape index: {}]   ;;  %s732_s2 = inlined_call_operand.hbm [shape: f32[16,256], index: 2, kind: input, shape index: {}]   ;;  %s733_s3 = inlined_call_operand.hbm [shape: f32[1,256], index: 3, kind: input, shape index: {}]   ;;  %s734_s4 = inlined_call_operand.hbm [shape: f32[1,256], index: 4, kind: input, shape index: {}]   ;;  %s735_s5 = inlined_call_operand.hbm [shape: f32[16,256], index: 5, kind: output, shape index: {}]  }
   0x1   :  { %11 = vsyncpa [#allocation7], 0 }
   0x2   :  { %12 = vsyncpa [#allocation10], 0 }
   0x3   :  { %13 = vsyncpa [#allocation5], 0  ;;  %s601_s18 = smov [#allocation6]   ;;  %s602_s20 = smov [#allocation9]  }
   0x4   :  { %s31_s19 = sshll.u32 %s601_s18, 4  ;;  %s56_s21 = sshll.u32 %s602_s20, 4  ;;  %s32_s19 = int_to_ptr.vmem [resolvable:$true] %s31_s19  ;;  %s57_s21 = int_to_ptr.vmem [resolvable:$true] %s56_s21 }
   0x5   :  { %s461_s24 = scalar_lea.hbm %s731_s1, 8192 }
   0x6   :  { %p462_p0 = scmp.ne.s32.totalorder %s731_s1, %s461_s24  ;;  %p465_p1 = scmp.lt.u32.totalorder %s461_s24, %s731_s1 }
   0x8   :  { %p467_p2 = pnand %p465_p1, %p462_p0 }
   0xa   :  { %470 = shalt.err (!%p467_p2)
}
   0xb   :  { %s471_s29 = scalar_lea.vmem %s32_s19, 8192  ;;  %p476_p4 = scmp.lt.s32.totalorder %s32_s19, %s32_s19 }
   0xc   :  { %p472_p3 = scmp.ne.s32.totalorder %s32_s19, %s471_s29  ;;  %p477_p5 = scmp.lt.s32.totalorder %s471_s29, %s471_s29 }
   0xe   :  { %p478_p6 = por %p477_p5, %p476_p4 }
  0x10   :  { %p479_p7 = pnand %p478_p6, %p472_p3 }
  0x12   :  { %482 = shalt.err (!%p479_p7)
}
  0x13   :  { %s603_s30 = smov 256   ;;  %s604_s6 = smov 16  }
  0x14   :  { %37 = dma.hbm_to_vmem [thread:$0]  %s731_s1, 8192, %s32_s19, [#allocation7], %s603_s30, %s603_s30, %s604_s6  }
  0x15   :  { %s483_s11 = scalar_lea.hbm %s733_s3, 32 }
  0x16   :  { %p484_p8 = scmp.ne.s32.totalorder %s733_s3, %s483_s11  ;;  %p487_p9 = scmp.lt.u32.totalorder %s483_s11, %s733_s3 }
  0x18   :  { %p489_p10 = pnand %p487_p9, %p484_p8 }
  0x1a   :  { %492 = shalt.err (!%p489_p10)
}
  0x1b   :  { %s493_s16 = scalar_lea.vmem %s57_s21, 32  ;;  %p498_p12 = scmp.lt.s32.totalorder %s57_s21, %s57_s21 }
  0x1c   :  { %p494_p11 = scmp.ne.s32.totalorder %s57_s21, %s493_s16  ;;  %p499_p13 = scmp.lt.s32.totalorder %s493_s16, %s493_s16 }
  0x1e   :  { %p500_p0 = por %p499_p13, %p498_p12 }
  0x20   :  { %p501_p1 = pnand %p500_p0, %p494_p11 }
  0x22   :  { %504 = shalt.err (!%p501_p1)
}
  0x23   :  { %59 = dma.hbm_to_vmem [thread:$0]  %s733_s3, 32, %s57_s21, [#allocation10]  }
  0x24   :  { %s605_s18 = smov [#allocation3]   ;;  %s606_s20 = smov [#allocation8]  }
  0x25   :  { %s19_s19 = sshll.u32 %s605_s18, 4  ;;  %s43_s22 = sshll.u32 %s606_s20, 4  ;;  %s20_s19 = int_to_ptr.vmem [resolvable:$true] %s19_s19  ;;  %s666_s22 = int_to_ptr.vmem [resolvable:$true] %s43_s22 }
  0x26   :  { %s505_s25 = scalar_lea.hbm %s730_s0, 512 }
  0x27   :  { %p506_p2 = scmp.ne.s32.totalorder %s730_s0, %s505_s25  ;;  %p509_p3 = scmp.lt.u32.totalorder %s505_s25, %s730_s0 }
  0x29   :  { %p511_p4 = pnand %p509_p3, %p506_p2 }
  0x2b   :  { %514 = shalt.err (!%p511_p4)
}
  0x2c   :  { %s515_s3 = scalar_lea.vmem %s20_s19, 512  ;;  %p520_p6 = scmp.lt.s32.totalorder %s20_s19, %s20_s19 }
  0x2d   :  { %p516_p5 = scmp.ne.s32.totalorder %s20_s19, %s515_s3  ;;  %p521_p7 = scmp.lt.s32.totalorder %s515_s3, %s515_s3 }
  0x2f   :  { %p522_p8 = por %p521_p7, %p520_p6 }
  0x31   :  { %p523_p9 = pnand %p522_p8, %p516_p5 }
  0x33   :  { %526 = shalt.err (!%p523_p9)
}
  0x34   :  { %25 = dma.hbm_to_vmem [thread:$0]  %s730_s0, 512, %s20_s19, [#allocation4], %s603_s30, %s603_s30, %s604_s6  }
  0x35   :  { %s527_s10 = scalar_lea.hbm %s732_s2, 512 }
  0x36   :  { %p528_p10 = scmp.ne.s32.totalorder %s732_s2, %s527_s10  ;;  %p531_p11 = scmp.lt.u32.totalorder %s527_s10, %s732_s2 }
  0x38   :  { %p533_p12 = pnand %p531_p11, %p528_p10 }
  0x3a   :  { %536 = shalt.err (!%p533_p12)
}
  0x3b   :  { %s537_s15 = scalar_lea.vmem %s666_s22, 512  ;;  %p542_p0 = scmp.lt.s32.totalorder %s666_s22, %s666_s22 }
  0x3c   :  { %p538_p13 = scmp.ne.s32.totalorder %s666_s22, %s537_s15  ;;  %p543_p1 = scmp.lt.s32.totalorder %s537_s15, %s537_s15 }
  0x3e   :  { %p544_p2 = por %p543_p1, %p542_p0 }
  0x40   :  { %p545_p3 = pnand %p544_p2, %p538_p13 }
  0x42   :  { %548 = shalt.err (!%p545_p3)
}
  0x43   :  { %49 = dma.hbm_to_vmem [thread:$0]  %s732_s2, 512, %s666_s22, [#allocation7], %s603_s30, %s603_s30, %s604_s6  }
  0x44   :  { %s607_s1 = smov [#allocation11]   ;;  %s549_s20 = scalar_lea.hbm %s734_s4, 32 }
  0x45   :  { %s66_s17 = sshll.u32 %s607_s1, 4  ;;  %p550_p4 = scmp.ne.s32.totalorder %s734_s4, %s549_s20  ;;  %s67_s17 = int_to_ptr.vmem [resolvable:$true] %s66_s17 }
  0x46   :  { %p553_p5 = scmp.lt.u32.totalorder %s549_s20, %s734_s4 }
  0x48   :  { %p555_p6 = pnand %p553_p5, %p550_p4 }
  0x4a   :  { %558 = shalt.err (!%p555_p6)
}
  0x4b   :  { %s559_s27 = scalar_lea.vmem %s67_s17, 32  ;;  %p564_p8 = scmp.lt.s32.totalorder %s67_s17, %s67_s17 }
  0x4c   :  { %p560_p7 = scmp.ne.s32.totalorder %s67_s17, %s559_s27  ;;  %p565_p9 = scmp.lt.s32.totalorder %s559_s27, %s559_s27 }
  0x4e   :  { %p566_p10 = por %p565_p9, %p564_p8 }
  0x50   :  { %p567_p11 = pnand %p566_p10, %p560_p7 }
  0x52   :  { %570 = shalt.err (!%p567_p11)
}
  0x53   :  { %69 = dma.hbm_to_vmem [thread:$0]  %s734_s4, 32, %s67_s17, [#allocation10]  }
  0x54   :  { %593 = dma.done.wait [#allocation4], 512  }
  0x55   :  { %594 = vsyncadd [#allocation4], 4294966784 }
  0x56   :  { %595 = dma.done.wait [#allocation7], 8704  }
  0x57   :  { %596 = vsyncadd [#allocation7], 4294958592 }
  0x58   :  { %597 = dma.done.wait [#allocation10], 64  }
  0x59   :  { %598 = vsyncadd [#allocation10], 4294967232  ;;  %v102_v0 = vld [vmem:[#allocation6 + $0x8] sm:$0xff]  ;;  %v104_v1 = vld [vmem:[#allocation6 + $0x18] sm:$0xff]  ;;  %s608_s4 = smov [#allocation12]  }
  0x5a   :  { %v101_v2 = vld [vmem:[#allocation6] sm:$0xff]  ;;  %v353_v3 = vpack.c.bf16 %v104_v1, %v102_v0  ;;  %v103_v4 = vld [vmem:[#allocation6 + $0x10] sm:$0xff]  ;;  %v106_v5 = vld [vmem:[#allocation6 + $0x28] sm:$0xff]  ;;  %s339_s28 = sshll.u32 %s608_s4, 4  ;;  %s340_s28 = int_to_ptr.vmem [resolvable:$true] %s339_s28 }
  0x5b   :  { %v108_v6 = vld [vmem:[#allocation6 + $0x38] sm:$0xff]  ;;  %v355_v7 = vpack.c.bf16 %v103_v4, %v101_v2  ;;  %v105_v9 = vld [vmem:[#allocation6 + $0x20] sm:$0xff]  ;;  %v107_v10 = vld [vmem:[#allocation6 + $0x30] sm:$0xff]  ;;  %s571_s29 = scalar_lea.vmem %s340_s28, 512  ;;  %p576_p13 = scmp.lt.s32.totalorder %s340_s28, %s340_s28 }
  0x5c   :  { %v357_v8 = vpack.c.bf16 %v108_v6, %v106_v5  ;;  %v110_v11 = vld [vmem:[#allocation6 + $0x48] sm:$0xff]  ;;  %354 = vmatprep.subr.bf16.mxu0 %v353_v3  ;;  %417 = vmatprep.subr.bf16.mxu1 %v353_v3  ;;  %v112_v12 = vld [vmem:[#allocation6 + $0x58] sm:$0xff]  ;;  %v359_v13 = vpack.c.bf16 %v107_v10, %v105_v9  ;;  %v109_v15 = vld [vmem:[#allocation6 + $0x40] sm:$0xff]  ;;  %p572_p12 = scmp.ne.s32.totalorder %s340_s28, %s571_s29  ;;  %p577_p0 = scmp.lt.s32.totalorder %s571_s29, %s571_s29 }
  0x5d   :  { %356 = vmatpush1.bf16.msra.mxu0 %v355_v7  ;;  %433 = vmatpush1.bf16.msra.mxu1 %v355_v7  ;;  %v361_v14 = vpack.c.bf16 %v112_v12, %v110_v11  ;;  %v111_v16 = vld [vmem:[#allocation6 + $0x50] sm:$0xff]  ;;  %v114_v17 = vld [vmem:[#allocation6 + $0x68] sm:$0xff]  ;;  %v116_v18 = vld [vmem:[#allocation6 + $0x78] sm:$0xff] }
  0x5e   :  { %358 = vmatprep.subr.bf16.mxu0 %v357_v8  ;;  %418 = vmatprep.subr.bf16.mxu1 %v357_v8  ;;  %v363_v19 = vpack.c.bf16 %v111_v16, %v109_v15  ;;  %v365_v20 = vpack.c.bf16 %v116_v18, %v114_v17  ;;  %v113_v21 = vld [vmem:[#allocation6 + $0x60] sm:$0xff]  ;;  %v115_v22 = vld [vmem:[#allocation6 + $0x70] sm:$0xff]  ;;  %v118_v23 = vld [vmem:[#allocation6 + $0x88] sm:$0xff]  ;;  %p578_p1 = por %p577_p0, %p576_p13 }
  0x5f   :  { %v120_v24 = vld [vmem:[#allocation6 + $0x98] sm:$0xff]  ;;  %v367_v25 = vpack.c.bf16 %v115_v22, %v113_v21  ;;  %v117_v27 = vld [vmem:[#allocation6 + $0x80] sm:$0xff]  ;;  %v119_v28 = vld [vmem:[#allocation6 + $0x90] sm:$0xff] }
  0x60   :  { %v369_v26 = vpack.c.bf16 %v120_v24, %v118_v23  ;;  %v122_v29 = vld [vmem:[#allocation6 + $0xa8] sm:$0xff]  ;;  %v124_v30 = vld [vmem:[#allocation6 + $0xb8] sm:$0xff]  ;;  %v371_v31 = vpack.c.bf16 %v119_v28, %v117_v27  ;;  %v121_v33 = vld [vmem:[#allocation6 + $0xa0] sm:$0xff]  ;;  %p579_p2 = pnand %p578_p1, %p572_p12 }
  0x61   :  { %360 = vmatpush1.bf16.msra.mxu0 %v359_v13  ;;  %434 = vmatpush1.bf16.msra.mxu1 %v359_v13  ;;  %v373_v32 = vpack.c.bf16 %v124_v30, %v122_v29  ;;  %v123_v34 = vld [vmem:[#allocation6 + $0xb0] sm:$0xff]  ;;  %v126_v35 = vld [vmem:[#allocation6 + $0xc8] sm:$0xff]  ;;  %v128_v36 = vld [vmem:[#allocation6 + $0xd8] sm:$0xff] }
  0x62   :  { %362 = vmatprep.subr.bf16.mxu0 %v361_v14  ;;  %419 = vmatprep.subr.bf16.mxu1 %v361_v14  ;;  %v375_v37 = vpack.c.bf16 %v123_v34, %v121_v33  ;;  %v377_v38 = vpack.c.bf16 %v128_v36, %v126_v35  ;;  %v125_v39 = vld [vmem:[#allocation6 + $0xc0] sm:$0xff]  ;;  %v127_v40 = vld [vmem:[#allocation6 + $0xd0] sm:$0xff]  ;;  %v98_v41 = vld [vmem:[#allocation3 + $0x8] sm:$0xff] }
  0x63   :  { %v130_v42 = vld [vmem:[#allocation6 + $0xe8] sm:$0xff]  ;;  %v132_v43 = vld [vmem:[#allocation6 + $0xf8] sm:$0xff]  ;;  %229 = vmatprep.mubr.f32.mxu0 %v98_v41  ;;  %v379_v45 = vpack.c.bf16 %v127_v40, %v125_v39  ;;  %v129_v47 = vld [vmem:[#allocation6 + $0xe0] sm:$0xff] }
  0x64   :  { %v100_v44 = vld [vmem:[#allocation3 + $0x18] sm:$0xff]  ;;  %v381_v46 = vpack.c.bf16 %v132_v43, %v130_v42  ;;  %v131_v48 = vld [vmem:[#allocation6 + $0xf0] sm:$0xff]  ;;  %v134_v49 = vld [vmem:[#allocation6 + $0x108] sm:$0xff] }
  0x65   :  { %364 = vmatpush1.bf16.msra.mxu0 %v363_v19  ;;  %435 = vmatpush1.bf16.msra.mxu1 %v363_v19  ;;  %v136_v50 = vld [vmem:[#allocation6 + $0x118] sm:$0xff]  ;;  %v383_v51 = vpack.c.bf16 %v131_v48, %v129_v47  ;;  %v133_v53 = vld [vmem:[#allocation6 + $0x100] sm:$0xff]  ;;  %v135_v54 = vld [vmem:[#allocation6 + $0x110] sm:$0xff] }
  0x66   :  { %366 = vmatprep.subr.bf16.mxu0 %v365_v20  ;;  %420 = vmatprep.subr.bf16.mxu1 %v365_v20  ;;  %v385_v52 = vpack.c.bf16 %v136_v50, %v134_v49  ;;  %v138_v55 = vld [vmem:[#allocation6 + $0x128] sm:$0xff]  ;;  %v140_v56 = vld [vmem:[#allocation6 + $0x138] sm:$0xff]  ;;  %v387_v57 = vpack.c.bf16 %v135_v54, %v133_v53  ;;  %v137_v59 = vld [vmem:[#allocation6 + $0x120] sm:$0xff] }
  0x67   :  { %235 = vmatprep.mubr.f32.mxu1 %v100_v44  ;;  %v389_v58 = vpack.c.bf16 %v140_v56, %v138_v55  ;;  %v139_v60 = vld [vmem:[#allocation6 + $0x130] sm:$0xff]  ;;  %v142_v61 = vld [vmem:[#allocation6 + $0x148] sm:$0xff]  ;;  %v144_v62 = vld [vmem:[#allocation6 + $0x158] sm:$0xff] }
  0x68   :  { %v391_v63 = vpack.c.bf16 %v139_v60, %v137_v59  ;;  %v393_v0 = vpack.c.bf16 %v144_v62, %v142_v61  ;;  %v141_v1 = vld [vmem:[#allocation6 + $0x140] sm:$0xff]  ;;  %v143_v2 = vld [vmem:[#allocation6 + $0x150] sm:$0xff]  ;;  %v146_v3 = vld [vmem:[#allocation6 + $0x168] sm:$0xff] }
  0x69   :  { %368 = vmatpush1.bf16.msra.mxu0 %v367_v25  ;;  %436 = vmatpush1.bf16.msra.mxu1 %v367_v25  ;;  %v148_v4 = vld [vmem:[#allocation6 + $0x178] sm:$0xff]  ;;  %v395_v5 = vpack.c.bf16 %v143_v2, %v141_v1  ;;  %v145_v7 = vld [vmem:[#allocation6 + $0x160] sm:$0xff]  ;;  %v147_v8 = vld [vmem:[#allocation6 + $0x170] sm:$0xff]  ;;  %v300_v2 = vlaneseq }
  0x6a   :  { %370 = vmatprep.subr.bf16.mxu0 %v369_v26  ;;  %421 = vmatprep.subr.bf16.mxu1 %v369_v26  ;;  %v397_v6 = vpack.c.bf16 %v148_v4, %v146_v3  ;;  %v150_v9 = vld [vmem:[#allocation6 + $0x188] sm:$0xff]  ;;  %v152_v10 = vld [vmem:[#allocation6 + $0x198] sm:$0xff]  ;;  %v399_v11 = vpack.c.bf16 %v147_v8, %v145_v7  ;;  %v149_v13 = vld [vmem:[#allocation6 + $0x180] sm:$0xff] }
  0x6b   :  { %v401_v12 = vpack.c.bf16 %v152_v10, %v150_v9  ;;  %v151_v14 = vld [vmem:[#allocation6 + $0x190] sm:$0xff]  ;;  %v154_v15 = vld [vmem:[#allocation6 + $0x1a8] sm:$0xff]  ;;  %v156_v16 = vld [vmem:[#allocation6 + $0x1b8] sm:$0xff] }
  0x6c   :  { %v403_v17 = vpack.c.bf16 %v151_v14, %v149_v13  ;;  %v405_v18 = vpack.c.bf16 %v156_v16, %v154_v15  ;;  %v153_v19 = vld [vmem:[#allocation6 + $0x1a0] sm:$0xff]  ;;  %v155_v20 = vld [vmem:[#allocation6 + $0x1b0] sm:$0xff]  ;;  %v158_v21 = vld [vmem:[#allocation6 + $0x1c8] sm:$0xff] }
  0x6d   :  { %372 = vmatpush1.bf16.msra.mxu0 %v371_v31  ;;  %437 = vmatpush1.bf16.msra.mxu1 %v371_v31  ;;  %v160_v22 = vld [vmem:[#allocation6 + $0x1d8] sm:$0xff]  ;;  %v407_v23 = vpack.c.bf16 %v155_v20, %v153_v19  ;;  %v157_v25 = vld [vmem:[#allocation6 + $0x1c0] sm:$0xff]  ;;  %v159_v26 = vld [vmem:[#allocation6 + $0x1d0] sm:$0xff] }
  0x6e   :  { %374 = vmatprep.subr.bf16.mxu0 %v373_v32  ;;  %422 = vmatprep.subr.bf16.mxu1 %v373_v32  ;;  %v409_v24 = vpack.c.bf16 %v160_v22, %v158_v21  ;;  %v162_v27 = vld [vmem:[#allocation6 + $0x1e8] sm:$0xff]  ;;  %v164_v28 = vld [vmem:[#allocation6 + $0x1f8] sm:$0xff]  ;;  %v411_v29 = vpack.c.bf16 %v159_v26, %v157_v25  ;;  %v161_v31 = vld [vmem:[#allocation6 + $0x1e0] sm:$0xff] }
  0x6f   :  { %v413_v30 = vpack.c.bf16 %v164_v28, %v162_v27  ;;  %v163_v32 = vld [vmem:[#allocation6 + $0x1f0] sm:$0xff]  ;;  %v97_v34 = vld [vmem:[#allocation3] sm:$0xff]  ;;  %v260_v39 = vld [vmem:[#allocation8 + $0x18] sm:$0xff] }
  0x70   :  { %v415_v33 = vpack.c.bf16 %v163_v32, %v161_v31  ;;  %v99_v35 = vld [vmem:[#allocation3 + $0x10] sm:$0xff]  ;;  %v257_v36 = vld [vmem:[#allocation8] sm:$0xff] }
  0x71   :  { %376 = vmatpush1.bf16.msra.mxu0 %v375_v37  ;;  %438 = vmatpush1.bf16.msra.mxu1 %v375_v37  ;;  %v258_v37 = vld [vmem:[#allocation8 + $0x8] sm:$0xff]  ;;  %v298_v10 = vld [vmem:[#allocation9] sm:$0x3] }
  0x72   :  { %378 = vmatprep.subr.bf16.mxu0 %v377_v38  ;;  %423 = vmatprep.subr.bf16.mxu1 %v377_v38  ;;  %v259_v38 = vld [vmem:[#allocation8 + $0x10] sm:$0xff] }
  0x75   :  { %380 = vmatpush1.bf16.msra.mxu0 %v379_v45  ;;  %439 = vmatpush1.bf16.msra.mxu1 %v379_v45 }
  0x76   :  { %382 = vmatprep.subr.bf16.mxu0 %v381_v46  ;;  %424 = vmatprep.subr.bf16.mxu1 %v381_v46 }
  0x79   :  { %384 = vmatpush1.bf16.msra.mxu0 %v383_v51  ;;  %440 = vmatpush1.bf16.msra.mxu1 %v383_v51 }
  0x7a   :  { %386 = vmatprep.subr.bf16.mxu0 %v385_v52  ;;  %425 = vmatprep.subr.bf16.mxu1 %v385_v52 }
  0x7d   :  { %388 = vmatpush1.bf16.msra.mxu0 %v387_v57  ;;  %441 = vmatpush1.bf16.msra.mxu1 %v387_v57 }
  0x7e   :  { %390 = vmatprep.subr.bf16.mxu0 %v389_v58  ;;  %426 = vmatprep.subr.bf16.mxu1 %v389_v58 }
  0x81   :  { %392 = vmatpush1.bf16.msra.mxu0 %v391_v63  ;;  %442 = vmatpush1.bf16.msra.mxu1 %v391_v63 }
  0x82   :  { %394 = vmatprep.subr.bf16.mxu0 %v393_v0  ;;  %427 = vmatprep.subr.bf16.mxu1 %v393_v0 }
  0x85   :  { %396 = vmatpush1.bf16.msra.mxu0 %v395_v5  ;;  %443 = vmatpush1.bf16.msra.mxu1 %v395_v5 }
  0x86   :  { %398 = vmatprep.subr.bf16.mxu0 %v397_v6  ;;  %428 = vmatprep.subr.bf16.mxu1 %v397_v6  ;;  %v301_v6 = vshrl.u32 %v300_v2, 7 }
  0x88   :  { %v302_v8 = vsub.s32 0, %v301_v6  ;;  %v306_v9 = vsub.s32 1, %v301_v6 }
  0x89   :  { %400 = vmatpush1.bf16.msra.mxu0 %v399_v11  ;;  %444 = vmatpush1.bf16.msra.mxu1 %v399_v11  ;;  %v314_v11 = vld [vmem:[#allocation11] sm:$0x3] }
  0x8a   :  { %402 = vmatprep.subr.bf16.mxu0 %v401_v12  ;;  %429 = vmatprep.subr.bf16.mxu1 %v401_v12  ;;  %v303_v12 = vrot.slane %v298_v10, %v302_v8  ;;  %v307_v13 = vrot.slane %v298_v10, %v306_v9 }
  0x8d   :  { %404 = vmatpush1.bf16.msra.mxu0 %v403_v17  ;;  %445 = vmatpush1.bf16.msra.mxu1 %v403_v17  ;;  %v319_v17 = vrot.slane %v314_v11, %v302_v8 }
  0x8e   :  { %406 = vmatprep.subr.bf16.mxu0 %v405_v18  ;;  %430 = vmatprep.subr.bf16.mxu1 %v405_v18  ;;  %v323_v18 = vrot.slane %v314_v11, %v306_v9 }
  0x91   :  { %408 = vmatpush1.bf16.msra.mxu0 %v407_v23  ;;  %446 = vmatpush1.bf16.msra.mxu1 %v407_v23 }
  0x92   :  { %410 = vmatprep.subr.bf16.mxu0 %v409_v24  ;;  %431 = vmatprep.subr.bf16.mxu1 %v409_v24 }
  0x95   :  { %412 = vmatpush1.bf16.msra.mxu0 %v411_v29  ;;  %447 = vmatpush1.bf16.msra.mxu1 %v411_v29 }
  0x96   :  { %414 = vmatprep.subr.bf16.mxu0 %v413_v30  ;;  %432 = vmatprep.subr.bf16.mxu1 %v413_v30 }
  0x99   :  { %416 = vmatpush1.bf16.msra.mxu0 %v415_v33  ;;  %448 = vmatpush1.bf16.msra.mxu1 %v415_v33 }
  0x9c   :  { %230 = vmatmul.mubr.f32.vlgmr.msra.gmra.mrb[0].mxu0 %v97_v34  ;;  %236 = vmatmul.mubr.f32.vlgmr.msra.gmra.mrb[0].mxu1 %v99_v35 }
 0x16f   :  { %v231_v40 = vpop.f32.mrb[0].mxu0  ;;  %v237_v41 = vpop.f32.mrb[0].mxu1 }
 0x170   :  { %v261_v42 = vadd.f32 %v257_v36, %v231_v40  ;;  %v233_v43 = vpop.f32.mrb[1].mxu0  ;;  %v239_v44 = vpop.f32.mrb[1].mxu1  ;;  %v263_v46 = vadd.f32 %v259_v38, %v237_v41 }
 0x171   :  { %v262_v45 = vadd.f32 %v258_v37, %v233_v43  ;;  %v264_v47 = vadd.f32 %v260_v39, %v239_v44 }
 0x173   :  { %v265_v48 = vadd.f32 %v262_v45, %v261_v42  ;;  %v268_v49 = vadd.f32 %v264_v47, %v263_v46 }
 0x175   :  { %266 = vadd.xlane.f32.xlu0 %v265_v48 }
 0x179   :  { %269 = vadd.xlane.f32.xlu0 %v268_v49 }
 0x202   :  { %v267_v50 = vpop.xlane.xlu0 %266 }
 0x203   :  { %v272_v51 = vmul.f32 0.00390625, %v267_v50 }
 0x205   :  { %v274_v52 = vsub.f32 %v261_v42, %v272_v51  ;;  %v275_v53 = vsub.f32 %v262_v45, %v272_v51 }
 0x206   :  { %v270_v54 = vpop.xlane.xlu0 %269 }
 0x207   :  { %v273_v55 = vmul.f32 0.00390625, %v270_v54  ;;  %v278_v56 = vmul.f32 %v274_v52, %v274_v52  ;;  %v279_v57 = vmul.f32 %v275_v53, %v275_v53 }
 0x209   :  { %v276_v58 = vsub.f32 %v263_v46, %v273_v55  ;;  %v277_v59 = vsub.f32 %v264_v47, %v273_v55  ;;  %v282_v60 = vadd.f32 %v279_v57, %v278_v56 }
 0x20b   :  { %283 = vadd.xlane.f32.xlu1 %v282_v60  ;;  %v280_v61 = vmul.f32 %v276_v58, %v276_v58  ;;  %v281_v62 = vmul.f32 %v277_v59, %v277_v59 }
 0x20d   :  { %v285_v63 = vadd.f32 %v281_v62, %v280_v61 }
 0x20f   :  { %286 = vadd.xlane.f32.xlu1 %v285_v63 }
 0x298   :  { %v284_v0 = vpop.xlane.xlu1 %283 }
 0x299   :  { %v288_v1 = vmul.f32 0.00390625, %v284_v0 }
 0x29b   :  { %v290_v3 = vadd.f32 1e-05, %v288_v1 }
 0x29c   :  { %v287_v4 = vpop.xlane.xlu1 %286 }
 0x29d   :  { %457 = vrsqrt.f32 %v290_v3  ;;  %v289_v5 = vmul.f32 0.00390625, %v287_v4 }
 0x29f   :  { %v291_v7 = vadd.f32 1e-05, %v289_v5 }
 0x2a1   :  { %459 = vrsqrt.f32 %v291_v7 }
 0x2a7   :  { %v458_v14 = vpop.eup %457 }
 0x2a8   :  { %v294_v15 = vmul.f32 %v458_v14, %v274_v52  ;;  %v295_v16 = vmul.f32 %v458_v14, %v275_v53 }
 0x2aa   :  { %v310_v19 = vmul.f32 %v303_v12, %v294_v15  ;;  %v311_v20 = vmul.f32 %v307_v13, %v295_v16 }
 0x2ab   :  { %v460_v21 = vpop.eup %459 }
 0x2ac   :  { %v296_v22 = vmul.f32 %v460_v21, %v276_v58  ;;  %v297_v23 = vmul.f32 %v460_v21, %v277_v59  ;;  %v326_v24 = vadd.f32 %v319_v17, %v310_v19  ;;  %v327_v25 = vadd.f32 %v323_v18, %v311_v20 }
 0x2ae   :  { %v312_v26 = vmul.f32 %v303_v12, %v296_v22  ;;  %v313_v27 = vmul.f32 %v307_v13, %v297_v23  ;;  %330 = vst [vmem:[#allocation12] sm:$0xff] %v326_v24  ;;  %331 = vst [vmem:[#allocation12 + $0x8] sm:$0xff] %v327_v25 }
 0x2b0   :  { %v328_v28 = vadd.f32 %v319_v17, %v312_v26  ;;  %v329_v29 = vadd.f32 %v323_v18, %v313_v27 }
 0x2b2   :  { %332 = vst [vmem:[#allocation12 + $0x10] sm:$0xff] %v328_v28  ;;  %333 = vst [vmem:[#allocation12 + $0x18] sm:$0xff] %v329_v29 }
 0x2b3   :  { %582 = shalt.err (!%p579_p2)
}
 0x2b4   :  { %s583_s7 = scalar_lea.hbm %s735_s5, 512 }
 0x2b5   :  { %p584_p3 = scmp.ne.s32.totalorder %s735_s5, %s583_s7  ;;  %p587_p4 = scmp.lt.u32.totalorder %s583_s7, %s735_s5 }
 0x2b7   :  { %p589_p5 = pnand %p587_p4, %p584_p3 }
 0x2b9   :  { %592 = shalt.err (!%p589_p5)
}
 0x2ba   :  { %345 = dma.vmem_to_hbm [thread:$0]  %s340_s28, 512, %s735_s5, [#allocation5], %s603_s30, %s603_s30, %s604_s6  }
 0x2bb   :  { %599 = dma.done.wait [#allocation5], 512  }
 0x2bc   :  { %600 = vsyncadd [#allocation5], 4294966784 }
 0x2bd   :  { %349 = vsyncpa [#allocation4], 1 }
 0x2be   :  { %350 = vsyncpa [#allocation7], 1 }
 0x2bf   :  { %351 = vsyncpa [#allocation10], 1 }
 0x2c0   :  { %352 = vsyncpa [#allocation5], 1 }

// kernel: decoder_block.9
= control target key start
LH: loop header
LB: loop body
LE: loop exit
PB: predicated region body
PF: predicated region fallthrough
CT: control target
= control target key end

     0   :  { %s1660_s0 = inlined_call_operand.hbm [shape: f32[2,8,256], index: 0, kind: input, shape index: {}]   ;;  %s1661_s1 = inlined_call_operand.hbm [shape: f32[2,8,256], index: 1, kind: input, shape index: {}]   ;;  %s1662_s2 = inlined_call_operand.hbm [shape: f32[2,8,256], index: 2, kind: input, shape index: {}]   ;;  %s1663_s3 = inlined_call_operand.hbm [shape: s8[4,8,8], index: 3, kind: input, shape index: {}]   ;;  %s1664_s4 = inlined_call_operand.hbm [shape: f32[2,8,256], index: 4, kind: output, shape index: {}]  }
   0x1   :  { %1683 = sst [smem:[#allocation29_spill]] %s1661_s1 }
   0x2   :  { %1684 = sst [smem:[#allocation30_spill]] %s1664_s4 }
   0x3   :  { %9 = vsyncpa [#allocation6], 0 }
   0x4   :  { %11 = vsyncpa [#allocation6 + $0x1], 0 }
   0x5   :  { %12 = vsyncpa [#allocation9], 0 }
   0x6   :  { %14 = vsyncpa [#allocation9 + $0x1], 0 }
   0x7   :  { %15 = vsyncpa [#allocation12], 0 }
   0x8   :  { %17 = vsyncpa [#allocation12 + $0x1], 0 }
   0x9   :  { %18 = vsyncpa [#allocation7], 0 }
   0xa   :  { %20 = vsyncpa [#allocation7 + $0x1], 0  ;;  %s1250_s15 = smov 0   ;;  %s1252_s16 = smov 0  }
   0xb   :  { %s1254_s17 = smov 0   ;;  %s1256_s18 = smov 0  }
   0xc   :  { %s1258_s19 = smov 0   ;;  %s1260_s20 = smov 0  }
   0xd   :  { %s1262_s21 = smov 0   ;;  %s1264_s22 = smov 0  }
   0xe   :  { %s1266_s23 = smov 0   ;;  %s1268_s24 = smov 0  }
   0xf   :  { %s1270_s25 = smov 0  }
  0x10 LB: > { %1685 = sst [smem:[#allocation18_spill]] %s1186_s18  ;;  %s1306_s26 = sadd.s32 4294967295, %s1214_s25   ;;  %s1214_s25 = sphi %s1270_s25, %s26_s25   ;;  %s1210_s24 = sphi %s1268_s24, %s1737_s24   ;;  %s1206_s23 = sphi %s1266_s23, %s1729_s23   ;;  %s1202_s22 = sphi %s1264_s22, %s1728_s22   ;;  %s1198_s21 = sphi %s1262_s21, %s1727_s21   ;;  %s1194_s20 = sphi %s1260_s20, %s1736_s20   ;;  %s1190_s19 = sphi %s1258_s19, %s1735_s19   ;;  %s1186_s18 = sphi %s1256_s18, %s1734_s18   ;;  %s1182_s17 = sphi %s1254_s17, %s1733_s17   ;;  %s1178_s16 = sphi %s1252_s16, %s1732_s16   ;;  %s1174_s15 = sphi %s1250_s15, %s1731_s15  }
  0x11   : > { %1686 = sst [smem:[#allocation19_spill]] %s1198_s21  ;;  %s792_s27 = sadd.s32 4294967294, %s1214_s25  }
  0x12   : > { %1687 = sst [smem:[#allocation20_spill]] %s1202_s22  ;;  %s48_s28 = sadd.s32 1, %s1206_s23 }
  0x13   : > { %1688 = sst [smem:[#allocation21_spill]] %s1206_s23  ;;  %s52_s29 = sadd.s32 1, %s1210_s24 }
  0x14   : > { %1689 = sst [smem:[#allocation22_spill]] %s1210_s24  ;;  %p50_p0 = scmp.ge.s32.totalorder %s48_s28, 2 }
  0x15   : > { %s63_s30 = sadd.s32 1, %s1194_s20  ;;  %p70_p1 = scmp.ne.s32.totalorder %s1194_s20, %s1190_s19 }
  0x16   : > { %p1675_p2 = scmp.eq.s32.totalorder %s1214_s25, 0  ;;  %s1739_s28 = smov (%p50_p0, %s48_s28), 0 }
  0x17   : > { %1690 = sst [smem:[#allocation23_spill]] %s1739_s28  ;;  %s1741_s29 = smov (!%p50_p0, %s52_s29), %s1210_s24 }
  0x18   : > { %s59_s5 = ssub.s32 %s1206_s23, %s1739_s28  ;;  %p1325_p3 = por %p1675_p2, %p70_p1 }
  0x19   : > { %p54_p4 = scmp.ge.s32.totalorder %s1741_s29, 2  ;;  %p76_p5 = scmp.ne.s32.totalorder %s1190_s19, %s1186_s18 }
  0x1a   : > { %p1674_p6 = scmp.eq.s32.totalorder %s1306_s26, 0  ;;  %s793_s7 = sshll.u32 %s1210_s24, 1 }
  0x1b   : > { %s1743_s29 = smov (%p54_p4, %s1741_s29), 0  ;;  %s1345_s9 = sadd.s32 %s1206_s23, %s793_s7 }
  0x1c   : > { %1692 = sst [smem:[#allocation24_spill]] %s1743_s29  ;;  %p1340_p7 = por %p1674_p6, %p76_p5 }
  0x1d   : > { %s56_s10 = ssub.s32 %s1210_s24, %s1743_s29  ;;  %s794_s11 = sshll.u32 %s1743_s29, 1 }
  0x1e   : > { %s1693_s8 = scalar_select %p1340_p7, 1, 0 }
  0x1f   : > { %s60_s12 = sor.u32 %s59_s5, %s56_s10  ;;  %s149_s13 = sadd.s32 %s794_s11, %s1739_s28 }
  0x20   : > { %1694 = sst [smem:[#allocation25_spill]] %s1693_s8  ;;  %p61_p8 = scmp.eq.s32.totalorder %s60_s12, 0 }
  0x21   : > { %s150_s14 = ssub.s32 %s1345_s9, %s149_s13  ;;  %p198_p10 = scmp.eq.s32.totalorder %s1306_s26, 3 }
  0x22   : > { %p1352_p9 = scmp.eq.s32.totalorder %s150_s14, 0  ;;  %p204_p12 = scmp.eq.s32.totalorder %s792_s27, 3 }
  0x23   : > { %s1358_s7 = scalar_select %p61_p8, %s1194_s20, %s63_s30  }
  0x24   : > { %s1695_s4 = scalar_select %p1352_p9, 1, 0 }
  0x25   : > { %1696 = sst [smem:[#allocation26_spill]] %s1358_s7  ;;  %p1363_p11 = por %p198_p10, %p70_p1 }
  0x26   : > { %p1673_p13 = scmp.lt.s32.totalorder %s1214_s25, 4  ;;  %p1371_p0 = por %p204_p12, %p76_p5 }
  0x27   : > { %s1697_s24 = scalar_select %p1363_p11, 1, 0 }
  0x28   : > { %s1699_s5 = scalar_select %p1371_p0, 1, 0 }
  0x29   : > { %1698 = sst [smem:[#allocation27_spill]] %s1697_s24  ;;  %s1668_s10 = sand.u32 1, %s1194_s20  }
  0x2a   : > { %1700 = sst [smem:[#allocation28_spill]] %s1699_s5  ;;  %s1378_s11 = sshll.u32 %s1668_s10, 3 }
  0x2b   : > { %s1381_s12 = sshll.u32 %s1345_s9, 7  ;;  %p1387_p1 = pnand %p1673_p13, %p1325_p3 }
  0x2c   : > { %s246_s27 = sand.u32 1, %s1214_s25   ;;  %s1702_s1 = sld [smem:[#allocation29_spill]] }
  0x2d   : > { %s1701_s30 = scalar_select %p1387_p1, 1, 0 }
  0x2e   : > { %s250_s10 = scalar_lea.vmem [#allocation8], %s1378_s11  ;;  %s1403_s6 = scalar_lea.sflag [#allocation9], %s246_s27 }
  0x2f   : > { %s261_s28 = sshll.u32 %s250_s10, 4  ;;  %p1409_p8 = pneg %p1387_p1  ;;  %s1400_s28 = int_to_ptr.vmem [resolvable:$true] %s261_s28 }
  0x32   : > { %s1396_s29 = scalar_lea.hbm %s1702_s1, %s1381_s12  ;;  %s969_s10 = scalar_lea.hbm %s1702_s1, 512 }
  0x33   : > { %s964_s23 = scalar_lea.hbm %s1396_s29, 128  ;;  %p970_p13 = scmp.lt.u32.totalorder %s1396_s29, %s1702_s1 }
  0x34   : > { %p965_p5 = scmp.ne.s32.totalorder %s1396_s29, %s964_s23  ;;  %p971_p6 = scmp.lt.u32.totalorder %s969_s10, %s964_s23 }
  0x35   : > { %p973_p4 = scmp.lt.u32.totalorder %s964_s23, %s1396_s29 }
  0x36   : > { %p967_p10 = pnand %p1409_p8, %p965_p5  ;;  %p972_p2 = por %p971_p6, %p970_p13 }
  0x38   : > { %p968_p12 = pneg %p967_p10  ;;  %p974_p3 = por %p973_p4, %p972_p2 }
  0x3a   : > { %p975_p0 = pnand %p974_p3, %p968_p12 }
  0x3c   : > { %978 = shalt.err (!%p975_p0)
}
  0x3d   : > { %s979_s27 = scalar_lea.vmem %s1400_s28, 128  ;;  %s1216_s13 = smov [#allocation8]  }
  0x3e   : > { %p980_p5 = scmp.ne.s32.totalorder %s1400_s28, %s979_s27  ;;  %s984_s14 = sshll.u32 %s1216_s13, 4  ;;  %s985_s14 = int_to_ptr.vmem [resolvable:$false] %s984_s14 }
  0x3f   : > { %s986_s18 = scalar_lea.vmem %s985_s14, 256  ;;  %p987_p7 = scmp.lt.s32.totalorder %s1400_s28, %s985_s14 }
  0x40   : > { %p982_p10 = pnand %p980_p5, %p1409_p8  ;;  %p988_p9 = scmp.lt.s32.totalorder %s986_s18, %s979_s27 }
  0x42   : > { %p983_p11 = pneg %p982_p10  ;;  %p989_p6 = por %p988_p9, %p987_p7 }
  0x44   : > { %p990_p13 = pnand %p989_p6, %p983_p11 }
  0x46   : > { %993 = shalt.err (!%p990_p13)
}
  0x47   : > { %851 = dma.hbm_to_vmem [thread:$0]  (!%p1387_p1), %s1396_s29, 128, %s1400_s28, %s1403_s6  }
  0x48   : > { %p1704_p2 = scmp.lt.s32.totalorder %s1214_s25, 5  ;;  %p1705_p0 = scmp.ge.s32.totalorder %s1214_s25, 1 }
  0x49   : > { %s1445_s27 = scalar_lea.hbm %s1660_s0, %s1381_s12  ;;  %s228_s13 = scalar_lea.vmem [#allocation5], %s1378_s11 }
  0x4a   : > { %p1437_p4 = pnand %p1705_p0, %p1704_p2  ;;  %s239_s14 = sshll.u32 %s228_s13, 4  ;;  %s1448_s14 = int_to_ptr.vmem [resolvable:$true] %s239_s14 }
  0x4b   : > { %s1454_s18 = scalar_lea.hbm %s1662_s2, %s1381_s12  ;;  %s1707_s1 = sand.u32 1, %s1194_s20  }
  0x4c   : > { %s1706_s23 = scalar_select %p1437_p4, 1, 0 }
  0x4d   : > { %s225_s24 = scalar_lea.sflag [#allocation6], %s1707_s1  ;;  %s994_s21 = scalar_lea.hbm %s1445_s27, 128 }
  0x4e   : > { %p995_p7 = scmp.ne.s32.totalorder %s1445_s27, %s994_s21  ;;  %s999_s22 = scalar_lea.hbm %s1660_s0, 512 }
  0x4f   : > { %p1000_p3 = scmp.lt.u32.totalorder %s1445_s27, %s1660_s0  ;;  %p1001_p12 = scmp.lt.u32.totalorder %s999_s22, %s994_s21 }
  0x50   : > { %p997_p9 = pnand %p995_p7, %p1409_p8  ;;  %p1003_p10 = scmp.lt.u32.totalorder %s994_s21, %s1445_s27 }
  0x51   : > { %p1002_p5 = por %p1001_p12, %p1000_p3 }
  0x52   : > { %p998_p11 = pneg %p997_p9 }
  0x53   : > { %p1004_p6 = por %p1003_p10, %p1002_p5 }
  0x55   : > { %p1005_p13 = pnand %p1004_p6, %p998_p11 }
  0x57   : > { %1008 = shalt.err (!%p1005_p13)
}
  0x58   : > { %s1009_s1 = scalar_lea.vmem %s1448_s14, 128  ;;  %s1217_s12 = smov [#allocation5]  }
  0x59   : > { %p1010_p2 = scmp.ne.s32.totalorder %s1448_s14, %s1009_s1  ;;  %s1014_s28 = sshll.u32 %s1217_s12, 4  ;;  %s1015_s28 = int_to_ptr.vmem [resolvable:$false] %s1014_s28 }
  0x5a   : > { %s1016_s8 = scalar_lea.vmem %s1015_s28, 256  ;;  %p1017_p9 = scmp.lt.s32.totalorder %s1448_s14, %s1015_s28 }
  0x5b   : > { %p1012_p0 = pnand %p1010_p2, %p1409_p8  ;;  %p1018_p4 = scmp.lt.s32.totalorder %s1016_s8, %s1009_s1 }
  0x5d   : > { %p1013_p7 = pneg %p1012_p0  ;;  %p1019_p3 = por %p1018_p4, %p1017_p9 }
  0x5f   : > { %p1020_p12 = pnand %p1019_p3, %p1013_p7 }
  0x61   : > { %1023 = shalt.err (!%p1020_p12)
}
  0x62   : > { %848 = dma.hbm_to_vmem [thread:$0]  (!%p1387_p1), %s1445_s27, 128, %s1448_s14, %s225_s24  }
  0x63   : > { %s272_s21 = scalar_lea.vmem [#allocation10], %s1378_s11  ;;  %s1024_s29 = scalar_lea.hbm %s1454_s18, 128 }
  0x64   : > { %s283_s22 = sshll.u32 %s272_s21, 4  ;;  %p1025_p11 = scmp.ne.s32.totalorder %s1454_s18, %s1024_s29  ;;  %s284_s22 = int_to_ptr.vmem [resolvable:$true] %s283_s22 }
  0x65   : > { %s1029_s13 = scalar_lea.hbm %s1662_s2, 512  ;;  %p1030_p10 = scmp.lt.u32.totalorder %s1454_s18, %s1662_s2 }
  0x66   : > { %p1027_p4 = pnand %p1025_p11, %p1409_p8  ;;  %p1031_p6 = scmp.lt.u32.totalorder %s1029_s13, %s1024_s29 }
  0x67   : > { %p1033_p2 = scmp.lt.u32.totalorder %s1024_s29, %s1454_s18 }
  0x68   : > { %p1028_p5 = pneg %p1027_p4  ;;  %p1032_p13 = por %p1031_p6, %p1030_p10 }
  0x6a   : > { %p1034_p0 = por %p1033_p2, %p1032_p13 }
  0x6c   : > { %p1035_p7 = pnand %p1034_p0, %p1028_p5 }
  0x6e   : > { %1038 = shalt.err (!%p1035_p7)
}
  0x6f   : > { %s1039_s24 = scalar_lea.vmem %s284_s22, 128  ;;  %s1218_s11 = smov [#allocation10]  }
  0x70   : > { %p1040_p9 = scmp.ne.s32.totalorder %s284_s22, %s1039_s24  ;;  %s1044_s27 = sshll.u32 %s1218_s11, 4  ;;  %s1045_s27 = int_to_ptr.vmem [resolvable:$false] %s1044_s27 }
  0x71   : > { %s1046_s14 = scalar_lea.vmem %s1045_s27, 256  ;;  %p1047_p11 = scmp.lt.s32.totalorder %s284_s22, %s1045_s27 }
  0x72   : > { %p1042_p3 = pnand %p1040_p9, %p1409_p8  ;;  %p1048_p4 = scmp.lt.s32.totalorder %s1046_s14, %s1039_s24 }
  0x74   : > { %p1043_p12 = pneg %p1042_p3  ;;  %p1049_p1 = por %p1048_p4, %p1047_p11 }
  0x76   : > { %p1050_p6 = pnand %p1049_p1, %p1043_p12 }
  0x78   : > { %1053 = shalt.err (!%p1050_p6)
}
  0x79   : > { %p1708_p10 = scmp.ne.s32.totalorder %s1701_s30, 0  ;;  %s157_s7 = sadd.s32 1, %s1182_s17 }
  0x7a   : > { %p164_p1 = scmp.ne.s32.totalorder %s1182_s17, %s1178_s16  ;;  %p1709_p8 = scmp.ne.s32.totalorder %s1695_s4, 0 }
  0x7b   : > { %854 = dma.hbm_to_vmem [thread:$0]  (!%p1708_p10), %s1454_s18, 128, %s284_s22, %s1403_s6  }
  0x7c   : > { %s1504_s28 = scalar_select %p1709_p8, %s1182_s17, %s157_s7  }
  0x7d   : > { %p1710_p5 = scmp.eq.s32.totalorder %s1214_s25, 0  ;;  %p170_p2 = scmp.ne.s32.totalorder %s1178_s16, %s1174_s15 }
  0x7e   : > { %s290_s30 = sand.u32 1, %s1182_s17   ;;  %s808_s8 = sshll.u32 %s1345_s9, 5 }
  0x7f   : > { %p166_p13 = por %p164_p1, %p1710_p5  ;;  %p1711_p0 = scmp.eq.s32.totalorder %s1306_s26, 0 }
  0x80   : > { %s806_s29 = sshll.u32 %s290_s30, 1  ;;  %s1521_s6 = scalar_lea.hbm %s1663_s3, %s808_s8 }
  0x81   : > { %p1514_p7 = por %p170_p2, %p1711_p0  ;;  %p1713_p9 = scmp.lt.s32.totalorder %s1214_s25, 4 }
  0x82   : > { %s294_s15 = scalar_lea.vmem [#allocation11], %s806_s29  ;;  %s291_s18 = scalar_lea.sflag [#allocation12], %s290_s30 }
  0x83   : > { %p1525_p3 = pnand %p1713_p9, %p166_p13  ;;  %s305_s9 = sshll.u32 %s294_s15, 4  ;;  %s1529_s9 = int_to_ptr.vmem [resolvable:$true] %s305_s9 }
  0x84   : > { %s1054_s22 = scalar_lea.hbm %s1521_s6, 32  ;;  %s1059_s12 = scalar_lea.hbm %s1663_s3, 128 }
  0x85   : > { %p1055_p12 = scmp.ne.s32.totalorder %s1521_s6, %s1054_s22  ;;  %p1056_p11 = pneg %p1525_p3 }
  0x86   : > { %p1060_p10 = scmp.lt.u32.totalorder %s1521_s6, %s1663_s3  ;;  %p1061_p1 = scmp.lt.u32.totalorder %s1059_s12, %s1054_s22 }
  0x87   : > { %p1057_p4 = pnand %p1056_p11, %p1055_p12  ;;  %p1063_p5 = scmp.lt.u32.totalorder %s1054_s22, %s1521_s6 }
  0x88   : > { %p1062_p8 = por %p1061_p1, %p1060_p10 }
  0x89   : > { %p1058_p6 = pneg %p1057_p4 }
  0x8a   : > { %p1064_p13 = por %p1063_p5, %p1062_p8 }
  0x8c   : > { %p1065_p2 = pnand %p1064_p13, %p1058_p6 }
  0x8e   : > { %1068 = shalt.err (!%p1065_p2)
}
  0x8f   : > { %s1069_s27 = scalar_lea.vmem %s1529_s9, 32  ;;  %s1219_s14 = smov [#allocation11]  }
  0x90   : > { %p1070_p0 = scmp.ne.s32.totalorder %s1529_s9, %s1069_s27  ;;  %s1074_s7 = sshll.u32 %s1219_s14, 4  ;;  %s1075_s7 = int_to_ptr.vmem [resolvable:$false] %s1074_s7 }
  0x91   : > { %s1076_s30 = scalar_lea.vmem %s1075_s7, 64  ;;  %p1077_p4 = scmp.lt.s32.totalorder %s1529_s9, %s1075_s7 }
  0x92   : > { %p1072_p9 = pnand %p1070_p0, %p1056_p11  ;;  %p1078_p10 = scmp.lt.s32.totalorder %s1076_s30, %s1069_s27 }
  0x94   : > { %p1073_p12 = pneg %p1072_p9  ;;  %p1079_p1 = por %p1078_p10, %p1077_p4 }
  0x96   : > { %p1080_p8 = pnand %p1079_p1, %p1073_p12 }
  0x98   : > { %1083 = shalt.err (!%p1080_p8)
}
  0x99   : > { %857 = dma.hbm_to_vmem [thread:$0]  (!%p1525_p3), %s1521_s6, 32, %s1529_s9, %s291_s18  }
  0x9a   : > { %p1715_p6 = scmp.ne.s32.totalorder %s1706_s23, 0 }
  0x9b   : > { %s1716_s8 = sld [smem:[#allocation25_spill]] (!%p1715_p6)  ;;  %s1559_s29 = sand.u32 (!%p1715_p6), 1, %s1190_s19  }
  0x9c   : > { %314 = sbr.rel (%p1715_p6) target bundleno = 988 (0x3dc), region = 36  ;;  %s1562_s5 = sshll.u32 (!%p1715_p6), %s1559_s29, 3 }
  0x9d   : > { %s317_s10 = scalar_lea.sflag (!%p1715_p6), [#allocation6], %s1559_s29  ;;  %s320_s15 = scalar_lea.vmem (!%p1715_p6), [#allocation5], %s1562_s5 }
  0xa1   : > { %p1717_p11 = scmp.ne.s32.totalorder (!%p1715_p6), %s1716_s8, 0 }
  0xa3   : > { %1157 = dma.done.wait (%p1717_p11), %s317_s10, 128  }
  0xa4   : > { %1159 = vsyncadd (%p1717_p11), %s317_s10, 4294967168  ;;  %s325_s23 = sand.u32 1, %s1306_s26   ;;  %s329_s4 = scalar_lea.vmem [#allocation8], %s1562_s5 }
  0xa5   : > { %s326_s6 = scalar_lea.sflag [#allocation9], %s325_s23 }
  0xa6   : > { %1161 = dma.done.wait (%p1717_p11), %s326_s6, 256  }
  0xa7   : > { %1163 = vsyncadd (%p1717_p11), %s326_s6, 4294967040  ;;  %s343_s9 = sand.u32 1, %s1178_s16   ;;  %s338_s22 = scalar_lea.vmem [#allocation10], %s1562_s5 }
  0xa8   : > { %s813_s18 = sshll.u32 %s343_s9, 1  ;;  %s344_s13 = scalar_lea.sflag [#allocation12], %s343_s9 }
  0xa9   : > { %s347_s1 = scalar_lea.vmem [#allocation11], %s813_s18 }
  0xaa   : > { %1165 = dma.done.wait (%p1514_p7), %s344_s13, 32  }
  0xab   : > { %1167 = vsyncadd (%p1514_p7), %s344_s13, 4294967264  ;;  %vm395_vm0 = vcmask 7168   ;;  %v1220_v0 = vmov 0.0   ;;  %vm1221_vm1 = vmmov 0   ;;  %v400_v1 = vld [vmem:[%s329_s4] sm:$0xff]  ;;  %v399_v2 = vld [vmem:[%s320_s15] sm:$0xff] }
  0xac   : > { %397 = vst.msk [vmem:[#allocation3] sm:$0xff] %vm395_vm0, %v1220_v0  ;;  %825 = vmatprep.subr.mxu0 %v1220_v0  ;;  %827 = vmatprep.mubr.msk.f32.mxu0 %vm1221_vm1, %v1220_v0  ;;  %v1222_v3 = vmov 0   ;;  %v1223_v4 = vmov -inf   ;;  %v473_v5 = vld [vmem:[%s347_s1] sm:$0x3]  ;;  %vm480_vm4 = vcmask 64512  }
  0xad   : > { %830 = vmatprep.subr.mxu1 %v1220_v0  ;;  %832 = vmatprep.mubr.msk.f32.mxu1 %vm1221_vm1, %v1220_v0  ;;  %396 = vst.msk [vmem:[#allocation2] sm:$0xff] %vm395_vm0, %v1223_v4  ;;  %vm474_vm2 = vnez %v473_v5  ;;  %v401_v17 = vld [vmem:[%s338_s22] sm:$0xff]  ;;  %s1718_s26 = sld [smem:[#allocation20_spill]]  ;;  %s1719_s21 = sld [smem:[#allocation19_spill]] }
  0xae   : > { %826 = vmatpush3.xpose.msra.mxu0 %v400_v1  ;;  %956 = vset.pattern.permute.xlu0 %v1222_v3  ;;  %v475_v6 = vsel %vm474_vm2, 16843009, %v1222_v3  ;;  %s1720_s24 = sld [smem:[#allocation27_spill]]  ;;  %s386_s14 = scalar_lea.vmem [#allocation13], %s1562_s5 }
  0xaf   : > { %957 = vset.pattern.permute.xlu1 %v1222_v3  ;;  %v476_v7 = vunpack.c.0.s8 %v475_v6  ;;  %831 = vmatpush3.msra.mxu1 %v401_v17  ;;  %s618_s7 = sshll.u32 %s386_s14, 4  ;;  %s1721_s10 = sld [smem:[#allocation30_spill]]  ;;  %s1599_s7 = int_to_ptr.vmem [resolvable:$true] %s618_s7 }
  0xb0   : > { %s601_s23 = scalar_lea.sflag [#allocation7], %s1559_s29  ;;  %s1084_s6 = scalar_lea.vmem %s1599_s7, 128 }
  0xb1   : > { %828 = vmatmul.mubr.f32.vlgmr.msra.gmra.mrb[0].mxu0 %v399_v2  ;;  %vm477_vm3 = vcmp.ne.s32.totalorder %v476_v7, 0  ;;  %p1085_p7 = scmp.ne.s32.totalorder %s1599_s7, %s1084_s6  ;;  %s1224_s5 = smov [#allocation13]  }
  0xb2   : > { %s1088_s4 = sshll.u32 %s1224_s5, 4  ;;  %s1089_s4 = int_to_ptr.vmem [resolvable:$false] %s1088_s4 }
  0xb3   : > { %v496_v25 = vld [vmem:[#allocation3] sm:$0xff]  ;;  %s817_s12 = sshll.u32 %s1718_s26, 1  ;;  %s1090_s9 = scalar_lea.vmem %s1089_s4, 256 }
  0xb4   : > { %v479_v13 = vld [vmem:[#allocation2] sm:$0xff]  ;;  %s614_s11 = sadd.s32 %s1719_s21, %s817_s12  ;;  %p1722_p3 = scmp.ne.s32.totalorder %s1720_s24, 0 }
  0xb5   : > { %s818_s27 = sshll.u32 %s614_s11, 7  ;;  %p1091_p2 = scmp.lt.s32.totalorder %s1599_s7, %s1089_s4 }
  0xb6   : > { %s1597_s15 = scalar_lea.hbm %s1721_s10, %s818_s27  ;;  %p1086_p5 = pnand %p1085_p7, %p1722_p3 }
  0xb7   : > { %p1092_p0 = scmp.lt.s32.totalorder %s1090_s9, %s1084_s6 }
  0xb8   : > { %p1087_p13 = pneg %p1086_p5 }
  0xb9   : > { %p1093_p9 = por %p1092_p0, %p1091_p2 }
  0xbb   : > { %p1094_p12 = pnand %p1093_p9, %p1087_p13 }
 0x184   : > { %v468_v8 = vpop.f32.mrb[0].mxu0 }
 0x185   : > { %v472_v9 = vmul.f32 0.088388346, %v468_v8  ;;  %v829_v10 = vpop.f32.mrb[1].mxu0 }
 0x187   : > { %v478_v11 = vsel %vm477_vm3, -1000000.0, %v472_v9 }
 0x188   : > { %v481_v12 = vsel %vm480_vm4, %v478_v11, -inf }
 0x189   : > { %482 = vmax.xlane.f32.xlu0 %v481_v12 }
 0x216   : > { %v483_v14 = vpop.xlane.xlu0 %482 }
 0x217   : > { %v484_v15 = vmax.f32 %v479_v13, %v483_v14 }
 0x219   : > { %v485_v16 = vsub.f32 %v479_v13, %v484_v15  ;;  %586 = vst.msk [vmem:[#allocation2] sm:$0xff] %vm395_vm0, %v484_v15  ;;  %490 = vperm.xlu0 %956, %v484_v15  }
 0x21b   : > { %v486_v23 = vmul.f32 1.442695, %v485_v16 }
 0x298   : > { %v491_v18 = vpop.permute.xlu0 %490 }
 0x299   : > { %v493_v19 = vsub.f32 %v478_v11, %v491_v18 }
 0x29b   : > { %v494_v20 = vmul.f32 1.442695, %v493_v19 }
 0x29d   : > { %958 = vpow2.f32 %v494_v20 }
 0x29e   : > { %960 = vpow2.f32 %v486_v23 }
 0x2a7   : > { %v959_v21 = vpop.eup %958 }
 0x2a8   : > { %833 = vmatmul.mubr.msk.f32.vlgmr.msra.gmra.mrb[0].mxu1 %vm480_vm4, %v959_v21  ;;  %v498_v22 = vsel %vm480_vm4, %v959_v21, 0.0  ;;  %v961_v24 = vpop.eup %960 }
 0x2a9   : > { %499 = vadd.xlane.f32.xlu1 %v498_v22  ;;  %v497_v26 = vmul.f32 %v961_v24, %v496_v25 }
 0x336   : > { %v500_v27 = vpop.xlane.xlu1 %499 }
 0x337   : > { %v501_v28 = vadd.f32 %v500_v27, %v497_v26 }
 0x339   : > { %503 = vst.msk [vmem:[#allocation3] sm:$0xff] %vm395_vm0, %v501_v28 }
 0x340   : > { %v591_v29 = vld [vmem:[#allocation3] sm:$0xff] }
 0x341   : > { %594 = vperm.xlu1 %957, %v591_v29  }
 0x345   : > { %507 = vperm.xlu1 %957, %v961_v24  }
 0x37b   : > { %v580_v30 = vpop.f32.mrb[0].mxu1 }
 0x37c   : > { %v834_v31 = vpop.f32.mrb[1].mxu1 }
 0x3c0   : > { %v595_v32 = vpop.permute.xlu1 %594 }
 0x3c1   : > { %962 = vrcp.f32 %v595_v32 }
 0x3c4   : > { %v508_v33 = vpop.permute.xlu1 %507 }
 0x3c5   : > { %v510_v34 = vmul.f32 0.0, %v508_v33 }
 0x3c7   : > { %v584_v35 = vadd.f32 %v580_v30, %v510_v34 }
 0x3cb   : > { %v963_v36 = vpop.eup %962 }
 0x3cc   : > { %v598_v37 = vmul.f32 %v963_v36, %v584_v35 }
 0x3ce   : > { %599 = vst [vmem:[%s386_s14] sm:$0xff] %v598_v37 }
 0x3cf   : > { %1097 = shalt.err (!%p1094_p12)
}
 0x3d0   : > { %s1098_s29 = scalar_lea.hbm %s1597_s15, 128  ;;  %s1102_s13 = scalar_lea.hbm %s1721_s10, 512 }
 0x3d1   : > { %p1099_p4 = scmp.ne.s32.totalorder %s1597_s15, %s1098_s29  ;;  %p1103_p8 = scmp.lt.u32.totalorder %s1597_s15, %s1721_s10 }
 0x3d2   : > { %p1104_p6 = scmp.lt.u32.totalorder %s1102_s13, %s1098_s29  ;;  %p1106_p7 = scmp.lt.u32.totalorder %s1098_s29, %s1597_s15 }
 0x3d3   : > { %p1100_p10 = pnand %p1099_p4, %p1722_p3 }
 0x3d4   : > { %p1105_p11 = por %p1104_p6, %p1103_p8 }
 0x3d5   : > { %p1101_p1 = pneg %p1100_p10 }
 0x3d6   : > { %p1107_p5 = por %p1106_p7, %p1105_p11 }
 0x3d8   : > { %p1108_p13 = pnand %p1107_p5, %p1101_p1 }
 0x3da   : > { %1111 = shalt.err (!%p1108_p13)
}
 0x3db   : > { %843 = dma.vmem_to_hbm [thread:$0]  (%p1722_p3), %s1599_s7, 128, %s1597_s15, %s601_s23  }
 0x3dc PF: > { %s1723_s21 = sld [smem:[#allocation18_spill]]  ;;  %s1724_s12 = sld [smem:[#allocation28_spill]] }
 0x3dd   : > { %p863_p2 = scmp.ge.s32.totalorder %s1214_s25, 2 }
 0x3e2   : > { %s630_s11 = sand.u32 1, %s1723_s21   ;;  %p1725_p0 = scmp.ne.s32.totalorder %s1724_s12, 0 }
 0x3e3   : > { %s631_s27 = scalar_lea.sflag [#allocation7], %s630_s11 }
 0x3e4   : > { %p859_p9 = pnand %p863_p2, %p1725_p0 }
 0x3e6   : > { %1169 = dma.done.wait (!%p859_p9), %s631_s27, 128  }
 0x3e7   : > { %1171 = vsyncadd (!%p859_p9), %s631_s27, 4294967168  ;;  %s26_s25 = sadd.s32 1, %s1214_s25   ;;  %s1726_s24 = sld [smem:[#allocation26_spill]] }
 0x3e8   : > { %p23_p12 = scmp.ge.s32.totalorder %s26_s25, 6   ;;  %s1727_s21 = sld [smem:[#allocation21_spill]] }
 0x3e9   : > { %s1728_s22 = sld [smem:[#allocation22_spill]]  ;;  %s1729_s23 = sld [smem:[#allocation23_spill]] }
 0x3ea   : > { %s1730_s14 = sld [smem:[#allocation24_spill]]  ;;  %s1731_s15 = smov %s1178_s16 }
 0x3eb   : > { %s1732_s16 = smov %s1182_s17  ;;  %s1733_s17 = smov %s1504_s28 }
 0x3ec   : > { %s1734_s18 = smov %s1190_s19  ;;  %s1735_s19 = smov %s1194_s20 }
 0x3ed   : > { %s1736_s20 = smov %s1726_s24  ;;  %25 = sbr.rel (!%p23_p12) target bundleno = 16 (0x10), region = 126 }
 0x3f0   : > { %s1737_s24 = smov %s1730_s14 }
 0x3f4   :  { %636 = vsyncpa [#allocation6], 1 }
 0x3f5   :  { %638 = vsyncpa [#allocation6 + $0x1], 1 }
 0x3f6   :  { %639 = vsyncpa [#allocation9], 1 }
 0x3f7   :  { %641 = vsyncpa [#allocation9 + $0x1], 1 }
 0x3f8   :  { %642 = vsyncpa [#allocation12], 1 }
 0x3f9   :  { %644 = vsyncpa [#allocation12 + $0x1], 1 }
 0x3fa   :  { %645 = vsyncpa [#allocation7], 1 }
 0x3fb   :  { %647 = vsyncpa [#allocation7 + $0x1], 1 }

// kernel: decoder_block.8
= control target key start
LH: loop header
LB: loop body
LE: loop exit
PB: predicated region body
PF: predicated region fallthrough
CT: control target
= control target key end

     0   :  { %12 = vsyncpa [#allocation3], 0  ;;  %s1148_s0 = inlined_call_operand.hbm [shape: f32[16,256], index: 0, kind: input, shape index: {}]   ;;  %s1149_s1 = inlined_call_operand.hbm [shape: f32[256,256], index: 1, kind: input, shape index: {}]   ;;  %s1150_s2 = inlined_call_operand.hbm [shape: f32[256,256], index: 2, kind: input, shape index: {}]   ;;  %s1151_s3 = inlined_call_operand.hbm [shape: f32[256,256], index: 3, kind: input, shape index: {}]   ;;  %s1152_s4 = inlined_call_operand.hbm [shape: f32[16,256], index: 4, kind: output, shape index: {0}]   ;;  %s1153_s5 = inlined_call_operand.hbm [shape: f32[16,256], index: 5, kind: output, shape index: {1}]   ;;  %s1154_s6 = inlined_call_operand.hbm [shape: f32[16,256], index: 6, kind: output, shape index: {2}]  }
   0x1   :  { %13 = vsyncpa [#allocation6], 0 }
   0x2   :  { %14 = vsyncpa [#allocation9], 0 }
   0x3   :  { %15 = vsyncpa [#allocation4], 0 }
   0x4   :  { %16 = vsyncpa [#allocation12], 0  ;;  %s963_s21 = smov [#allocation5]   ;;  %s964_s23 = smov [#allocation2]  }
   0x5   :  { %s34_s22 = sshll.u32 %s963_s21, 4  ;;  %s22_s24 = sshll.u32 %s964_s23, 4  ;;  %s35_s22 = int_to_ptr.vmem [resolvable:$true] %s34_s22  ;;  %s1007_s24 = int_to_ptr.vmem [resolvable:$true] %s22_s24 }
   0x6   :  { %s799_s27 = scalar_lea.hbm %s1149_s1, 8192 }
   0x7   :  { %p800_p0 = scmp.ne.s32.totalorder %s1149_s1, %s799_s27  ;;  %p803_p1 = scmp.lt.u32.totalorder %s799_s27, %s1149_s1 }
   0x9   :  { %p805_p2 = pnand %p803_p1, %p800_p0 }
   0xb   :  { %808 = shalt.err (!%p805_p2)
}
   0xc   :  { %s809_s8 = scalar_lea.vmem %s35_s22, 8192  ;;  %p814_p4 = scmp.lt.s32.totalorder %s35_s22, %s35_s22 }
   0xd   :  { %p810_p3 = scmp.ne.s32.totalorder %s35_s22, %s809_s8  ;;  %p815_p5 = scmp.lt.s32.totalorder %s809_s8, %s809_s8 }
   0xf   :  { %p816_p6 = por %p815_p5, %p814_p4 }
  0x11   :  { %p817_p7 = pnand %p816_p6, %p810_p3 }
  0x13   :  { %820 = shalt.err (!%p817_p7)
}
  0x14   :  { %s965_s9 = smov 256   ;;  %s966_s10 = smov 16  }
  0x15   :  { %40 = dma.hbm_to_vmem [thread:$0]  %s1149_s1, 8192, %s35_s22, [#allocation6], %s965_s9, %s965_s9, %s966_s10  }
  0x16   :  { %s821_s15 = scalar_lea.hbm %s1148_s0, 512 }
  0x17   :  { %p822_p8 = scmp.ne.s32.totalorder %s1148_s0, %s821_s15  ;;  %p825_p9 = scmp.lt.u32.totalorder %s821_s15, %s1148_s0 }
  0x19   :  { %p827_p10 = pnand %p825_p9, %p822_p8 }
  0x1b   :  { %830 = shalt.err (!%p827_p10)
}
  0x1c   :  { %s831_s20 = scalar_lea.vmem %s1007_s24, 512  ;;  %p836_p12 = scmp.lt.s32.totalorder %s1007_s24, %s1007_s24 }
  0x1d   :  { %p832_p11 = scmp.ne.s32.totalorder %s1007_s24, %s831_s20  ;;  %p837_p13 = scmp.lt.s32.totalorder %s831_s20, %s831_s20 }
  0x1f   :  { %p838_p0 = por %p837_p13, %p836_p12 }
  0x21   :  { %p839_p1 = pnand %p838_p0, %p832_p11 }
  0x23   :  { %842 = shalt.err (!%p839_p1)
}
  0x24   :  { %28 = dma.hbm_to_vmem [thread:$0]  %s1148_s0, 512, %s1007_s24, [#allocation3], %s965_s9, %s965_s9, %s966_s10  }
  0x25   :  { %s967_s22 = smov [#allocation7]   ;;  %s968_s25 = smov [#allocation8]  }
  0x26   :  { %s46_s23 = sshll.u32 %s967_s22, 4  ;;  %s58_s26 = sshll.u32 %s968_s25, 4  ;;  %s47_s23 = int_to_ptr.vmem [resolvable:$true] %s46_s23  ;;  %s1044_s26 = int_to_ptr.vmem [resolvable:$true] %s58_s26 }
  0x27   :  { %s843_s29 = scalar_lea.hbm %s1150_s2, 8192 }
  0x28   :  { %p844_p2 = scmp.ne.s32.totalorder %s1150_s2, %s843_s29  ;;  %p847_p3 = scmp.lt.u32.totalorder %s843_s29, %s1150_s2 }
  0x2a   :  { %p849_p4 = pnand %p847_p3, %p844_p2 }
  0x2c   :  { %852 = shalt.err (!%p849_p4)
}
  0x2d   :  { %s853_s0 = scalar_lea.vmem %s47_s23, 8192  ;;  %p858_p6 = scmp.lt.s32.totalorder %s47_s23, %s47_s23 }
  0x2e   :  { %p854_p5 = scmp.ne.s32.totalorder %s47_s23, %s853_s0  ;;  %p859_p7 = scmp.lt.s32.totalorder %s853_s0, %s853_s0 }
  0x30   :  { %p860_p8 = por %p859_p7, %p858_p6 }
  0x32   :  { %p861_p9 = pnand %p860_p8, %p854_p5 }
  0x34   :  { %864 = shalt.err (!%p861_p9)
}
  0x35   :  { %52 = dma.hbm_to_vmem [thread:$0]  %s1150_s2, 8192, %s47_s23, [#allocation6], %s965_s9, %s965_s9, %s966_s10  }
  0x36   :  { %s865_s15 = scalar_lea.hbm %s1151_s3, 8192 }
  0x37   :  { %p866_p10 = scmp.ne.s32.totalorder %s1151_s3, %s865_s15  ;;  %p869_p11 = scmp.lt.u32.totalorder %s865_s15, %s1151_s3 }
  0x39   :  { %p871_p12 = pnand %p869_p11, %p866_p10 }
  0x3b   :  { %874 = shalt.err (!%p871_p12)
}
  0x3c   :  { %s875_s20 = scalar_lea.vmem %s1044_s26, 8192  ;;  %p880_p0 = scmp.lt.s32.totalorder %s1044_s26, %s1044_s26 }
  0x3d   :  { %p876_p13 = scmp.ne.s32.totalorder %s1044_s26, %s875_s20  ;;  %p881_p1 = scmp.lt.s32.totalorder %s875_s20, %s875_s20 }
  0x3f   :  { %p882_p2 = por %p881_p1, %p880_p0 }
  0x41   :  { %p883_p3 = pnand %p882_p2, %p876_p13 }
  0x43   :  { %886 = shalt.err (!%p883_p3)
}
  0x44   :  { %64 = dma.hbm_to_vmem [thread:$0]  %s1151_s3, 8192, %s1044_s26, [#allocation9], %s965_s9, %s965_s9, %s966_s10  }
  0x45   :  { %953 = dma.done.wait [#allocation3], 512  }
  0x46   :  { %954 = vsyncadd [#allocation3], 4294966784 }
  0x47   :  { %955 = dma.done.wait [#allocation6], 16384  }
  0x48   :  { %956 = vsyncadd [#allocation6], 4294950912 }
  0x49   :  { %957 = dma.done.wait [#allocation9], 8192  }
  0x4a   :  { %958 = vsyncadd [#allocation9], 4294959104  ;;  %v82_v0 = vld [vmem:[#allocation5 + $0x8] sm:$0xff]  ;;  %v84_v1 = vld [vmem:[#allocation5 + $0x18] sm:$0xff]  ;;  %s969_s3 = smov [#allocation10]   ;;  %s970_s22 = smov [#allocation11]  }
  0x4b   :  { %v227_v2 = vld [vmem:[#allocation7 + $0x8] sm:$0xff]  ;;  %v566_v3 = vpack.c.bf16 %v84_v1, %v82_v0  ;;  %v229_v4 = vld [vmem:[#allocation7 + $0x18] sm:$0xff]  ;;  %v81_v5 = vld [vmem:[#allocation5] sm:$0xff]  ;;  %s521_s21 = sshll.u32 %s969_s3, 4  ;;  %s533_s23 = sshll.u32 %s970_s22, 4  ;;  %s522_s21 = int_to_ptr.vmem [resolvable:$true] %s521_s21  ;;  %s1096_s23 = int_to_ptr.vmem [resolvable:$true] %s533_s23 }
  0x4c   :  { %v83_v6 = vld [vmem:[#allocation5 + $0x10] sm:$0xff]  ;;  %v630_v7 = vpack.c.bf16 %v229_v4, %v227_v2  ;;  %v226_v9 = vld [vmem:[#allocation7] sm:$0xff]  ;;  %v86_v11 = vld [vmem:[#allocation5 + $0x28] sm:$0xff]  ;;  %s887_s25 = scalar_lea.vmem %s522_s21, 512  ;;  %p892_p5 = scmp.lt.s32.totalorder %s522_s21, %s522_s21 }
  0x4d   :  { %v568_v8 = vpack.c.bf16 %v83_v6, %v81_v5  ;;  %v228_v10 = vld [vmem:[#allocation7 + $0x10] sm:$0xff]  ;;  %567 = vmatprep.subr.bf16.mxu0 %v566_v3  ;;  %v88_v13 = vld [vmem:[#allocation5 + $0x38] sm:$0xff]  ;;  %v231_v14 = vld [vmem:[#allocation7 + $0x28] sm:$0xff]  ;;  %p888_p4 = scmp.ne.s32.totalorder %s522_s21, %s887_s25  ;;  %p893_p6 = scmp.lt.s32.totalorder %s887_s25, %s887_s25 }
  0x4e   :  { %v632_v12 = vpack.c.bf16 %v228_v10, %v226_v9  ;;  %v233_v15 = vld [vmem:[#allocation7 + $0x38] sm:$0xff]  ;;  %631 = vmatprep.subr.bf16.mxu1 %v630_v7  ;;  %v570_v16 = vpack.c.bf16 %v88_v13, %v86_v11  ;;  %v85_v18 = vld [vmem:[#allocation5 + $0x20] sm:$0xff]  ;;  %v87_v19 = vld [vmem:[#allocation5 + $0x30] sm:$0xff] }
  0x4f   :  { %569 = vmatpush1.bf16.msra.mxu0 %v568_v8  ;;  %v634_v17 = vpack.c.bf16 %v233_v15, %v231_v14  ;;  %v230_v20 = vld [vmem:[#allocation7 + $0x20] sm:$0xff]  ;;  %v572_v21 = vpack.c.bf16 %v87_v19, %v85_v18  ;;  %v232_v22 = vld [vmem:[#allocation7 + $0x30] sm:$0xff]  ;;  %v90_v23 = vld [vmem:[#allocation5 + $0x48] sm:$0xff]  ;;  %p894_p7 = por %p893_p6, %p892_p5 }
  0x50   :  { %633 = vmatpush1.bf16.msra.mxu1 %v632_v12  ;;  %v92_v24 = vld [vmem:[#allocation5 + $0x58] sm:$0xff]  ;;  %571 = vmatprep.subr.bf16.mxu0 %v570_v16  ;;  %v636_v25 = vpack.c.bf16 %v232_v22, %v230_v20  ;;  %v235_v27 = vld [vmem:[#allocation7 + $0x48] sm:$0xff]  ;;  %v89_v29 = vld [vmem:[#allocation5 + $0x40] sm:$0xff] }
  0x51   :  { %635 = vmatprep.subr.bf16.mxu1 %v634_v17  ;;  %v574_v26 = vpack.c.bf16 %v92_v24, %v90_v23  ;;  %v237_v28 = vld [vmem:[#allocation7 + $0x58] sm:$0xff]  ;;  %v91_v31 = vld [vmem:[#allocation5 + $0x50] sm:$0xff]  ;;  %v234_v32 = vld [vmem:[#allocation7 + $0x40] sm:$0xff]  ;;  %p895_p8 = pnand %p894_p7, %p888_p4 }
  0x52   :  { %v638_v30 = vpack.c.bf16 %v237_v28, %v235_v27  ;;  %v236_v33 = vld [vmem:[#allocation7 + $0x50] sm:$0xff]  ;;  %v576_v34 = vpack.c.bf16 %v91_v31, %v89_v29  ;;  %v94_v35 = vld [vmem:[#allocation5 + $0x68] sm:$0xff]  ;;  %v96_v36 = vld [vmem:[#allocation5 + $0x78] sm:$0xff] }
  0x53   :  { %573 = vmatpush1.bf16.msra.mxu0 %v572_v21  ;;  %v239_v37 = vld [vmem:[#allocation7 + $0x68] sm:$0xff]  ;;  %v640_v38 = vpack.c.bf16 %v236_v33, %v234_v32  ;;  %v578_v39 = vpack.c.bf16 %v96_v36, %v94_v35  ;;  %v241_v40 = vld [vmem:[#allocation7 + $0x78] sm:$0xff]  ;;  %v93_v41 = vld [vmem:[#allocation5 + $0x60] sm:$0xff] }
  0x54   :  { %637 = vmatpush1.bf16.msra.mxu1 %v636_v25  ;;  %575 = vmatprep.subr.bf16.mxu0 %v574_v26  ;;  %v95_v42 = vld [vmem:[#allocation5 + $0x70] sm:$0xff]  ;;  %v642_v43 = vpack.c.bf16 %v241_v40, %v239_v37  ;;  %v238_v44 = vld [vmem:[#allocation7 + $0x60] sm:$0xff]  ;;  %v98_v46 = vld [vmem:[#allocation5 + $0x88] sm:$0xff] }
  0x55   :  { %639 = vmatprep.subr.bf16.mxu1 %v638_v30  ;;  %v240_v45 = vld [vmem:[#allocation7 + $0x70] sm:$0xff]  ;;  %v100_v47 = vld [vmem:[#allocation5 + $0x98] sm:$0xff]  ;;  %v243_v48 = vld [vmem:[#allocation7 + $0x88] sm:$0xff]  ;;  %v580_v50 = vpack.c.bf16 %v95_v42, %v93_v41 }
  0x56   :  { %v245_v49 = vld [vmem:[#allocation7 + $0x98] sm:$0xff]  ;;  %v644_v51 = vpack.c.bf16 %v240_v45, %v238_v44  ;;  %v582_v52 = vpack.c.bf16 %v100_v47, %v98_v46  ;;  %v97_v53 = vld [vmem:[#allocation5 + $0x80] sm:$0xff]  ;;  %v99_v54 = vld [vmem:[#allocation5 + $0x90] sm:$0xff] }
  0x57   :  { %577 = vmatpush1.bf16.msra.mxu0 %v576_v34  ;;  %v242_v55 = vld [vmem:[#allocation7 + $0x80] sm:$0xff]  ;;  %v646_v56 = vpack.c.bf16 %v245_v49, %v243_v48  ;;  %v244_v57 = vld [vmem:[#allocation7 + $0x90] sm:$0xff]  ;;  %v102_v58 = vld [vmem:[#allocation5 + $0xa8] sm:$0xff]  ;;  %v584_v62 = vpack.c.bf16 %v99_v54, %v97_v53 }
  0x58   :  { %641 = vmatpush1.bf16.msra.mxu1 %v640_v38  ;;  %579 = vmatprep.subr.bf16.mxu0 %v578_v39  ;;  %v104_v59 = vld [vmem:[#allocation5 + $0xb8] sm:$0xff]  ;;  %v247_v60 = vld [vmem:[#allocation7 + $0xa8] sm:$0xff]  ;;  %v648_v63 = vpack.c.bf16 %v244_v57, %v242_v55  ;;  %v101_v1 = vld [vmem:[#allocation5 + $0xa0] sm:$0xff] }
  0x59   :  { %643 = vmatprep.subr.bf16.mxu1 %v642_v43  ;;  %v249_v61 = vld [vmem:[#allocation7 + $0xb8] sm:$0xff]  ;;  %v586_v0 = vpack.c.bf16 %v104_v59, %v102_v58  ;;  %v103_v2 = vld [vmem:[#allocation5 + $0xb0] sm:$0xff]  ;;  %v246_v3 = vld [vmem:[#allocation7 + $0xa0] sm:$0xff] }
  0x5a   :  { %v650_v4 = vpack.c.bf16 %v249_v61, %v247_v60  ;;  %v248_v5 = vld [vmem:[#allocation7 + $0xb0] sm:$0xff]  ;;  %v106_v6 = vld [vmem:[#allocation5 + $0xc8] sm:$0xff]  ;;  %v108_v7 = vld [vmem:[#allocation5 + $0xd8] sm:$0xff]  ;;  %v588_v10 = vpack.c.bf16 %v103_v2, %v101_v1 }
  0x5b   :  { %581 = vmatpush1.bf16.msra.mxu0 %v580_v50  ;;  %v251_v8 = vld [vmem:[#allocation7 + $0xc8] sm:$0xff]  ;;  %v253_v9 = vld [vmem:[#allocation7 + $0xd8] sm:$0xff]  ;;  %v652_v11 = vpack.c.bf16 %v248_v5, %v246_v3  ;;  %v590_v12 = vpack.c.bf16 %v108_v7, %v106_v6  ;;  %v105_v13 = vld [vmem:[#allocation5 + $0xc0] sm:$0xff] }
  0x5c   :  { %645 = vmatpush1.bf16.msra.mxu1 %v644_v51  ;;  %583 = vmatprep.subr.bf16.mxu0 %v582_v52  ;;  %v107_v14 = vld [vmem:[#allocation5 + $0xd0] sm:$0xff]  ;;  %v250_v15 = vld [vmem:[#allocation7 + $0xc0] sm:$0xff]  ;;  %v654_v16 = vpack.c.bf16 %v253_v9, %v251_v8  ;;  %v110_v18 = vld [vmem:[#allocation5 + $0xe8] sm:$0xff] }
  0x5d   :  { %647 = vmatprep.subr.bf16.mxu1 %v646_v56  ;;  %v252_v17 = vld [vmem:[#allocation7 + $0xd0] sm:$0xff]  ;;  %v112_v19 = vld [vmem:[#allocation5 + $0xf8] sm:$0xff]  ;;  %v255_v20 = vld [vmem:[#allocation7 + $0xe8] sm:$0xff]  ;;  %v592_v22 = vpack.c.bf16 %v107_v14, %v105_v13 }
  0x5e   :  { %v257_v21 = vld [vmem:[#allocation7 + $0xf8] sm:$0xff]  ;;  %v656_v23 = vpack.c.bf16 %v252_v17, %v250_v15  ;;  %v594_v24 = vpack.c.bf16 %v112_v19, %v110_v18  ;;  %v109_v25 = vld [vmem:[#allocation5 + $0xe0] sm:$0xff]  ;;  %v111_v26 = vld [vmem:[#allocation5 + $0xf0] sm:$0xff] }
  0x5f   :  { %585 = vmatpush1.bf16.msra.mxu0 %v584_v62  ;;  %v254_v27 = vld [vmem:[#allocation7 + $0xe0] sm:$0xff]  ;;  %v658_v28 = vpack.c.bf16 %v257_v21, %v255_v20  ;;  %v256_v29 = vld [vmem:[#allocation7 + $0xf0] sm:$0xff]  ;;  %v114_v30 = vld [vmem:[#allocation5 + $0x108] sm:$0xff]  ;;  %v596_v34 = vpack.c.bf16 %v111_v26, %v109_v25 }
  0x60   :  { %649 = vmatpush1.bf16.msra.mxu1 %v648_v63  ;;  %587 = vmatprep.subr.bf16.mxu0 %v586_v0  ;;  %v116_v31 = vld [vmem:[#allocation5 + $0x118] sm:$0xff]  ;;  %v259_v32 = vld [vmem:[#allocation7 + $0x108] sm:$0xff]  ;;  %v660_v35 = vpack.c.bf16 %v256_v29, %v254_v27  ;;  %v113_v37 = vld [vmem:[#allocation5 + $0x100] sm:$0xff] }
  0x61   :  { %651 = vmatprep.subr.bf16.mxu1 %v650_v4  ;;  %v261_v33 = vld [vmem:[#allocation7 + $0x118] sm:$0xff]  ;;  %v598_v36 = vpack.c.bf16 %v116_v31, %v114_v30  ;;  %v115_v38 = vld [vmem:[#allocation5 + $0x110] sm:$0xff]  ;;  %v258_v39 = vld [vmem:[#allocation7 + $0x100] sm:$0xff] }
  0x62   :  { %v662_v40 = vpack.c.bf16 %v261_v33, %v259_v32  ;;  %v260_v41 = vld [vmem:[#allocation7 + $0x110] sm:$0xff]  ;;  %v118_v42 = vld [vmem:[#allocation5 + $0x128] sm:$0xff]  ;;  %v120_v43 = vld [vmem:[#allocation5 + $0x138] sm:$0xff]  ;;  %v600_v46 = vpack.c.bf16 %v115_v38, %v113_v37 }
  0x63   :  { %589 = vmatpush1.bf16.msra.mxu0 %v588_v10  ;;  %v263_v44 = vld [vmem:[#allocation7 + $0x128] sm:$0xff]  ;;  %v265_v45 = vld [vmem:[#allocation7 + $0x138] sm:$0xff]  ;;  %v664_v47 = vpack.c.bf16 %v260_v41, %v258_v39  ;;  %v602_v48 = vpack.c.bf16 %v120_v43, %v118_v42  ;;  %v117_v49 = vld [vmem:[#allocation5 + $0x120] sm:$0xff] }
  0x64   :  { %653 = vmatpush1.bf16.msra.mxu1 %v652_v11  ;;  %591 = vmatprep.subr.bf16.mxu0 %v590_v12  ;;  %v119_v50 = vld [vmem:[#allocation5 + $0x130] sm:$0xff]  ;;  %v262_v51 = vld [vmem:[#allocation7 + $0x120] sm:$0xff]  ;;  %v666_v52 = vpack.c.bf16 %v265_v45, %v263_v44  ;;  %v122_v54 = vld [vmem:[#allocation5 + $0x148] sm:$0xff] }
  0x65   :  { %655 = vmatprep.subr.bf16.mxu1 %v654_v16  ;;  %v264_v53 = vld [vmem:[#allocation7 + $0x130] sm:$0xff]  ;;  %v124_v55 = vld [vmem:[#allocation5 + $0x158] sm:$0xff]  ;;  %v267_v56 = vld [vmem:[#allocation7 + $0x148] sm:$0xff]  ;;  %v604_v58 = vpack.c.bf16 %v119_v50, %v117_v49 }
  0x66   :  { %v269_v57 = vld [vmem:[#allocation7 + $0x158] sm:$0xff]  ;;  %v668_v59 = vpack.c.bf16 %v264_v53, %v262_v51  ;;  %v606_v60 = vpack.c.bf16 %v124_v55, %v122_v54  ;;  %v121_v61 = vld [vmem:[#allocation5 + $0x140] sm:$0xff]  ;;  %v123_v62 = vld [vmem:[#allocation5 + $0x150] sm:$0xff] }
  0x67   :  { %593 = vmatpush1.bf16.msra.mxu0 %v592_v22  ;;  %v266_v63 = vld [vmem:[#allocation7 + $0x140] sm:$0xff]  ;;  %v670_v0 = vpack.c.bf16 %v269_v57, %v267_v56  ;;  %v268_v1 = vld [vmem:[#allocation7 + $0x150] sm:$0xff]  ;;  %v126_v2 = vld [vmem:[#allocation5 + $0x168] sm:$0xff]  ;;  %v608_v6 = vpack.c.bf16 %v123_v62, %v121_v61 }
  0x68   :  { %657 = vmatpush1.bf16.msra.mxu1 %v656_v23  ;;  %595 = vmatprep.subr.bf16.mxu0 %v594_v24  ;;  %v128_v3 = vld [vmem:[#allocation5 + $0x178] sm:$0xff]  ;;  %v271_v4 = vld [vmem:[#allocation7 + $0x168] sm:$0xff]  ;;  %v125_v7 = vld [vmem:[#allocation5 + $0x160] sm:$0xff]  ;;  %v672_v8 = vpack.c.bf16 %v268_v1, %v266_v63 }
  0x69   :  { %659 = vmatprep.subr.bf16.mxu1 %v658_v28  ;;  %v273_v5 = vld [vmem:[#allocation7 + $0x178] sm:$0xff]  ;;  %v610_v9 = vpack.c.bf16 %v128_v3, %v126_v2  ;;  %v127_v10 = vld [vmem:[#allocation5 + $0x170] sm:$0xff]  ;;  %v270_v11 = vld [vmem:[#allocation7 + $0x160] sm:$0xff] }
  0x6a   :  { %v272_v12 = vld [vmem:[#allocation7 + $0x170] sm:$0xff]  ;;  %v674_v13 = vpack.c.bf16 %v273_v5, %v271_v4  ;;  %v130_v14 = vld [vmem:[#allocation5 + $0x188] sm:$0xff]  ;;  %v132_v15 = vld [vmem:[#allocation5 + $0x198] sm:$0xff]  ;;  %v612_v19 = vpack.c.bf16 %v127_v10, %v125_v7 }
  0x6b   :  { %597 = vmatpush1.bf16.msra.mxu0 %v596_v34  ;;  %v1081_v16 = vld [vmem:[#allocation2 + $0x8] sm:$0xff]  ;;  %v277_v18 = vld [vmem:[#allocation7 + $0x198] sm:$0xff]  ;;  %v676_v20 = vpack.c.bf16 %v272_v12, %v270_v11  ;;  %v614_v21 = vpack.c.bf16 %v132_v15, %v130_v14  ;;  %v129_v22 = vld [vmem:[#allocation5 + $0x180] sm:$0xff] }
  0x6c   :  { %661 = vmatpush1.bf16.msra.mxu1 %v660_v35  ;;  %599 = vmatprep.subr.bf16.mxu0 %v598_v36  ;;  %v275_v17 = vld [vmem:[#allocation7 + $0x188] sm:$0xff]  ;;  %v131_v23 = vld [vmem:[#allocation5 + $0x190] sm:$0xff]  ;;  %v274_v24 = vld [vmem:[#allocation7 + $0x180] sm:$0xff] }
  0x6d   :  { %663 = vmatprep.subr.bf16.mxu1 %v662_v40  ;;  %209 = vmatprep.mubr.f32.mxu0 %v1081_v16  ;;  %v678_v25 = vpack.c.bf16 %v277_v18, %v275_v17  ;;  %v276_v26 = vld [vmem:[#allocation7 + $0x190] sm:$0xff]  ;;  %v134_v27 = vld [vmem:[#allocation5 + $0x1a8] sm:$0xff]  ;;  %v136_v28 = vld [vmem:[#allocation5 + $0x1b8] sm:$0xff]  ;;  %v616_v31 = vpack.c.bf16 %v131_v23, %v129_v22 }
  0x6e   :  { %354 = vmatprep.mubr.f32.mxu1 %v1081_v16  ;;  %v279_v29 = vld [vmem:[#allocation7 + $0x1a8] sm:$0xff]  ;;  %v281_v30 = vld [vmem:[#allocation7 + $0x1b8] sm:$0xff]  ;;  %v680_v32 = vpack.c.bf16 %v276_v26, %v274_v24  ;;  %v618_v33 = vpack.c.bf16 %v136_v28, %v134_v27  ;;  %v133_v34 = vld [vmem:[#allocation5 + $0x1a0] sm:$0xff] }
  0x6f   :  { %601 = vmatpush1.bf16.msra.mxu0 %v600_v46  ;;  %v135_v35 = vld [vmem:[#allocation5 + $0x1b0] sm:$0xff]  ;;  %v278_v36 = vld [vmem:[#allocation7 + $0x1a0] sm:$0xff]  ;;  %v682_v37 = vpack.c.bf16 %v281_v30, %v279_v29  ;;  %v138_v39 = vld [vmem:[#allocation5 + $0x1c8] sm:$0xff] }
  0x70   :  { %665 = vmatpush1.bf16.msra.mxu1 %v664_v47  ;;  %603 = vmatprep.subr.bf16.mxu0 %v602_v48  ;;  %v280_v38 = vld [vmem:[#allocation7 + $0x1b0] sm:$0xff]  ;;  %v140_v40 = vld [vmem:[#allocation5 + $0x1d8] sm:$0xff]  ;;  %v283_v41 = vld [vmem:[#allocation7 + $0x1c8] sm:$0xff]  ;;  %v620_v43 = vpack.c.bf16 %v135_v35, %v133_v34 }
  0x71   :  { %667 = vmatprep.subr.bf16.mxu1 %v666_v52  ;;  %v285_v42 = vld [vmem:[#allocation7 + $0x1d8] sm:$0xff]  ;;  %v684_v44 = vpack.c.bf16 %v280_v38, %v278_v36  ;;  %v622_v45 = vpack.c.bf16 %v140_v40, %v138_v39  ;;  %v137_v46 = vld [vmem:[#allocation5 + $0x1c0] sm:$0xff]  ;;  %v139_v47 = vld [vmem:[#allocation5 + $0x1d0] sm:$0xff] }
  0x72   :  { %v282_v48 = vld [vmem:[#allocation7 + $0x1c0] sm:$0xff]  ;;  %v686_v49 = vpack.c.bf16 %v285_v42, %v283_v41  ;;  %v284_v50 = vld [vmem:[#allocation7 + $0x1d0] sm:$0xff]  ;;  %v142_v51 = vld [vmem:[#allocation5 + $0x1e8] sm:$0xff]  ;;  %v624_v55 = vpack.c.bf16 %v139_v47, %v137_v46 }
  0x73   :  { %605 = vmatpush1.bf16.msra.mxu0 %v604_v58  ;;  %v144_v52 = vld [vmem:[#allocation5 + $0x1f8] sm:$0xff]  ;;  %v287_v53 = vld [vmem:[#allocation7 + $0x1e8] sm:$0xff]  ;;  %v688_v56 = vpack.c.bf16 %v284_v50, %v282_v48  ;;  %v141_v58 = vld [vmem:[#allocation5 + $0x1e0] sm:$0xff] }
  0x74   :  { %669 = vmatpush1.bf16.msra.mxu1 %v668_v59  ;;  %607 = vmatprep.subr.bf16.mxu0 %v606_v60  ;;  %v289_v54 = vld [vmem:[#allocation7 + $0x1f8] sm:$0xff]  ;;  %v626_v57 = vpack.c.bf16 %v144_v52, %v142_v51  ;;  %v143_v59 = vld [vmem:[#allocation5 + $0x1f0] sm:$0xff]  ;;  %v286_v60 = vld [vmem:[#allocation7 + $0x1e0] sm:$0xff] }
  0x75   :  { %671 = vmatprep.subr.bf16.mxu1 %v670_v0  ;;  %v690_v61 = vpack.c.bf16 %v289_v54, %v287_v53  ;;  %v288_v62 = vld [vmem:[#allocation7 + $0x1f0] sm:$0xff]  ;;  %v372_v63 = vld [vmem:[#allocation8 + $0x8] sm:$0xff]  ;;  %v374_v0 = vld [vmem:[#allocation8 + $0x18] sm:$0xff]  ;;  %v628_v1 = vpack.c.bf16 %v143_v59, %v141_v58 }
  0x76   :  { %v692_v2 = vpack.c.bf16 %v288_v62, %v286_v60  ;;  %v694_v3 = vpack.c.bf16 %v374_v0, %v372_v63  ;;  %v371_v4 = vld [vmem:[#allocation8] sm:$0xff]  ;;  %v373_v5 = vld [vmem:[#allocation8 + $0x10] sm:$0xff]  ;;  %v378_v7 = vld [vmem:[#allocation8 + $0x38] sm:$0xff] }
  0x77   :  { %609 = vmatpush1.bf16.msra.mxu0 %v608_v6  ;;  %v376_v6 = vld [vmem:[#allocation8 + $0x28] sm:$0xff]  ;;  %v375_v11 = vld [vmem:[#allocation8 + $0x20] sm:$0xff]  ;;  %v377_v12 = vld [vmem:[#allocation8 + $0x30] sm:$0xff] }
  0x78   :  { %673 = vmatpush1.bf16.msra.mxu1 %v672_v8  ;;  %611 = vmatprep.subr.bf16.mxu0 %v610_v9  ;;  %v1085_v8 = vld [vmem:[#allocation2] sm:$0xff]  ;;  %v696_v9 = vpack.c.bf16 %v373_v5, %v371_v4  ;;  %v698_v10 = vpack.c.bf16 %v378_v7, %v376_v6  ;;  %v382_v14 = vld [vmem:[#allocation8 + $0x58] sm:$0xff]  ;;  %v700_v17 = vpack.c.bf16 %v377_v12, %v375_v11  ;;  %v1089_v18 = vld [vmem:[#allocation2 + $0x10] sm:$0xff] }
  0x79   :  { %675 = vmatprep.subr.bf16.mxu1 %v674_v13  ;;  %v380_v13 = vld [vmem:[#allocation8 + $0x48] sm:$0xff]  ;;  %v80_v15 = vld [vmem:[#allocation2 + $0x18] sm:$0xff]  ;;  %v383_v26 = vld [vmem:[#allocation8 + $0x60] sm:$0xff] }
  0x7a   :  { %v384_v22 = vld [vmem:[#allocation8 + $0x68] sm:$0xff]  ;;  %v386_v23 = vld [vmem:[#allocation8 + $0x78] sm:$0xff]  ;;  %v385_v27 = vld [vmem:[#allocation8 + $0x70] sm:$0xff] }
  0x7b   :  { %613 = vmatpush1.bf16.msra.mxu0 %v612_v19  ;;  %v702_v19 = vpack.c.bf16 %v382_v14, %v380_v13  ;;  %v388_v28 = vld [vmem:[#allocation8 + $0x88] sm:$0xff]  ;;  %v390_v29 = vld [vmem:[#allocation8 + $0x98] sm:$0xff]  ;;  %v708_v30 = vpack.c.bf16 %v385_v27, %v383_v26  ;;  %v391_v38 = vld [vmem:[#allocation8 + $0xa0] sm:$0xff] }
  0x7c   :  { %677 = vmatpush1.bf16.msra.mxu1 %v676_v20  ;;  %615 = vmatprep.subr.bf16.mxu0 %v614_v21  ;;  %v379_v20 = vld [vmem:[#allocation8 + $0x40] sm:$0xff]  ;;  %v381_v21 = vld [vmem:[#allocation8 + $0x50] sm:$0xff]  ;;  %v392_v34 = vld [vmem:[#allocation8 + $0xa8] sm:$0xff] }
  0x7d   :  { %679 = vmatprep.subr.bf16.mxu1 %v678_v25  ;;  %v704_v24 = vpack.c.bf16 %v381_v21, %v379_v20  ;;  %v706_v25 = vpack.c.bf16 %v386_v23, %v384_v22  ;;  %v394_v35 = vld [vmem:[#allocation8 + $0xb8] sm:$0xff]  ;;  %v393_v39 = vld [vmem:[#allocation8 + $0xb0] sm:$0xff]  ;;  %v404_v51 = vld [vmem:[#allocation8 + $0x108] sm:$0xff] }
  0x7e   :  { %v398_v40 = vld [vmem:[#allocation8 + $0xd8] sm:$0xff]  ;;  %v716_v41 = vpack.c.bf16 %v393_v39, %v391_v38  ;;  %v401_v50 = vld [vmem:[#allocation8 + $0xf0] sm:$0xff]  ;;  %v412_v63 = vld [vmem:[#allocation8 + $0x148] sm:$0xff] }
  0x7f   :  { %617 = vmatpush1.bf16.msra.mxu0 %v616_v31  ;;  %v710_v31 = vpack.c.bf16 %v390_v29, %v388_v28  ;;  %v402_v46 = vld [vmem:[#allocation8 + $0xf8] sm:$0xff]  ;;  %v409_v62 = vld [vmem:[#allocation8 + $0x130] sm:$0xff]  ;;  %v416_v5 = vld [vmem:[#allocation8 + $0x168] sm:$0xff] }
  0x80   :  { %681 = vmatpush1.bf16.msra.mxu1 %v680_v32  ;;  %619 = vmatprep.subr.bf16.mxu0 %v618_v33  ;;  %v387_v32 = vld [vmem:[#allocation8 + $0x80] sm:$0xff]  ;;  %v389_v33 = vld [vmem:[#allocation8 + $0x90] sm:$0xff]  ;;  %v406_v52 = vld [vmem:[#allocation8 + $0x118] sm:$0xff] }
  0x81   :  { %683 = vmatprep.subr.bf16.mxu1 %v682_v37  ;;  %v712_v36 = vpack.c.bf16 %v389_v33, %v387_v32  ;;  %v714_v37 = vpack.c.bf16 %v394_v35, %v392_v34  ;;  %v726_v54 = vpack.c.bf16 %v406_v52, %v404_v51  ;;  %v410_v58 = vld [vmem:[#allocation8 + $0x138] sm:$0xff]  ;;  %v413_v4 = vld [vmem:[#allocation8 + $0x150] sm:$0xff]  ;;  %v420_v12 = vld [vmem:[#allocation8 + $0x188] sm:$0xff] }
  0x82   :  { %v414_v0 = vld [vmem:[#allocation8 + $0x158] sm:$0xff]  ;;  %v417_v11 = vld [vmem:[#allocation8 + $0x170] sm:$0xff]  ;;  %v424_v20 = vld [vmem:[#allocation8 + $0x1a8] sm:$0xff] }
  0x83   :  { %621 = vmatpush1.bf16.msra.mxu0 %v620_v43  ;;  %v395_v43 = vld [vmem:[#allocation8 + $0xc0] sm:$0xff]  ;;  %v418_v6 = vld [vmem:[#allocation8 + $0x178] sm:$0xff]  ;;  %v428_v26 = vld [vmem:[#allocation8 + $0x1c8] sm:$0xff] }
  0x84   :  { %685 = vmatpush1.bf16.msra.mxu1 %v684_v44  ;;  %623 = vmatprep.subr.bf16.mxu0 %v622_v45  ;;  %v397_v44 = vld [vmem:[#allocation8 + $0xd0] sm:$0xff]  ;;  %v400_v45 = vld [vmem:[#allocation8 + $0xe8] sm:$0xff]  ;;  %v422_v13 = vld [vmem:[#allocation8 + $0x198] sm:$0xff] }
  0x85   :  { %687 = vmatprep.subr.bf16.mxu1 %v686_v49  ;;  %v720_v47 = vpack.c.bf16 %v397_v44, %v395_v43  ;;  %v722_v48 = vpack.c.bf16 %v402_v46, %v400_v45  ;;  %v399_v49 = vld [vmem:[#allocation8 + $0xe0] sm:$0xff]  ;;  %v426_v21 = vld [vmem:[#allocation8 + $0x1b8] sm:$0xff]  ;;  %v432_v32 = vld [vmem:[#allocation8 + $0x1e8] sm:$0xff] }
  0x86   :  { %v724_v53 = vpack.c.bf16 %v401_v50, %v399_v49  ;;  %v746_v23 = vpack.c.bf16 %v426_v21, %v424_v20  ;;  %v430_v27 = vld [vmem:[#allocation8 + $0x1d8] sm:$0xff] }
  0x87   :  { %625 = vmatpush1.bf16.msra.mxu0 %v624_v55  ;;  %v403_v55 = vld [vmem:[#allocation8 + $0x100] sm:$0xff]  ;;  %v750_v29 = vpack.c.bf16 %v430_v27, %v428_v26  ;;  %v434_v33 = vld [vmem:[#allocation8 + $0x1f8] sm:$0xff] }
  0x88   :  { %689 = vmatpush1.bf16.msra.mxu1 %v688_v56  ;;  %627 = vmatprep.subr.bf16.mxu0 %v626_v57  ;;  %v405_v56 = vld [vmem:[#allocation8 + $0x110] sm:$0xff]  ;;  %v408_v57 = vld [vmem:[#allocation8 + $0x128] sm:$0xff]  ;;  %v754_v35 = vpack.c.bf16 %v434_v33, %v432_v32 }
  0x89   :  { %691 = vmatprep.subr.bf16.mxu1 %v690_v61  ;;  %v728_v59 = vpack.c.bf16 %v405_v56, %v403_v55  ;;  %v730_v60 = vpack.c.bf16 %v410_v58, %v408_v57  ;;  %v407_v61 = vld [vmem:[#allocation8 + $0x120] sm:$0xff] }
  0x8b   :  { %629 = vmatpush1.bf16.msra.mxu0 %v628_v1  ;;  %v732_v1 = vpack.c.bf16 %v409_v62, %v407_v61 }
  0x8c   :  { %693 = vmatpush1.bf16.msra.mxu1 %v692_v2  ;;  %695 = vmatprep.subr.bf16.mxu0 %v694_v3  ;;  %v734_v2 = vpack.c.bf16 %v414_v0, %v412_v63 }
  0x8d   :  { %758 = vmatprep.subr.bf16.mxu1 %v694_v3  ;;  %v411_v3 = vld [vmem:[#allocation8 + $0x140] sm:$0xff] }
  0x8e   :  { %210 = vmatmul.mubr.f32.vlgmr.msra.gmra.mrb[0].mxu0 %v1085_v8  ;;  %v736_v7 = vpack.c.bf16 %v413_v4, %v411_v3 }
  0x8f   :  { %355 = vmatmul.mubr.f32.vlgmr.msra.gmra.mrb[0].mxu1 %v1085_v8  ;;  %697 = vmatpush1.bf16.msra.mxu0 %v696_v9 }
  0x90   :  { %774 = vmatpush1.bf16.msra.mxu1 %v696_v9  ;;  %699 = vmatprep.subr.bf16.mxu0 %v698_v10  ;;  %v738_v9 = vpack.c.bf16 %v418_v6, %v416_v5 }
  0x91   :  { %759 = vmatprep.subr.bf16.mxu1 %v698_v10  ;;  %215 = vmatprep.mubr.f32.mxu0 %v80_v15  ;;  %v415_v10 = vld [vmem:[#allocation8 + $0x160] sm:$0xff] }
  0x92   :  { %360 = vmatprep.mubr.f32.mxu1 %v80_v15  ;;  %216 = vmatmul.mubr.f32.gmra.mrb[2].mxu0 %v1089_v18  ;;  %v740_v14 = vpack.c.bf16 %v417_v11, %v415_v10 }
  0x93   :  { %701 = vmatpush1.bf16.msra.mxu0 %v700_v17  ;;  %361 = vmatmul.mubr.f32.gmra.mrb[2].mxu1 %v1089_v18 }
  0x94   :  { %775 = vmatpush1.bf16.msra.mxu1 %v700_v17  ;;  %703 = vmatprep.subr.bf16.mxu0 %v702_v19  ;;  %v419_v17 = vld [vmem:[#allocation8 + $0x180] sm:$0xff] }
  0x95   :  { %760 = vmatprep.subr.bf16.mxu1 %v702_v19  ;;  %499 = vmatprep.mubr.f32.mxu0 %v1081_v16  ;;  %v396_v16 = vld [vmem:[#allocation8 + $0xc8] sm:$0xff]  ;;  %v421_v19 = vld [vmem:[#allocation8 + $0x190] sm:$0xff] }
  0x96   :  { %505 = vmatprep.mubr.f32.mxu1 %v80_v15  ;;  %v718_v42 = vpack.c.bf16 %v398_v40, %v396_v16  ;;  %v742_v15 = vpack.c.bf16 %v422_v13, %v420_v12  ;;  %v744_v22 = vpack.c.bf16 %v421_v19, %v419_v17 }
  0x97   :  { %705 = vmatpush1.bf16.msra.mxu0 %v704_v24 }
  0x98   :  { %776 = vmatpush1.bf16.msra.mxu1 %v704_v24  ;;  %707 = vmatprep.subr.bf16.mxu0 %v706_v25  ;;  %v423_v24 = vld [vmem:[#allocation8 + $0x1a0] sm:$0xff] }
  0x99   :  { %761 = vmatprep.subr.bf16.mxu1 %v706_v25  ;;  %v425_v25 = vld [vmem:[#allocation8 + $0x1b0] sm:$0xff] }
  0x9a   :  { %v748_v28 = vpack.c.bf16 %v425_v25, %v423_v24 }
  0x9b   :  { %709 = vmatpush1.bf16.msra.mxu0 %v708_v30 }
  0x9c   :  { %777 = vmatpush1.bf16.msra.mxu1 %v708_v30  ;;  %711 = vmatprep.subr.bf16.mxu0 %v710_v31  ;;  %v427_v30 = vld [vmem:[#allocation8 + $0x1c0] sm:$0xff] }
  0x9d   :  { %762 = vmatprep.subr.bf16.mxu1 %v710_v31  ;;  %v429_v31 = vld [vmem:[#allocation8 + $0x1d0] sm:$0xff] }
  0x9e   :  { %v752_v34 = vpack.c.bf16 %v429_v31, %v427_v30 }
  0x9f   :  { %713 = vmatpush1.bf16.msra.mxu0 %v712_v36 }
  0xa0   :  { %778 = vmatpush1.bf16.msra.mxu1 %v712_v36  ;;  %715 = vmatprep.subr.bf16.mxu0 %v714_v37  ;;  %v431_v36 = vld [vmem:[#allocation8 + $0x1e0] sm:$0xff] }
  0xa1   :  { %763 = vmatprep.subr.bf16.mxu1 %v714_v37  ;;  %v433_v37 = vld [vmem:[#allocation8 + $0x1f0] sm:$0xff] }
  0xa2   :  { %v756_v38 = vpack.c.bf16 %v433_v37, %v431_v36 }
  0xa3   :  { %717 = vmatpush1.bf16.msra.mxu0 %v716_v41 }
  0xa4   :  { %779 = vmatpush1.bf16.msra.mxu1 %v716_v41  ;;  %719 = vmatprep.subr.bf16.mxu0 %v718_v42 }
  0xa5   :  { %764 = vmatprep.subr.bf16.mxu1 %v718_v42 }
  0xa7   :  { %721 = vmatpush1.bf16.msra.mxu0 %v720_v47 }
  0xa8   :  { %780 = vmatpush1.bf16.msra.mxu1 %v720_v47  ;;  %723 = vmatprep.subr.bf16.mxu0 %v722_v48 }
  0xa9   :  { %765 = vmatprep.subr.bf16.mxu1 %v722_v48 }
  0xab   :  { %725 = vmatpush1.bf16.msra.mxu0 %v724_v53 }
  0xac   :  { %781 = vmatpush1.bf16.msra.mxu1 %v724_v53  ;;  %727 = vmatprep.subr.bf16.mxu0 %v726_v54 }
  0xad   :  { %766 = vmatprep.subr.bf16.mxu1 %v726_v54 }
  0xaf   :  { %729 = vmatpush1.bf16.msra.mxu0 %v728_v59 }
  0xb0   :  { %782 = vmatpush1.bf16.msra.mxu1 %v728_v59  ;;  %731 = vmatprep.subr.bf16.mxu0 %v730_v60 }
  0xb1   :  { %767 = vmatprep.subr.bf16.mxu1 %v730_v60 }
  0xb3   :  { %733 = vmatpush1.bf16.msra.mxu0 %v732_v1 }
  0xb4   :  { %783 = vmatpush1.bf16.msra.mxu1 %v732_v1  ;;  %735 = vmatprep.subr.bf16.mxu0 %v734_v2 }
  0xb5   :  { %768 = vmatprep.subr.bf16.mxu1 %v734_v2 }
  0xb7   :  { %737 = vmatpush1.bf16.msra.mxu0 %v736_v7 }
  0xb8   :  { %784 = vmatpush1.bf16.msra.mxu1 %v736_v7  ;;  %739 = vmatprep.subr.bf16.mxu0 %v738_v9 }
  0xb9   :  { %769 = vmatprep.subr.bf16.mxu1 %v738_v9 }
  0xbb   :  { %741 = vmatpush1.bf16.msra.mxu0 %v740_v14 }
  0xbc   :  { %785 = vmatpush1.bf16.msra.mxu1 %v740_v14  ;;  %743 = vmatprep.subr.bf16.mxu0 %v742_v15 }
  0xbd   :  { %770 = vmatprep.subr.bf16.mxu1 %v742_v15 }
  0xbf   :  { %745 = vmatpush1.bf16.msra.mxu0 %v744_v22 }
  0xc0   :  { %786 = vmatpush1.bf16.msra.mxu1 %v744_v22  ;;  %747 = vmatprep.subr.bf16.mxu0 %v746_v23 }
  0xc1   :  { %771 = vmatprep.subr.bf16.mxu1 %v746_v23 }
  0xc3   :  { %749 = vmatpush1.bf16.msra.mxu0 %v748_v28 }
  0xc4   :  { %787 = vmatpush1.bf16.msra.mxu1 %v748_v28  ;;  %751 = vmatprep.subr.bf16.mxu0 %v750_v29 }
  0xc5   :  { %772 = vmatprep.subr.bf16.mxu1 %v750_v29 }
  0xc7   :  { %753 = vmatpush1.bf16.msra.mxu0 %v752_v34 }
  0xc8   :  { %788 = vmatpush1.bf16.msra.mxu1 %v752_v34  ;;  %755 = vmatprep.subr.bf16.mxu0 %v754_v35 }
  0xc9   :  { %773 = vmatprep.subr.bf16.mxu1 %v754_v35 }
  0xcb   :  { %757 = vmatpush1.bf16.msra.mxu0 %v756_v38 }
  0xcc   :  { %789 = vmatpush1.bf16.msra.mxu1 %v756_v38 }
  0xce   :  { %500 = vmatmul.mubr.f32.vlgmr.msra.gmra.mrb[4].mxu0 %v1085_v8 }
  0xcf   :  { %506 = vmatmul.mubr.f32.vlgmr.msra.gmra.mrb[4].mxu1 %v1089_v18 }
 0x161   :  { %v211_v39 = vpop.f32.mrb[0].mxu0 }
 0x162   :  { %222 = vst [vmem:[#allocation10] sm:$0xff] %v211_v39  ;;  %v356_v16 = vpop.f32.mrb[0].mxu1  ;;  %v213_v40 = vpop.f32.mrb[1].mxu0 }
 0x163   :  { %367 = vst [vmem:[#allocation11] sm:$0xff] %v356_v16  ;;  %223 = vst [vmem:[#allocation10 + $0x8] sm:$0xff] %v213_v40  ;;  %v358_v41 = vpop.f32.mrb[1].mxu1 }
 0x164   :  { %368 = vst [vmem:[#allocation11 + $0x8] sm:$0xff] %v358_v41 }
 0x165   :  { %v217_v42 = vpop.f32.mrb[2].mxu0 }
 0x166   :  { %224 = vst [vmem:[#allocation10 + $0x10] sm:$0xff] %v217_v42  ;;  %v362_v43 = vpop.f32.mrb[2].mxu1  ;;  %v219_v44 = vpop.f32.mrb[3].mxu0 }
 0x167   :  { %369 = vst [vmem:[#allocation11 + $0x10] sm:$0xff] %v362_v43  ;;  %225 = vst [vmem:[#allocation10 + $0x18] sm:$0xff] %v219_v44  ;;  %v364_v8 = vpop.f32.mrb[3].mxu1 }
 0x168   :  { %370 = vst [vmem:[#allocation11 + $0x18] sm:$0xff] %v364_v8 }
 0x169   :  { %898 = shalt.err (!%p895_p8)
}
 0x16a   :  { %s899_s28 = scalar_lea.hbm %s1152_s4, 512 }
 0x16b   :  { %p900_p9 = scmp.ne.s32.totalorder %s1152_s4, %s899_s28  ;;  %p903_p10 = scmp.lt.u32.totalorder %s899_s28, %s1152_s4 }
 0x16d   :  { %p905_p11 = pnand %p903_p10, %p900_p9 }
 0x16f   :  { %908 = shalt.err (!%p905_p11)
}
 0x170   :  { %527 = dma.vmem_to_hbm [thread:$0]  %s522_s21, 512, %s1152_s4, [#allocation4], %s965_s9, %s965_s9, %s966_s10  }
 0x171   :  { %s909_s24 = scalar_lea.vmem %s1096_s23, 512  ;;  %p914_p13 = scmp.lt.s32.totalorder %s1096_s23, %s1096_s23 }
 0x172   :  { %p910_p12 = scmp.ne.s32.totalorder %s1096_s23, %s909_s24  ;;  %p915_p0 = scmp.lt.s32.totalorder %s909_s24, %s909_s24 }
 0x174   :  { %p916_p1 = por %p915_p0, %p914_p13 }
 0x176   :  { %p917_p2 = pnand %p916_p1, %p910_p12 }
 0x178   :  { %920 = shalt.err (!%p917_p2)
}
 0x179   :  { %s921_s14 = scalar_lea.hbm %s1153_s5, 512 }
 0x17a   :  { %p922_p3 = scmp.ne.s32.totalorder %s1153_s5, %s921_s14  ;;  %p925_p4 = scmp.lt.u32.totalorder %s921_s14, %s1153_s5 }
 0x17c   :  { %p927_p5 = pnand %p925_p4, %p922_p3 }
 0x17e   :  { %930 = shalt.err (!%p927_p5)
}
 0x17f   :  { %539 = dma.vmem_to_hbm [thread:$0]  %s1096_s23, 512, %s1153_s5, [#allocation12], %s965_s9, %s965_s9, %s966_s10  }
 0x180   :  { %s971_s20 = smov [#allocation13]  }
 0x181   :  { %s545_s2 = sshll.u32 %s971_s20, 4  ;;  %s546_s2 = int_to_ptr.vmem [resolvable:$true] %s545_s2 }
 0x182   :  { %s931_s1 = scalar_lea.vmem %s546_s2, 512  ;;  %p936_p7 = scmp.lt.s32.totalorder %s546_s2, %s546_s2 }
 0x183   :  { %p932_p6 = scmp.ne.s32.totalorder %s546_s2, %s931_s1  ;;  %p937_p8 = scmp.lt.s32.totalorder %s931_s1, %s931_s1 }
 0x185   :  { %p938_p9 = por %p937_p8, %p936_p7 }
 0x187   :  { %p939_p10 = pnand %p938_p9, %p932_p6 }
 0x1a1   :  { %v501_v18 = vpop.f32.mrb[4].mxu0 }
 0x1a2   :  { %512 = vst [vmem:[#allocation13] sm:$0xff] %v501_v18  ;;  %v507_v45 = vpop.f32.mrb[4].mxu1  ;;  %v503_v46 = vpop.f32.mrb[5].mxu0 }
 0x1a3   :  { %514 = vst [vmem:[#allocation13 + $0x10] sm:$0xff] %v507_v45  ;;  %513 = vst [vmem:[#allocation13 + $0x8] sm:$0xff] %v503_v46  ;;  %v509_v47 = vpop.f32.mrb[5].mxu1 }
 0x1a4   :  { %515 = vst [vmem:[#allocation13 + $0x18] sm:$0xff] %v509_v47 }
 0x1a5   :  { %942 = shalt.err (!%p939_p10)
}
 0x1a6   :  { %s943_s21 = scalar_lea.hbm %s1154_s6, 512 }
 0x1a7   :  { %p944_p11 = scmp.ne.s32.totalorder %s1154_s6, %s943_s21  ;;  %p947_p12 = scmp.lt.u32.totalorder %s943_s21, %s1154_s6 }
 0x1a9   :  { %p949_p13 = pnand %p947_p12, %p944_p11 }
 0x1ab   :  { %952 = shalt.err (!%p949_p13)
}
 0x1ac   :  { %551 = dma.vmem_to_hbm [thread:$0]  %s546_s2, 512, %s1154_s6, [#allocation12], %s965_s9, %s965_s9, %s966_s10  }
 0x1ad   :  { %959 = dma.done.wait [#allocation4], 512  }
 0x1ae   :  { %960 = vsyncadd [#allocation4], 4294966784 }
 0x1af   :  { %961 = dma.done.wait [#allocation12], 1024  }
 0x1b0   :  { %962 = vsyncadd [#allocation12], 4294966272 }
 0x1b1   :  { %561 = vsyncpa [#allocation3], 1 }
 0x1b2   :  { %562 = vsyncpa [#allocation6], 1 }
 0x1b3   :  { %563 = vsyncpa [#allocation9], 1 }
 0x1b4   :  { %564 = vsyncpa [#allocation4], 1 }
 0x1b5   :  { %565 = vsyncpa [#allocation12], 1 }

// kernel: decoder_block.11
= control target key start
LH: loop header
LB: loop body
LE: loop exit
PB: predicated region body
PF: predicated region fallthrough
CT: control target
= control target key end

     0   :  { %7 = vsyncpa [#allocation3], 0  ;;  %s445_s0 = inlined_call_operand.hbm [shape: f32[16,256], index: 0, kind: input, shape index: {}]   ;;  %s446_s1 = inlined_call_operand.hbm [shape: f32[256,256], index: 1, kind: input, shape index: {}]   ;;  %s447_s2 = inlined_call_operand.hbm [shape: f32[16,256], index: 2, kind: output, shape index: {}]  }
   0x1   :  { %8 = vsyncpa [#allocation6], 0 }
   0x2   :  { %9 = vsyncpa [#allocation4], 0  ;;  %s380_s9 = smov [#allocation2]   ;;  %s308_s13 = scalar_lea.hbm %s445_s0, 512 }
   0x3   :  { %s15_s10 = sshll.u32 %s380_s9, 4  ;;  %p309_p0 = scmp.ne.s32.totalorder %s445_s0, %s308_s13  ;;  %s16_s10 = int_to_ptr.vmem [resolvable:$true] %s15_s10 }
   0x4   :  { %p312_p1 = scmp.lt.u32.totalorder %s308_s13, %s445_s0 }
   0x6   :  { %p314_p2 = pnand %p312_p1, %p309_p0 }
   0x8   :  { %317 = shalt.err (!%p314_p2)
}
   0x9   :  { %s318_s18 = scalar_lea.vmem %s16_s10, 512  ;;  %p323_p4 = scmp.lt.s32.totalorder %s16_s10, %s16_s10 }
   0xa   :  { %p319_p3 = scmp.ne.s32.totalorder %s16_s10, %s318_s18  ;;  %p324_p5 = scmp.lt.s32.totalorder %s318_s18, %s318_s18 }
   0xc   :  { %p325_p6 = por %p324_p5, %p323_p4 }
   0xe   :  { %p326_p7 = pnand %p325_p6, %p319_p3 }
  0x10   :  { %329 = shalt.err (!%p326_p7)
}
  0x11   :  { %s381_s19 = smov 256   ;;  %s382_s20 = smov 16  }
  0x12   :  { %21 = dma.hbm_to_vmem [thread:$0]  %s445_s0, 512, %s16_s10, [#allocation3], %s381_s19, %s381_s19, %s382_s20  }
  0x13   :  { %s383_s23 = smov [#allocation5]   ;;  %s330_s27 = scalar_lea.hbm %s446_s1, 8192 }
  0x14   :  { %s27_s24 = sshll.u32 %s383_s23, 4  ;;  %p331_p8 = scmp.ne.s32.totalorder %s446_s1, %s330_s27  ;;  %s28_s24 = int_to_ptr.vmem [resolvable:$true] %s27_s24 }
  0x15   :  { %p334_p9 = scmp.lt.u32.totalorder %s330_s27, %s446_s1 }
  0x17   :  { %p336_p10 = pnand %p334_p9, %p331_p8 }
  0x19   :  { %339 = shalt.err (!%p336_p10)
}
  0x1a   :  { %s340_s4 = scalar_lea.vmem %s28_s24, 8192  ;;  %p345_p12 = scmp.lt.s32.totalorder %s28_s24, %s28_s24 }
  0x1b   :  { %p341_p11 = scmp.ne.s32.totalorder %s28_s24, %s340_s4  ;;  %p346_p13 = scmp.lt.s32.totalorder %s340_s4, %s340_s4 }
  0x1d   :  { %p347_p0 = por %p346_p13, %p345_p12 }
  0x1f   :  { %p348_p1 = pnand %p347_p0, %p341_p11 }
  0x21   :  { %351 = shalt.err (!%p348_p1)
}
  0x22   :  { %33 = dma.hbm_to_vmem [thread:$0]  %s446_s1, 8192, %s28_s24, [#allocation6], %s381_s19, %s381_s19, %s382_s20  }
  0x23   :  { %374 = dma.done.wait [#allocation3], 512  }
  0x24   :  { %375 = vsyncadd [#allocation3], 4294966784 }
  0x25   :  { %376 = dma.done.wait [#allocation6], 8192  }
  0x26   :  { %377 = vsyncadd [#allocation6], 4294959104  ;;  %v45_v0 = vld [vmem:[#allocation5 + $0x8] sm:$0xff]  ;;  %v47_v1 = vld [vmem:[#allocation5 + $0x18] sm:$0xff]  ;;  %s384_s1 = smov [#allocation7]  }
  0x27   :  { %v44_v2 = vld [vmem:[#allocation5] sm:$0xff]  ;;  %v207_v3 = vpack.c.bf16 %v47_v1, %v45_v0  ;;  %v46_v4 = vld [vmem:[#allocation5 + $0x10] sm:$0xff]  ;;  %v49_v5 = vld [vmem:[#allocation5 + $0x28] sm:$0xff]  ;;  %s194_s6 = sshll.u32 %s384_s1, 4  ;;  %s195_s6 = int_to_ptr.vmem [resolvable:$true] %s194_s6 }
  0x28   :  { %v51_v6 = vld [vmem:[#allocation5 + $0x38] sm:$0xff]  ;;  %v209_v7 = vpack.c.bf16 %v46_v4, %v44_v2  ;;  %v48_v9 = vld [vmem:[#allocation5 + $0x20] sm:$0xff]  ;;  %v50_v10 = vld [vmem:[#allocation5 + $0x30] sm:$0xff]  ;;  %s352_s7 = scalar_lea.vmem %s195_s6, 512  ;;  %p357_p3 = scmp.lt.s32.totalorder %s195_s6, %s195_s6 }
  0x29   :  { %v211_v8 = vpack.c.bf16 %v51_v6, %v49_v5  ;;  %v53_v11 = vld [vmem:[#allocation5 + $0x48] sm:$0xff]  ;;  %208 = vmatprep.subr.bf16.mxu0 %v207_v3  ;;  %271 = vmatprep.subr.bf16.mxu1 %v207_v3  ;;  %v55_v12 = vld [vmem:[#allocation5 + $0x58] sm:$0xff]  ;;  %v213_v13 = vpack.c.bf16 %v50_v10, %v48_v9  ;;  %v52_v15 = vld [vmem:[#allocation5 + $0x40] sm:$0xff]  ;;  %p353_p2 = scmp.ne.s32.totalorder %s195_s6, %s352_s7  ;;  %p358_p4 = scmp.lt.s32.totalorder %s352_s7, %s352_s7 }
  0x2a   :  { %210 = vmatpush1.bf16.msra.mxu0 %v209_v7  ;;  %287 = vmatpush1.bf16.msra.mxu1 %v209_v7  ;;  %v215_v14 = vpack.c.bf16 %v55_v12, %v53_v11  ;;  %v54_v16 = vld [vmem:[#allocation5 + $0x50] sm:$0xff]  ;;  %v57_v17 = vld [vmem:[#allocation5 + $0x68] sm:$0xff]  ;;  %v59_v18 = vld [vmem:[#allocation5 + $0x78] sm:$0xff] }
  0x2b   :  { %212 = vmatprep.subr.bf16.mxu0 %v211_v8  ;;  %272 = vmatprep.subr.bf16.mxu1 %v211_v8  ;;  %v217_v19 = vpack.c.bf16 %v54_v16, %v52_v15  ;;  %v219_v20 = vpack.c.bf16 %v59_v18, %v57_v17  ;;  %v56_v21 = vld [vmem:[#allocation5 + $0x60] sm:$0xff]  ;;  %v58_v22 = vld [vmem:[#allocation5 + $0x70] sm:$0xff]  ;;  %v61_v23 = vld [vmem:[#allocation5 + $0x88] sm:$0xff]  ;;  %p359_p5 = por %p358_p4, %p357_p3 }
  0x2c   :  { %v63_v24 = vld [vmem:[#allocation5 + $0x98] sm:$0xff]  ;;  %v221_v25 = vpack.c.bf16 %v58_v22, %v56_v21  ;;  %v60_v27 = vld [vmem:[#allocation5 + $0x80] sm:$0xff]  ;;  %v62_v28 = vld [vmem:[#allocation5 + $0x90] sm:$0xff] }
  0x2d   :  { %v223_v26 = vpack.c.bf16 %v63_v24, %v61_v23  ;;  %v65_v29 = vld [vmem:[#allocation5 + $0xa8] sm:$0xff]  ;;  %v67_v30 = vld [vmem:[#allocation5 + $0xb8] sm:$0xff]  ;;  %v225_v31 = vpack.c.bf16 %v62_v28, %v60_v27  ;;  %v64_v33 = vld [vmem:[#allocation5 + $0xa0] sm:$0xff]  ;;  %p360_p6 = pnand %p359_p5, %p353_p2 }
  0x2e   :  { %214 = vmatpush1.bf16.msra.mxu0 %v213_v13  ;;  %288 = vmatpush1.bf16.msra.mxu1 %v213_v13  ;;  %v227_v32 = vpack.c.bf16 %v67_v30, %v65_v29  ;;  %v66_v34 = vld [vmem:[#allocation5 + $0xb0] sm:$0xff]  ;;  %v69_v35 = vld [vmem:[#allocation5 + $0xc8] sm:$0xff]  ;;  %v71_v36 = vld [vmem:[#allocation5 + $0xd8] sm:$0xff] }
  0x2f   :  { %216 = vmatprep.subr.bf16.mxu0 %v215_v14  ;;  %273 = vmatprep.subr.bf16.mxu1 %v215_v14  ;;  %v229_v37 = vpack.c.bf16 %v66_v34, %v64_v33  ;;  %v68_v38 = vld [vmem:[#allocation5 + $0xc0] sm:$0xff]  ;;  %v231_v39 = vpack.c.bf16 %v71_v36, %v69_v35  ;;  %v70_v40 = vld [vmem:[#allocation5 + $0xd0] sm:$0xff]  ;;  %v41_v41 = vld [vmem:[#allocation2 + $0x8] sm:$0xff] }
  0x30   :  { %v43_v42 = vld [vmem:[#allocation2 + $0x18] sm:$0xff]  ;;  %v73_v43 = vld [vmem:[#allocation5 + $0xe8] sm:$0xff]  ;;  %172 = vmatprep.mubr.f32.mxu0 %v41_v41  ;;  %v233_v45 = vpack.c.bf16 %v70_v40, %v68_v38  ;;  %v72_v47 = vld [vmem:[#allocation5 + $0xe0] sm:$0xff] }
  0x31   :  { %v75_v44 = vld [vmem:[#allocation5 + $0xf8] sm:$0xff]  ;;  %178 = vmatprep.mubr.f32.mxu1 %v43_v42  ;;  %v74_v48 = vld [vmem:[#allocation5 + $0xf0] sm:$0xff]  ;;  %v77_v49 = vld [vmem:[#allocation5 + $0x108] sm:$0xff] }
  0x32   :  { %218 = vmatpush1.bf16.msra.mxu0 %v217_v19  ;;  %289 = vmatpush1.bf16.msra.mxu1 %v217_v19  ;;  %v235_v46 = vpack.c.bf16 %v75_v44, %v73_v43  ;;  %v79_v50 = vld [vmem:[#allocation5 + $0x118] sm:$0xff]  ;;  %v237_v51 = vpack.c.bf16 %v74_v48, %v72_v47  ;;  %v76_v53 = vld [vmem:[#allocation5 + $0x100] sm:$0xff]  ;;  %v78_v54 = vld [vmem:[#allocation5 + $0x110] sm:$0xff] }
  0x33   :  { %220 = vmatprep.subr.bf16.mxu0 %v219_v20  ;;  %274 = vmatprep.subr.bf16.mxu1 %v219_v20  ;;  %v239_v52 = vpack.c.bf16 %v79_v50, %v77_v49  ;;  %v81_v55 = vld [vmem:[#allocation5 + $0x128] sm:$0xff]  ;;  %v83_v56 = vld [vmem:[#allocation5 + $0x138] sm:$0xff]  ;;  %v241_v57 = vpack.c.bf16 %v78_v54, %v76_v53  ;;  %v80_v59 = vld [vmem:[#allocation5 + $0x120] sm:$0xff] }
  0x34   :  { %v243_v58 = vpack.c.bf16 %v83_v56, %v81_v55  ;;  %v82_v60 = vld [vmem:[#allocation5 + $0x130] sm:$0xff]  ;;  %v85_v61 = vld [vmem:[#allocation5 + $0x148] sm:$0xff]  ;;  %v87_v62 = vld [vmem:[#allocation5 + $0x158] sm:$0xff] }
  0x35   :  { %v245_v63 = vpack.c.bf16 %v82_v60, %v80_v59  ;;  %v247_v0 = vpack.c.bf16 %v87_v62, %v85_v61  ;;  %v84_v1 = vld [vmem:[#allocation5 + $0x140] sm:$0xff]  ;;  %v86_v2 = vld [vmem:[#allocation5 + $0x150] sm:$0xff]  ;;  %v89_v3 = vld [vmem:[#allocation5 + $0x168] sm:$0xff] }
  0x36   :  { %222 = vmatpush1.bf16.msra.mxu0 %v221_v25  ;;  %290 = vmatpush1.bf16.msra.mxu1 %v221_v25  ;;  %v91_v4 = vld [vmem:[#allocation5 + $0x178] sm:$0xff]  ;;  %v249_v5 = vpack.c.bf16 %v86_v2, %v84_v1  ;;  %v88_v7 = vld [vmem:[#allocation5 + $0x160] sm:$0xff]  ;;  %v90_v8 = vld [vmem:[#allocation5 + $0x170] sm:$0xff] }
  0x37   :  { %224 = vmatprep.subr.bf16.mxu0 %v223_v26  ;;  %275 = vmatprep.subr.bf16.mxu1 %v223_v26  ;;  %v251_v6 = vpack.c.bf16 %v91_v4, %v89_v3  ;;  %v93_v9 = vld [vmem:[#allocation5 + $0x188] sm:$0xff]  ;;  %v95_v10 = vld [vmem:[#allocation5 + $0x198] sm:$0xff]  ;;  %v253_v11 = vpack.c.bf16 %v90_v8, %v88_v7  ;;  %v92_v13 = vld [vmem:[#allocation5 + $0x180] sm:$0xff] }
  0x38   :  { %v255_v12 = vpack.c.bf16 %v95_v10, %v93_v9  ;;  %v94_v14 = vld [vmem:[#allocation5 + $0x190] sm:$0xff]  ;;  %v97_v15 = vld [vmem:[#allocation5 + $0x1a8] sm:$0xff]  ;;  %v99_v16 = vld [vmem:[#allocation5 + $0x1b8] sm:$0xff] }
  0x39   :  { %v257_v17 = vpack.c.bf16 %v94_v14, %v92_v13  ;;  %v259_v18 = vpack.c.bf16 %v99_v16, %v97_v15  ;;  %v96_v19 = vld [vmem:[#allocation5 + $0x1a0] sm:$0xff]  ;;  %v98_v20 = vld [vmem:[#allocation5 + $0x1b0] sm:$0xff]  ;;  %v101_v21 = vld [vmem:[#allocation5 + $0x1c8] sm:$0xff] }
  0x3a   :  { %226 = vmatpush1.bf16.msra.mxu0 %v225_v31  ;;  %291 = vmatpush1.bf16.msra.mxu1 %v225_v31  ;;  %v103_v22 = vld [vmem:[#allocation5 + $0x1d8] sm:$0xff]  ;;  %v261_v23 = vpack.c.bf16 %v98_v20, %v96_v19  ;;  %v100_v25 = vld [vmem:[#allocation5 + $0x1c0] sm:$0xff]  ;;  %v102_v26 = vld [vmem:[#allocation5 + $0x1d0] sm:$0xff] }
  0x3b   :  { %228 = vmatprep.subr.bf16.mxu0 %v227_v32  ;;  %276 = vmatprep.subr.bf16.mxu1 %v227_v32  ;;  %v263_v24 = vpack.c.bf16 %v103_v22, %v101_v21  ;;  %v105_v27 = vld [vmem:[#allocation5 + $0x1e8] sm:$0xff]  ;;  %v107_v28 = vld [vmem:[#allocation5 + $0x1f8] sm:$0xff]  ;;  %v265_v29 = vpack.c.bf16 %v102_v26, %v100_v25  ;;  %v104_v31 = vld [vmem:[#allocation5 + $0x1e0] sm:$0xff] }
  0x3c   :  { %v267_v30 = vpack.c.bf16 %v107_v28, %v105_v27  ;;  %v106_v32 = vld [vmem:[#allocation5 + $0x1f0] sm:$0xff]  ;;  %v40_v34 = vld [vmem:[#allocation2] sm:$0xff] }
  0x3d   :  { %v269_v33 = vpack.c.bf16 %v106_v32, %v104_v31  ;;  %v42_v35 = vld [vmem:[#allocation2 + $0x10] sm:$0xff] }
  0x3e   :  { %230 = vmatpush1.bf16.msra.mxu0 %v229_v37  ;;  %292 = vmatpush1.bf16.msra.mxu1 %v229_v37 }
  0x3f   :  { %232 = vmatprep.subr.bf16.mxu0 %v231_v39  ;;  %277 = vmatprep.subr.bf16.mxu1 %v231_v39 }
  0x42   :  { %234 = vmatpush1.bf16.msra.mxu0 %v233_v45  ;;  %293 = vmatpush1.bf16.msra.mxu1 %v233_v45 }
  0x43   :  { %236 = vmatprep.subr.bf16.mxu0 %v235_v46  ;;  %278 = vmatprep.subr.bf16.mxu1 %v235_v46 }
  0x46   :  { %238 = vmatpush1.bf16.msra.mxu0 %v237_v51  ;;  %294 = vmatpush1.bf16.msra.mxu1 %v237_v51 }
  0x47   :  { %240 = vmatprep.subr.bf16.mxu0 %v239_v52  ;;  %279 = vmatprep.subr.bf16.mxu1 %v239_v52 }
  0x4a   :  { %242 = vmatpush1.bf16.msra.mxu0 %v241_v57  ;;  %295 = vmatpush1.bf16.msra.mxu1 %v241_v57 }
  0x4b   :  { %244 = vmatprep.subr.bf16.mxu0 %v243_v58  ;;  %280 = vmatprep.subr.bf16.mxu1 %v243_v58 }
  0x4e   :  { %246 = vmatpush1.bf16.msra.mxu0 %v245_v63  ;;  %296 = vmatpush1.bf16.msra.mxu1 %v245_v63 }
  0x4f   :  { %248 = vmatprep.subr.bf16.mxu0 %v247_v0  ;;  %281 = vmatprep.subr.bf16.mxu1 %v247_v0 }
  0x52   :  { %250 = vmatpush1.bf16.msra.mxu0 %v249_v5  ;;  %297 = vmatpush1.bf16.msra.mxu1 %v249_v5 }
  0x53   :  { %252 = vmatprep.subr.bf16.mxu0 %v251_v6  ;;  %282 = vmatprep.subr.bf16.mxu1 %v251_v6 }
  0x56   :  { %254 = vmatpush1.bf16.msra.mxu0 %v253_v11  ;;  %298 = vmatpush1.bf16.msra.mxu1 %v253_v11 }
  0x57   :  { %256 = vmatprep.subr.bf16.mxu0 %v255_v12  ;;  %283 = vmatprep.subr.bf16.mxu1 %v255_v12 }
  0x5a   :  { %258 = vmatpush1.bf16.msra.mxu0 %v257_v17  ;;  %299 = vmatpush1.bf16.msra.mxu1 %v257_v17 }
  0x5b   :  { %260 = vmatprep.subr.bf16.mxu0 %v259_v18  ;;  %284 = vmatprep.subr.bf16.mxu1 %v259_v18 }
  0x5e   :  { %262 = vmatpush1.bf16.msra.mxu0 %v261_v23  ;;  %300 = vmatpush1.bf16.msra.mxu1 %v261_v23 }
  0x5f   :  { %264 = vmatprep.subr.bf16.mxu0 %v263_v24  ;;  %285 = vmatprep.subr.bf16.mxu1 %v263_v24 }
  0x62   :  { %266 = vmatpush1.bf16.msra.mxu0 %v265_v29  ;;  %301 = vmatpush1.bf16.msra.mxu1 %v265_v29 }
  0x63   :  { %268 = vmatprep.subr.bf16.mxu0 %v267_v30  ;;  %286 = vmatprep.subr.bf16.mxu1 %v267_v30 }
  0x66   :  { %270 = vmatpush1.bf16.msra.mxu0 %v269_v33  ;;  %302 = vmatpush1.bf16.msra.mxu1 %v269_v33 }
  0x69   :  { %173 = vmatmul.mubr.f32.vlgmr.msra.gmra.mrb[0].mxu0 %v40_v34  ;;  %179 = vmatmul.mubr.f32.vlgmr.msra.gmra.mrb[0].mxu1 %v42_v35 }
 0x13c   :  { %v174_v36 = vpop.f32.mrb[0].mxu0  ;;  %v180_v37 = vpop.f32.mrb[0].mxu1 }
 0x13d   :  { %185 = vst [vmem:[#allocation7] sm:$0xff] %v174_v36  ;;  %187 = vst [vmem:[#allocation7 + $0x10] sm:$0xff] %v180_v37  ;;  %v176_v38 = vpop.f32.mrb[1].mxu0  ;;  %v182_v39 = vpop.f32.mrb[1].mxu1 }
 0x13e   :  { %186 = vst [vmem:[#allocation7 + $0x8] sm:$0xff] %v176_v38  ;;  %188 = vst [vmem:[#allocation7 + $0x18] sm:$0xff] %v182_v39 }
 0x13f   :  { %363 = shalt.err (!%p360_p6)
}
 0x140   :  { %s364_s10 = scalar_lea.hbm %s447_s2, 512 }
 0x141   :  { %p365_p7 = scmp.ne.s32.totalorder %s447_s2, %s364_s10  ;;  %p368_p8 = scmp.lt.u32.totalorder %s364_s10, %s447_s2 }
 0x143   :  { %p370_p9 = pnand %p368_p8, %p365_p7 }
 0x145   :  { %373 = shalt.err (!%p370_p9)
}
 0x146   :  { %200 = dma.vmem_to_hbm [thread:$0]  %s195_s6, 512, %s447_s2, [#allocation4], %s381_s19, %s381_s19, %s382_s20  }
 0x147   :  { %378 = dma.done.wait [#allocation4], 512  }
 0x148   :  { %379 = vsyncadd [#allocation4], 4294966784 }
 0x149   :  { %204 = vsyncpa [#allocation3], 1 }
 0x14a   :  { %205 = vsyncpa [#allocation6], 1 }
 0x14b   :  { %206 = vsyncpa [#allocation4], 1 }

// kernel: decoder_block.13
= control target key start
LH: loop header
LB: loop body
LE: loop exit
PB: predicated region body
PF: predicated region fallthrough
CT: control target
= control target key end

     0   :  { %s1377_s0 = inlined_call_operand.hbm [shape: s32[2], index: 0, kind: input, shape index: {}]   ;;  %s1378_s1 = inlined_call_operand.hbm [shape: f32[2,8,256], index: 1, kind: input, shape index: {}]   ;;  %s1379_s2 = inlined_call_operand.hbm [shape: f32[2,8,256], index: 2, kind: input, shape index: {}]   ;;  %s1380_s3 = inlined_call_operand.hbm [shape: f32[2,8,256], index: 3, kind: input, shape index: {}]   ;;  %s1381_s4 = inlined_call_operand.hbm [shape: f32[2,8,256], index: 4, kind: output, shape index: {}]  }
   0x1   :  { %1391 = sst [smem:[#allocation24_spill]] %s1379_s2  ;;  %s831_s17 = scalar_lea.hbm %s1377_s0, 16 }
   0x2   :  { %p832_p0 = scmp.ne.s32.totalorder %s1377_s0, %s831_s17  ;;  %p835_p1 = scmp.lt.u32.totalorder %s831_s17, %s1377_s0 }
   0x4   :  { %p837_p2 = pnand %p835_p1, %p832_p0 }
   0x6   :  { %840 = shalt.err (!%p837_p2)  }
   0x7   :  { %s1037_s22 = smov [#allocation6]  }
   0x8   :  { %10 = dma.hbm_to_smem %s1377_s0, 16, %s1037_s22, [#allocation5] }
   0x9   :  { %991 = dma.done.wait [#allocation5], 16 }
   0xa   :  { %992 = vsyncadd [#allocation5], 4294967280 }
   0xb   :  { %12 = sfence }
   0xc   :  { %13 = vsyncpa [#allocation8], 0 }
   0xd   :  { %15 = vsyncpa [#allocation8 + $0x1], 0 }
   0xe   :  { %16 = vsyncpa [#allocation11], 0 }
   0xf   :  { %18 = vsyncpa [#allocation11 + $0x1], 0 }
  0x10   :  { %19 = vsyncpa [#allocation9], 0 }
  0x11   :  { %21 = vsyncpa [#allocation9 + $0x1], 0  ;;  %s1083_s25 = smov 0   ;;  %s1085_s26 = smov 0  }
  0x12   :  { %s1087_s27 = smov 0   ;;  %s1089_s28 = smov 0  }
  0x13   :  { %s1091_s29 = smov 0   ;;  %s1093_s0 = smov 0  }
  0x14   :  { %s1095_s30 = smov 0   ;;  %s1097_s5 = smov 0  }
  0x15 LB: > { %1392 = sst [smem:[#allocation18_spill]] %s1027_s0  ;;  %s1124_s6 = sadd.s32 4294967295, %s1035_s5   ;;  %s1035_s5 = sphi %s1097_s5, %s27_s5   ;;  %s1031_s30 = sphi %s1095_s30, %s1419_s30   ;;  %s1027_s0 = sphi %s1093_s0, %s1418_s0   ;;  %s1023_s29 = sphi %s1091_s29, %s1417_s29   ;;  %s1019_s28 = sphi %s1089_s28, %s1416_s28   ;;  %s1015_s27 = sphi %s1087_s27, %s1422_s27   ;;  %s1011_s26 = sphi %s1085_s26, %s1421_s26   ;;  %s1007_s25 = sphi %s1083_s25, %s1420_s25  }
  0x16   : > { %1393 = sst [smem:[#allocation19_spill]] %s1031_s30  ;;  %s693_s7 = sadd.s32 4294967294, %s1035_s5  }
  0x17   : > { %s49_s8 = sadd.s32 1, %s1027_s0  ;;  %s53_s9 = sadd.s32 1, %s1031_s30 }
  0x18   : > { %p51_p3 = scmp.ge.s32.totalorder %s49_s8, 2  ;;  %s64_s10 = sadd.s32 1, %s1015_s27 }
  0x19   : > { %p71_p4 = scmp.ne.s32.totalorder %s1015_s27, %s1011_s26  ;;  %p72_p5 = scmp.eq.s32.totalorder %s1035_s5, 0 }
  0x1a   : > { %s1424_s8 = smov (%p51_p3, %s49_s8), 0  ;;  %s1426_s9 = smov (!%p51_p3, %s53_s9), %s1031_s30 }
  0x1b   : > { %1394 = sst [smem:[#allocation20_spill]] %s1424_s8  ;;  %s60_s11 = ssub.s32 %s1027_s0, %s1424_s8 }
  0x1c   : > { %p1138_p6 = por %p72_p5, %p71_p4  ;;  %p55_p7 = scmp.ge.s32.totalorder %s1426_s9, 2 }
  0x1d   : > { %p77_p8 = scmp.ne.s32.totalorder %s1011_s26, %s1007_s25  ;;  %p78_p9 = scmp.eq.s32.totalorder %s1124_s6, 0 }
  0x1e   : > { %p165_p10 = scmp.eq.s32.totalorder %s1124_s6, 3  ;;  %s1428_s9 = smov (%p55_p7, %s1426_s9), 0 }
  0x1f   : > { %1396 = sst [smem:[#allocation21_spill]] %s1428_s9  ;;  %p1148_p11 = por %p78_p9, %p77_p8 }
  0x20   : > { %p1152_p12 = por %p165_p10, %p71_p4  ;;  %s57_s15 = ssub.s32 %s1031_s30, %s1428_s9 }
  0x21   : > { %s1397_s13 = scalar_select %p1148_p11, 1, 0 }
  0x22   : > { %s1398_s14 = scalar_select %p1152_p12, 1, 0 }
  0x23   : > { %p171_p13 = scmp.eq.s32.totalorder %s693_s7, 3  ;;  %s61_s16 = sor.u32 %s60_s11, %s57_s15 }
  0x24   : > { %p62_p0 = scmp.eq.s32.totalorder %s61_s16, 0  ;;  %p752_p2 = scmp.lt.s32.totalorder %s1035_s5, 4 }
  0x25   : > { %p1158_p1 = por %p171_p13, %p77_p8  ;;  %s1382_s18 = sand.u32 1, %s1015_s27  }
  0x26   : > { %s1165_s19 = scalar_select %p62_p0, %s1015_s27, %s64_s10  }
  0x27   : > { %s1399_s17 = scalar_select %p1158_p1, 1, 0 }
  0x28   : > { %1401 = sst [smem:[#allocation23_spill]] %s1165_s19  ;;  %s1169_s20 = sshll.u32 %s1382_s18, 3 }
  0x29   : > { %1400 = sst [smem:[#allocation22_spill]] %s1399_s17  ;;  %s697_s21 = sshll.u32 %s1031_s30, 1 }
  0x2a   : > { %s202_s22 = sadd.s32 %s1027_s0, %s697_s21  ;;  %p1175_p3 = pnand %p752_p2, %p1138_p6 }
  0x2b   : > { %s1179_s24 = sshll.u32 %s202_s22, 7  ;;  %s213_s7 = sand.u32 1, %s1035_s5  }
  0x2c   : > { %s1402_s23 = scalar_select %p1175_p3, 1, 0 }
  0x2d   : > { %s1403_s2 = sld [smem:[#allocation24_spill]]  ;;  %s217_s16 = scalar_lea.vmem [#allocation10], %s1169_s20 }
  0x2e   : > { %s228_s12 = sshll.u32 %s217_s16, 4  ;;  %s1193_s21 = scalar_lea.sflag [#allocation11], %s213_s7  ;;  %s1190_s12 = int_to_ptr.vmem [resolvable:$true] %s228_s12 }
  0x2f   : > { %p1199_p7 = pneg %p1175_p3 }
  0x33   : > { %s1186_s10 = scalar_lea.hbm %s1403_s2, %s1179_s24  ;;  %s846_s16 = scalar_lea.hbm %s1403_s2, 512 }
  0x34   : > { %s841_s22 = scalar_lea.hbm %s1186_s10, 128  ;;  %p847_p10 = scmp.lt.u32.totalorder %s1186_s10, %s1403_s2 }
  0x35   : > { %p842_p6 = scmp.ne.s32.totalorder %s1186_s10, %s841_s22  ;;  %p848_p13 = scmp.lt.u32.totalorder %s846_s16, %s841_s22 }
  0x36   : > { %p850_p2 = scmp.lt.u32.totalorder %s841_s22, %s1186_s10 }
  0x37   : > { %p844_p8 = pnand %p1199_p7, %p842_p6  ;;  %p849_p0 = por %p848_p13, %p847_p10 }
  0x39   : > { %p845_p9 = pneg %p844_p8  ;;  %p851_p4 = por %p850_p2, %p849_p0 }
  0x3b   : > { %p852_p5 = pnand %p851_p4, %p845_p9 }
  0x3d   : > { %855 = shalt.err (!%p852_p5)
}
  0x3e   : > { %s856_s7 = scalar_lea.vmem %s1190_s12, 128  ;;  %s1038_s11 = smov [#allocation10]  }
  0x3f   : > { %p857_p6 = scmp.ne.s32.totalorder %s1190_s12, %s856_s7  ;;  %s861_s15 = sshll.u32 %s1038_s11, 4  ;;  %s862_s15 = int_to_ptr.vmem [resolvable:$false] %s861_s15 }
  0x40   : > { %s863_s8 = scalar_lea.vmem %s862_s15, 256  ;;  %p864_p12 = scmp.lt.s32.totalorder %s1190_s12, %s862_s15 }
  0x41   : > { %p859_p8 = pnand %p857_p6, %p1199_p7  ;;  %p865_p11 = scmp.lt.s32.totalorder %s863_s8, %s856_s7 }
  0x43   : > { %p860_p1 = pneg %p859_p8  ;;  %p866_p10 = por %p865_p11, %p864_p12 }
  0x45   : > { %p867_p13 = pnand %p866_p10, %p860_p1 }
  0x47   : > { %870 = shalt.err (!%p867_p13)
}
  0x48   : > { %744 = dma.hbm_to_vmem [thread:$0]  (!%p1175_p3), %s1186_s10, 128, %s1190_s12, %s1193_s21  }
  0x49   : > { %p1405_p4 = scmp.lt.s32.totalorder %s1035_s5, 5  ;;  %p1406_p5 = scmp.ge.s32.totalorder %s1035_s5, 1 }
  0x4a   : > { %s1235_s7 = scalar_lea.hbm %s1378_s1, %s1179_s24  ;;  %s195_s11 = scalar_lea.vmem [#allocation7], %s1169_s20 }
  0x4b   : > { %p1227_p9 = pnand %p1406_p5, %p1405_p4  ;;  %s206_s15 = sshll.u32 %s195_s11, 4  ;;  %s1238_s15 = int_to_ptr.vmem [resolvable:$true] %s206_s15 }
  0x4c   : > { %s1244_s8 = scalar_lea.hbm %s1380_s3, %s1179_s24  ;;  %s1408_s2 = sand.u32 1, %s1015_s27  }
  0x4d   : > { %s1407_s9 = scalar_select %p1227_p9, 1, 0 }
  0x4e   : > { %s192_s30 = scalar_lea.sflag [#allocation8], %s1408_s2  ;;  %s871_s0 = scalar_lea.hbm %s1235_s7, 128 }
  0x4f   : > { %p872_p11 = scmp.ne.s32.totalorder %s1235_s7, %s871_s0  ;;  %s876_s19 = scalar_lea.hbm %s1378_s1, 512 }
  0x50   : > { %p877_p0 = scmp.lt.u32.totalorder %s1235_s7, %s1378_s1  ;;  %p878_p2 = scmp.lt.u32.totalorder %s876_s19, %s871_s0 }
  0x51   : > { %p874_p12 = pnand %p872_p11, %p1199_p7  ;;  %p880_p8 = scmp.lt.u32.totalorder %s871_s0, %s1235_s7 }
  0x52   : > { %p879_p6 = por %p878_p2, %p877_p0 }
  0x53   : > { %p875_p1 = pneg %p874_p12 }
  0x54   : > { %p881_p10 = por %p880_p8, %p879_p6 }
  0x56   : > { %p882_p13 = pnand %p881_p10, %p875_p1 }
  0x58   : > { %885 = shalt.err (!%p882_p13)
}
  0x59   : > { %s886_s2 = scalar_lea.vmem %s1238_s15, 128  ;;  %s1039_s24 = smov [#allocation7]  }
  0x5a   : > { %p887_p4 = scmp.ne.s32.totalorder %s1238_s15, %s886_s2  ;;  %s891_s10 = sshll.u32 %s1039_s24, 4  ;;  %s892_s10 = int_to_ptr.vmem [resolvable:$false] %s891_s10 }
  0x5b   : > { %s893_s17 = scalar_lea.vmem %s892_s10, 256  ;;  %p894_p12 = scmp.lt.s32.totalorder %s1238_s15, %s892_s10 }
  0x5c   : > { %p889_p5 = pnand %p887_p4, %p1199_p7  ;;  %p895_p9 = scmp.lt.s32.totalorder %s893_s17, %s886_s2 }
  0x5e   : > { %p890_p11 = pneg %p889_p5  ;;  %p896_p0 = por %p895_p9, %p894_p12 }
  0x60   : > { %p897_p2 = pnand %p896_p0, %p890_p11 }
  0x62   : > { %900 = shalt.err (!%p897_p2)
}
  0x63   : > { %741 = dma.hbm_to_vmem [thread:$0]  (!%p1175_p3), %s1235_s7, 128, %s1238_s15, %s192_s30  }
  0x64   : > { %s239_s0 = scalar_lea.vmem [#allocation12], %s1169_s20  ;;  %s901_s12 = scalar_lea.hbm %s1244_s8, 128 }
  0x65   : > { %s250_s19 = sshll.u32 %s239_s0, 4  ;;  %p902_p1 = scmp.ne.s32.totalorder %s1244_s8, %s901_s12  ;;  %s251_s19 = int_to_ptr.vmem [resolvable:$true] %s250_s19 }
  0x66   : > { %s906_s11 = scalar_lea.hbm %s1380_s3, 512  ;;  %p907_p8 = scmp.lt.u32.totalorder %s1244_s8, %s1380_s3 }
  0x67   : > { %p904_p9 = pnand %p902_p1, %p1199_p7  ;;  %p908_p10 = scmp.lt.u32.totalorder %s906_s11, %s901_s12 }
  0x68   : > { %p910_p4 = scmp.lt.u32.totalorder %s901_s12, %s1244_s8 }
  0x69   : > { %p905_p6 = pneg %p904_p9  ;;  %p909_p13 = por %p908_p10, %p907_p8 }
  0x6b   : > { %p911_p5 = por %p910_p4, %p909_p13 }
  0x6d   : > { %p912_p11 = pnand %p911_p5, %p905_p6 }
  0x6f   : > { %915 = shalt.err (!%p912_p11)
}
  0x70   : > { %s916_s30 = scalar_lea.vmem %s251_s19, 128  ;;  %s1040_s20 = smov [#allocation12]  }
  0x71   : > { %p917_p12 = scmp.ne.s32.totalorder %s251_s19, %s916_s30  ;;  %s921_s7 = sshll.u32 %s1040_s20, 4  ;;  %s922_s7 = int_to_ptr.vmem [resolvable:$false] %s921_s7 }
  0x72   : > { %s923_s15 = scalar_lea.vmem %s922_s7, 256  ;;  %p924_p1 = scmp.lt.s32.totalorder %s251_s19, %s922_s7 }
  0x73   : > { %p919_p0 = pnand %p917_p12, %p1199_p7  ;;  %p925_p9 = scmp.lt.s32.totalorder %s923_s15, %s916_s30 }
  0x75   : > { %p920_p2 = pneg %p919_p0  ;;  %p926_p3 = por %p925_p9, %p924_p1 }
  0x77   : > { %p927_p8 = pnand %p926_p3, %p920_p2 }
  0x79   : > { %930 = shalt.err (!%p927_p8)
}
  0x7a   : > { %p1409_p10 = scmp.ne.s32.totalorder %s1402_s23, 0  ;;  %p1410_p6 = scmp.ne.s32.totalorder %s1407_s9, 0 }
  0x7b   : > { %s1291_s18 = sand.u32 (!%p1410_p6), 1, %s1011_s26   ;;  %p1411_p3 = scmp.ne.s32.totalorder (!%p1410_p6), %s1397_s13, 0 }
  0x7c   : > { %747 = dma.hbm_to_vmem [thread:$0]  (!%p1409_p10), %s1244_s8, 128, %s251_s19, %s1193_s21  }
  0x7d   : > { %259 = sbr.rel (%p1410_p6) target bundleno = 953 (0x3b9), region = 32  ;;  %s1294_s10 = sshll.u32 (!%p1410_p6), %s1291_s18, 3 }
  0x7e   : > { %s262_s17 = scalar_lea.sflag (!%p1410_p6), [#allocation8], %s1291_s18  ;;  %s265_s0 = scalar_lea.vmem (!%p1410_p6), [#allocation7], %s1294_s10 }
  0x84   : > { %994 = dma.done.wait (%p1411_p3), %s262_s17, 128  }
  0x85   : > { %996 = vsyncadd (%p1411_p3), %s262_s17, 4294967168  ;;  %s270_s23 = sand.u32 1, %s1124_s6   ;;  %s274_s9 = scalar_lea.vmem [#allocation10], %s1294_s10 }
  0x86   : > { %s271_s21 = scalar_lea.sflag [#allocation11], %s270_s23 }
  0x87   : > { %998 = dma.done.wait (%p1411_p3), %s271_s21, 256  }
  0x88   : > { %1000 = vsyncadd (%p1411_p3), %s271_s21, 4294967040  ;;  %vm320_vm0 = vcmask 7168   ;;  %v1041_v0 = vmov 0.0   ;;  %vm1042_vm1 = vmmov 0   ;;  %v325_v1 = vld [vmem:[%s274_s9] sm:$0xff]  ;;  %v324_v2 = vld [vmem:[%s265_s0] sm:$0xff]  ;;  %v399_v4 = vlaneseq }
  0x89   : > { %322 = vst.msk [vmem:[#allocation3] sm:$0xff] %vm320_vm0, %v1041_v0  ;;  %720 = vmatprep.subr.mxu0 %v1041_v0  ;;  %722 = vmatprep.mubr.msk.f32.mxu0 %vm1042_vm1, %v1041_v0  ;;  %v1043_v3 = vmov -inf   ;;  %s398_s6 = sld [smem:[#allocation6 + %s1023_s29]]  ;;  %vm408_vm3 = vcmask 64512   ;;  %v1044_v12 = vmov 0   ;;  %s283_s13 = scalar_lea.vmem [#allocation12], %s1294_s10 }
  0x8a   : > { %725 = vmatprep.subr.mxu1 %v1041_v0  ;;  %727 = vmatprep.mubr.msk.f32.mxu1 %vm1042_vm1, %v1041_v0  ;;  %321 = vst.msk [vmem:[#allocation2] sm:$0xff] %vm320_vm0, %v1043_v3  ;;  %v400_v5 = vand.u32 127, %v399_v4  ;;  %v326_v17 = vld [vmem:[%s283_s13] sm:$0xff]  ;;  %s712_s8 = sshll.u32 %s1023_s29, 1  ;;  %s315_s22 = scalar_lea.vmem [#allocation13], %s1294_s10 }
  0x8b   : > { %721 = vmatpush3.xpose.msra.mxu0 %v325_v1  ;;  %823 = vset.pattern.permute.xlu0 %v1044_v12  ;;  %s542_s19 = sadd.s32 %s1019_s28, %s712_s8  ;;  %s546_s16 = sshll.u32 %s315_s22, 4  ;;  %s1325_s16 = int_to_ptr.vmem [resolvable:$true] %s546_s16 }
  0x8c   : > { %824 = vset.pattern.permute.xlu1 %v1044_v12  ;;  %726 = vmatpush3.msra.mxu1 %v326_v17  ;;  %s713_s12 = sshll.u32 %s542_s19, 7  ;;  %s529_s29 = scalar_lea.sflag [#allocation9], %s1291_s18 }
  0x8d   : > { %s1323_s24 = scalar_lea.hbm %s1381_s4, %s713_s12  ;;  %s931_s30 = scalar_lea.vmem %s1325_s16, 128 }
  0x8e   : > { %723 = vmatmul.mubr.f32.vlgmr.msra.gmra.mrb[0].mxu0 %v324_v2  ;;  %p932_p7 = scmp.ne.s32.totalorder %s1325_s16, %s931_s30  ;;  %p1412_p13 = scmp.ne.s32.totalorder %s1398_s14, 0 }
  0x8f   : > { %v404_v6 = vstv %s398_s6  ;;  %s1045_s28 = smov [#allocation13]  }
  0x90   : > { %vm405_vm2 = vcmp.ge.s32.totalorder %v400_v5, %v404_v6  ;;  %v424_v25 = vld [vmem:[#allocation3] sm:$0xff]  ;;  %p933_p4 = pnand %p932_p7, %p1412_p13  ;;  %s935_s20 = sshll.u32 %s1045_s28, 4  ;;  %s936_s20 = int_to_ptr.vmem [resolvable:$false] %s935_s20 }
  0x91   : > { %v407_v13 = vld [vmem:[#allocation2] sm:$0xff]  ;;  %s937_s7 = scalar_lea.vmem %s936_s20, 256  ;;  %p938_p11 = scmp.lt.s32.totalorder %s1325_s16, %s936_s20 }
  0x92   : > { %p934_p5 = pneg %p933_p4  ;;  %p939_p12 = scmp.lt.s32.totalorder %s937_s7, %s931_s30 }
  0x94   : > { %p940_p0 = por %p939_p12, %p938_p11 }
  0x96   : > { %p941_p2 = pnand %p940_p0, %p934_p5 }
 0x161   : > { %v393_v7 = vpop.f32.mrb[0].mxu0 }
 0x162   : > { %v397_v8 = vmul.f32 0.088388346, %v393_v7  ;;  %v724_v9 = vpop.f32.mrb[1].mxu0 }
 0x164   : > { %v406_v10 = vsel %vm405_vm2, -1000000.0, %v397_v8 }
 0x165   : > { %v409_v11 = vsel %vm408_vm3, %v406_v10, -inf }
 0x166   : > { %410 = vmax.xlane.f32.xlu0 %v409_v11 }
 0x1f3   : > { %v411_v14 = vpop.xlane.xlu0 %410 }
 0x1f4   : > { %v412_v15 = vmax.f32 %v407_v13, %v411_v14 }
 0x1f6   : > { %v413_v16 = vsub.f32 %v407_v13, %v412_v15  ;;  %514 = vst.msk [vmem:[#allocation2] sm:$0xff] %vm320_vm0, %v412_v15  ;;  %418 = vperm.xlu0 %823, %v412_v15  }
 0x1f8   : > { %v414_v23 = vmul.f32 1.442695, %v413_v16 }
 0x275   : > { %v419_v18 = vpop.permute.xlu0 %418 }
 0x276   : > { %v421_v19 = vsub.f32 %v406_v10, %v419_v18 }
 0x278   : > { %v422_v20 = vmul.f32 1.442695, %v421_v19 }
 0x27a   : > { %825 = vpow2.f32 %v422_v20 }
 0x27b   : > { %827 = vpow2.f32 %v414_v23 }
 0x284   : > { %v826_v21 = vpop.eup %825 }
 0x285   : > { %728 = vmatmul.mubr.msk.f32.vlgmr.msra.gmra.mrb[0].mxu1 %vm408_vm3, %v826_v21  ;;  %v426_v22 = vsel %vm408_vm3, %v826_v21, 0.0  ;;  %v828_v24 = vpop.eup %827 }
 0x286   : > { %427 = vadd.xlane.f32.xlu1 %v426_v22  ;;  %v425_v26 = vmul.f32 %v828_v24, %v424_v25 }
 0x313   : > { %v428_v27 = vpop.xlane.xlu1 %427 }
 0x314   : > { %v429_v28 = vadd.f32 %v428_v27, %v425_v26 }
 0x316   : > { %431 = vst.msk [vmem:[#allocation3] sm:$0xff] %vm320_vm0, %v429_v28 }
 0x31d   : > { %v519_v29 = vld [vmem:[#allocation3] sm:$0xff] }
 0x31e   : > { %522 = vperm.xlu1 %824, %v519_v29  }
 0x322   : > { %435 = vperm.xlu1 %824, %v828_v24  }
 0x358   : > { %v508_v30 = vpop.f32.mrb[0].mxu1 }
 0x359   : > { %v729_v31 = vpop.f32.mrb[1].mxu1 }
 0x39d   : > { %v523_v32 = vpop.permute.xlu1 %522 }
 0x39e   : > { %829 = vrcp.f32 %v523_v32 }
 0x3a1   : > { %v436_v33 = vpop.permute.xlu1 %435 }
 0x3a2   : > { %v438_v34 = vmul.f32 0.0, %v436_v33 }
 0x3a4   : > { %v512_v35 = vadd.f32 %v508_v30, %v438_v34 }
 0x3a8   : > { %v830_v36 = vpop.eup %829 }
 0x3a9   : > { %v526_v37 = vmul.f32 %v830_v36, %v512_v35 }
 0x3ab   : > { %527 = vst [vmem:[%s315_s22] sm:$0xff] %v526_v37 }
 0x3ac   : > { %944 = shalt.err (!%p941_p2)
}
 0x3ad   : > { %s945_s15 = scalar_lea.hbm %s1323_s24, 128  ;;  %s949_s17 = scalar_lea.hbm %s1381_s4, 512 }
 0x3ae   : > { %p946_p1 = scmp.ne.s32.totalorder %s1323_s24, %s945_s15  ;;  %p950_p10 = scmp.lt.u32.totalorder %s1323_s24, %s1381_s4 }
 0x3af   : > { %p951_p6 = scmp.lt.u32.totalorder %s949_s17, %s945_s15  ;;  %p953_p7 = scmp.lt.u32.totalorder %s945_s15, %s1323_s24 }
 0x3b0   : > { %p947_p9 = pnand %p946_p1, %p1412_p13 }
 0x3b1   : > { %p952_p3 = por %p951_p6, %p950_p10 }
 0x3b2   : > { %p948_p8 = pneg %p947_p9 }
 0x3b3   : > { %p954_p4 = por %p953_p7, %p952_p3 }
 0x3b5   : > { %p955_p5 = pnand %p954_p4, %p948_p8 }
 0x3b7   : > { %958 = shalt.err (!%p955_p5)
}
 0x3b8   : > { %736 = dma.vmem_to_hbm [thread:$0]  (%p1412_p13), %s1325_s16, 128, %s1323_s24, %s529_s29  }
 0x3b9 PF: > { %s1413_s21 = sld [smem:[#allocation22_spill]]  ;;  %p753_p11 = scmp.ge.s32.totalorder %s1035_s5, 2 }
 0x3ba   : > { %s558_s9 = sand.u32 1, %s1007_s25  }
 0x3bb   : > { %s559_s6 = scalar_lea.sflag [#allocation9], %s558_s9 }
 0x3bf   : > { %p1414_p12 = scmp.ne.s32.totalorder %s1413_s21, 0 }
 0x3c1   : > { %p749_p0 = pnand %p753_p11, %p1414_p12 }
 0x3c3   : > { %1002 = dma.done.wait (!%p749_p0), %s559_s6, 128  }
 0x3c4   : > { %1004 = vsyncadd (!%p749_p0), %s559_s6, 4294967168  ;;  %s27_s5 = sadd.s32 1, %s1035_s5   ;;  %s1415_s14 = sld [smem:[#allocation23_spill]] }
 0x3c5   : > { %p24_p2 = scmp.ge.s32.totalorder %s27_s5, 6   ;;  %s1416_s28 = sld [smem:[#allocation18_spill]] }
 0x3c6   : > { %s1417_s29 = sld [smem:[#allocation19_spill]]  ;;  %s1418_s0 = sld [smem:[#allocation20_spill]] }
 0x3c7   : > { %s1419_s30 = sld [smem:[#allocation21_spill]]  ;;  %s1420_s25 = smov %s1011_s26 }
 0x3c8   : > { %s1421_s26 = smov %s1015_s27  ;;  %26 = sbr.rel (!%p24_p2) target bundleno = 21 (0x15), region = 109 }
 0x3ca   : > { %s1422_s27 = smov %s1415_s14 }
 0x3cf   :  { %564 = vsyncpa [#allocation8], 1 }
 0x3d0   :  { %566 = vsyncpa [#allocation8 + $0x1], 1 }
 0x3d1   :  { %567 = vsyncpa [#allocation11], 1 }
 0x3d2   :  { %569 = vsyncpa [#allocation11 + $0x1], 1 }
 0x3d3   :  { %570 = vsyncpa [#allocation9], 1 }
 0x3d4   :  { %572 = vsyncpa [#allocation9 + $0x1], 1 }

// kernel: decoder_block.12
= control target key start
LH: loop header
LB: loop body
LE: loop exit
PB: predicated region body
PF: predicated region fallthrough
CT: control target
= control target key end

     0   :  { %10 = vsyncpa [#allocation3], 0  ;;  %s761_s0 = inlined_call_operand.hbm [shape: f32[16,256], index: 0, kind: input, shape index: {}]   ;;  %s762_s1 = inlined_call_operand.hbm [shape: f32[256,256], index: 1, kind: input, shape index: {}]   ;;  %s763_s2 = inlined_call_operand.hbm [shape: f32[256,256], index: 2, kind: input, shape index: {}]   ;;  %s764_s3 = inlined_call_operand.hbm [shape: f32[16,256], index: 3, kind: output, shape index: {0}]   ;;  %s765_s4 = inlined_call_operand.hbm [shape: f32[16,256], index: 4, kind: output, shape index: {1}]  }
   0x1   :  { %11 = vsyncpa [#allocation6], 0 }
   0x2   :  { %12 = vsyncpa [#allocation4], 0 }
   0x3   :  { %13 = vsyncpa [#allocation10], 0  ;;  %s640_s15 = smov [#allocation5]   ;;  %s641_s17 = smov [#allocation2]  }
   0x4   :  { %s31_s16 = sshll.u32 %s640_s15, 4  ;;  %s19_s18 = sshll.u32 %s641_s17, 4  ;;  %s32_s16 = int_to_ptr.vmem [resolvable:$true] %s31_s16  ;;  %s672_s18 = int_to_ptr.vmem [resolvable:$true] %s19_s18 }
   0x5   :  { %s522_s21 = scalar_lea.hbm %s762_s1, 8192 }
   0x6   :  { %p523_p0 = scmp.ne.s32.totalorder %s762_s1, %s522_s21  ;;  %p526_p1 = scmp.lt.u32.totalorder %s522_s21, %s762_s1 }
   0x8   :  { %p528_p2 = pnand %p526_p1, %p523_p0 }
   0xa   :  { %531 = shalt.err (!%p528_p2)
}
   0xb   :  { %s532_s26 = scalar_lea.vmem %s32_s16, 8192  ;;  %p537_p4 = scmp.lt.s32.totalorder %s32_s16, %s32_s16 }
   0xc   :  { %p533_p3 = scmp.ne.s32.totalorder %s32_s16, %s532_s26  ;;  %p538_p5 = scmp.lt.s32.totalorder %s532_s26, %s532_s26 }
   0xe   :  { %p539_p6 = por %p538_p5, %p537_p4 }
  0x10   :  { %p540_p7 = pnand %p539_p6, %p533_p3 }
  0x12   :  { %543 = shalt.err (!%p540_p7)
}
  0x13   :  { %s642_s27 = smov 256   ;;  %s643_s28 = smov 16  }
  0x14   :  { %37 = dma.hbm_to_vmem [thread:$0]  %s762_s1, 8192, %s32_s16, [#allocation6], %s642_s27, %s642_s27, %s643_s28  }
  0x15   :  { %s544_s7 = scalar_lea.hbm %s761_s0, 512 }
  0x16   :  { %p545_p8 = scmp.ne.s32.totalorder %s761_s0, %s544_s7  ;;  %p548_p9 = scmp.lt.u32.totalorder %s544_s7, %s761_s0 }
  0x18   :  { %p550_p10 = pnand %p548_p9, %p545_p8 }
  0x1a   :  { %553 = shalt.err (!%p550_p10)
}
  0x1b   :  { %s554_s12 = scalar_lea.vmem %s672_s18, 512  ;;  %p559_p12 = scmp.lt.s32.totalorder %s672_s18, %s672_s18 }
  0x1c   :  { %p555_p11 = scmp.ne.s32.totalorder %s672_s18, %s554_s12  ;;  %p560_p13 = scmp.lt.s32.totalorder %s554_s12, %s554_s12 }
  0x1e   :  { %p561_p0 = por %p560_p13, %p559_p12 }
  0x20   :  { %p562_p1 = pnand %p561_p0, %p555_p11 }
  0x22   :  { %565 = shalt.err (!%p562_p1)
}
  0x23   :  { %25 = dma.hbm_to_vmem [thread:$0]  %s761_s0, 512, %s672_s18, [#allocation3], %s642_s27, %s642_s27, %s643_s28  }
  0x24   :  { %s644_s14 = smov [#allocation7]   ;;  %s566_s19 = scalar_lea.hbm %s763_s2, 8192 }
  0x25   :  { %s43_s15 = sshll.u32 %s644_s14, 4  ;;  %p567_p2 = scmp.ne.s32.totalorder %s763_s2, %s566_s19  ;;  %s44_s15 = int_to_ptr.vmem [resolvable:$true] %s43_s15 }
  0x26   :  { %p570_p3 = scmp.lt.u32.totalorder %s566_s19, %s763_s2 }
  0x28   :  { %p572_p4 = pnand %p570_p3, %p567_p2 }
  0x2a   :  { %575 = shalt.err (!%p572_p4)
}
  0x2b   :  { %s576_s24 = scalar_lea.vmem %s44_s15, 8192  ;;  %p581_p6 = scmp.lt.s32.totalorder %s44_s15, %s44_s15 }
  0x2c   :  { %p577_p5 = scmp.ne.s32.totalorder %s44_s15, %s576_s24  ;;  %p582_p7 = scmp.lt.s32.totalorder %s576_s24, %s576_s24 }
  0x2e   :  { %p583_p8 = por %p582_p7, %p581_p6 }
  0x30   :  { %p584_p9 = pnand %p583_p8, %p577_p5 }
  0x32   :  { %587 = shalt.err (!%p584_p9)
}
  0x33   :  { %49 = dma.hbm_to_vmem [thread:$0]  %s763_s2, 8192, %s44_s15, [#allocation6], %s642_s27, %s642_s27, %s643_s28  }
  0x34   :  { %632 = dma.done.wait [#allocation3], 512  }
  0x35   :  { %633 = vsyncadd [#allocation3], 4294966784 }
  0x36   :  { %634 = dma.done.wait [#allocation6], 16384  }
  0x37   :  { %635 = vsyncadd [#allocation6], 4294950912  ;;  %v64_v0 = vld [vmem:[#allocation5 + $0x8] sm:$0xff]  ;;  %v66_v1 = vld [vmem:[#allocation5 + $0x18] sm:$0xff]  ;;  %s645_s2 = smov [#allocation8]   ;;  %s646_s26 = smov [#allocation9]  }
  0x38   :  { %v209_v2 = vld [vmem:[#allocation7 + $0x8] sm:$0xff]  ;;  %v387_v3 = vpack.c.bf16 %v66_v1, %v64_v0  ;;  %v211_v4 = vld [vmem:[#allocation7 + $0x18] sm:$0xff]  ;;  %v63_v5 = vld [vmem:[#allocation5] sm:$0xff]  ;;  %s358_s25 = sshll.u32 %s645_s2, 4  ;;  %s370_s29 = sshll.u32 %s646_s26, 4  ;;  %s359_s25 = int_to_ptr.vmem [resolvable:$true] %s358_s25  ;;  %s724_s29 = int_to_ptr.vmem [resolvable:$true] %s370_s29 }
  0x39   :  { %v65_v6 = vld [vmem:[#allocation5 + $0x10] sm:$0xff]  ;;  %v451_v7 = vpack.c.bf16 %v211_v4, %v209_v2  ;;  %v208_v9 = vld [vmem:[#allocation7] sm:$0xff]  ;;  %v68_v11 = vld [vmem:[#allocation5 + $0x28] sm:$0xff]  ;;  %s588_s30 = scalar_lea.vmem %s359_s25, 512  ;;  %p593_p11 = scmp.lt.s32.totalorder %s359_s25, %s359_s25 }
  0x3a   :  { %v389_v8 = vpack.c.bf16 %v65_v6, %v63_v5  ;;  %v210_v10 = vld [vmem:[#allocation7 + $0x10] sm:$0xff]  ;;  %388 = vmatprep.subr.bf16.mxu0 %v387_v3  ;;  %v70_v13 = vld [vmem:[#allocation5 + $0x38] sm:$0xff]  ;;  %v213_v14 = vld [vmem:[#allocation7 + $0x28] sm:$0xff]  ;;  %p589_p10 = scmp.ne.s32.totalorder %s359_s25, %s588_s30  ;;  %p594_p12 = scmp.lt.s32.totalorder %s588_s30, %s588_s30 }
  0x3b   :  { %v453_v12 = vpack.c.bf16 %v210_v10, %v208_v9  ;;  %v215_v15 = vld [vmem:[#allocation7 + $0x38] sm:$0xff]  ;;  %452 = vmatprep.subr.bf16.mxu1 %v451_v7  ;;  %v391_v16 = vpack.c.bf16 %v70_v13, %v68_v11  ;;  %v67_v18 = vld [vmem:[#allocation5 + $0x20] sm:$0xff]  ;;  %v69_v19 = vld [vmem:[#allocation5 + $0x30] sm:$0xff] }
  0x3c   :  { %390 = vmatpush1.bf16.msra.mxu0 %v389_v8  ;;  %v455_v17 = vpack.c.bf16 %v215_v15, %v213_v14  ;;  %v212_v20 = vld [vmem:[#allocation7 + $0x20] sm:$0xff]  ;;  %v393_v21 = vpack.c.bf16 %v69_v19, %v67_v18  ;;  %v214_v22 = vld [vmem:[#allocation7 + $0x30] sm:$0xff]  ;;  %v72_v23 = vld [vmem:[#allocation5 + $0x48] sm:$0xff]  ;;  %p595_p13 = por %p594_p12, %p593_p11 }
  0x3d   :  { %454 = vmatpush1.bf16.msra.mxu1 %v453_v12  ;;  %v74_v24 = vld [vmem:[#allocation5 + $0x58] sm:$0xff]  ;;  %392 = vmatprep.subr.bf16.mxu0 %v391_v16  ;;  %v457_v25 = vpack.c.bf16 %v214_v22, %v212_v20  ;;  %v217_v27 = vld [vmem:[#allocation7 + $0x48] sm:$0xff]  ;;  %v71_v29 = vld [vmem:[#allocation5 + $0x40] sm:$0xff] }
  0x3e   :  { %456 = vmatprep.subr.bf16.mxu1 %v455_v17  ;;  %v395_v26 = vpack.c.bf16 %v74_v24, %v72_v23  ;;  %v219_v28 = vld [vmem:[#allocation7 + $0x58] sm:$0xff]  ;;  %v73_v31 = vld [vmem:[#allocation5 + $0x50] sm:$0xff]  ;;  %v216_v32 = vld [vmem:[#allocation7 + $0x40] sm:$0xff]  ;;  %p596_p0 = pnand %p595_p13, %p589_p10 }
  0x3f   :  { %v459_v30 = vpack.c.bf16 %v219_v28, %v217_v27  ;;  %v218_v33 = vld [vmem:[#allocation7 + $0x50] sm:$0xff]  ;;  %v397_v34 = vpack.c.bf16 %v73_v31, %v71_v29  ;;  %v76_v35 = vld [vmem:[#allocation5 + $0x68] sm:$0xff]  ;;  %v78_v36 = vld [vmem:[#allocation5 + $0x78] sm:$0xff] }
  0x40   :  { %394 = vmatpush1.bf16.msra.mxu0 %v393_v21  ;;  %v221_v37 = vld [vmem:[#allocation7 + $0x68] sm:$0xff]  ;;  %v461_v38 = vpack.c.bf16 %v218_v33, %v216_v32  ;;  %v399_v39 = vpack.c.bf16 %v78_v36, %v76_v35  ;;  %v223_v40 = vld [vmem:[#allocation7 + $0x78] sm:$0xff]  ;;  %v75_v41 = vld [vmem:[#allocation5 + $0x60] sm:$0xff] }
  0x41   :  { %458 = vmatpush1.bf16.msra.mxu1 %v457_v25  ;;  %396 = vmatprep.subr.bf16.mxu0 %v395_v26  ;;  %v77_v42 = vld [vmem:[#allocation5 + $0x70] sm:$0xff]  ;;  %v463_v43 = vpack.c.bf16 %v223_v40, %v221_v37  ;;  %v220_v44 = vld [vmem:[#allocation7 + $0x60] sm:$0xff]  ;;  %v80_v46 = vld [vmem:[#allocation5 + $0x88] sm:$0xff] }
  0x42   :  { %460 = vmatprep.subr.bf16.mxu1 %v459_v30  ;;  %v222_v45 = vld [vmem:[#allocation7 + $0x70] sm:$0xff]  ;;  %v82_v47 = vld [vmem:[#allocation5 + $0x98] sm:$0xff]  ;;  %v225_v48 = vld [vmem:[#allocation7 + $0x88] sm:$0xff]  ;;  %v401_v50 = vpack.c.bf16 %v77_v42, %v75_v41 }
  0x43   :  { %v227_v49 = vld [vmem:[#allocation7 + $0x98] sm:$0xff]  ;;  %v465_v51 = vpack.c.bf16 %v222_v45, %v220_v44  ;;  %v403_v52 = vpack.c.bf16 %v82_v47, %v80_v46  ;;  %v79_v53 = vld [vmem:[#allocation5 + $0x80] sm:$0xff]  ;;  %v81_v54 = vld [vmem:[#allocation5 + $0x90] sm:$0xff] }
  0x44   :  { %398 = vmatpush1.bf16.msra.mxu0 %v397_v34  ;;  %v224_v55 = vld [vmem:[#allocation7 + $0x80] sm:$0xff]  ;;  %v467_v56 = vpack.c.bf16 %v227_v49, %v225_v48  ;;  %v226_v57 = vld [vmem:[#allocation7 + $0x90] sm:$0xff]  ;;  %v84_v58 = vld [vmem:[#allocation5 + $0xa8] sm:$0xff]  ;;  %v405_v62 = vpack.c.bf16 %v81_v54, %v79_v53 }
  0x45   :  { %462 = vmatpush1.bf16.msra.mxu1 %v461_v38  ;;  %400 = vmatprep.subr.bf16.mxu0 %v399_v39  ;;  %v86_v59 = vld [vmem:[#allocation5 + $0xb8] sm:$0xff]  ;;  %v229_v60 = vld [vmem:[#allocation7 + $0xa8] sm:$0xff]  ;;  %v469_v63 = vpack.c.bf16 %v226_v57, %v224_v55  ;;  %v83_v1 = vld [vmem:[#allocation5 + $0xa0] sm:$0xff] }
  0x46   :  { %464 = vmatprep.subr.bf16.mxu1 %v463_v43  ;;  %v231_v61 = vld [vmem:[#allocation7 + $0xb8] sm:$0xff]  ;;  %v407_v0 = vpack.c.bf16 %v86_v59, %v84_v58  ;;  %v85_v2 = vld [vmem:[#allocation5 + $0xb0] sm:$0xff]  ;;  %v228_v3 = vld [vmem:[#allocation7 + $0xa0] sm:$0xff] }
  0x47   :  { %v471_v4 = vpack.c.bf16 %v231_v61, %v229_v60  ;;  %v230_v5 = vld [vmem:[#allocation7 + $0xb0] sm:$0xff]  ;;  %v88_v6 = vld [vmem:[#allocation5 + $0xc8] sm:$0xff]  ;;  %v90_v7 = vld [vmem:[#allocation5 + $0xd8] sm:$0xff]  ;;  %v409_v10 = vpack.c.bf16 %v85_v2, %v83_v1 }
  0x48   :  { %402 = vmatpush1.bf16.msra.mxu0 %v401_v50  ;;  %v233_v8 = vld [vmem:[#allocation7 + $0xc8] sm:$0xff]  ;;  %v235_v9 = vld [vmem:[#allocation7 + $0xd8] sm:$0xff]  ;;  %v473_v11 = vpack.c.bf16 %v230_v5, %v228_v3  ;;  %v411_v12 = vpack.c.bf16 %v90_v7, %v88_v6  ;;  %v87_v13 = vld [vmem:[#allocation5 + $0xc0] sm:$0xff] }
  0x49   :  { %466 = vmatpush1.bf16.msra.mxu1 %v465_v51  ;;  %404 = vmatprep.subr.bf16.mxu0 %v403_v52  ;;  %v89_v14 = vld [vmem:[#allocation5 + $0xd0] sm:$0xff]  ;;  %v232_v15 = vld [vmem:[#allocation7 + $0xc0] sm:$0xff]  ;;  %v475_v16 = vpack.c.bf16 %v235_v9, %v233_v8  ;;  %v92_v18 = vld [vmem:[#allocation5 + $0xe8] sm:$0xff] }
  0x4a   :  { %468 = vmatprep.subr.bf16.mxu1 %v467_v56  ;;  %v234_v17 = vld [vmem:[#allocation7 + $0xd0] sm:$0xff]  ;;  %v94_v19 = vld [vmem:[#allocation5 + $0xf8] sm:$0xff]  ;;  %v237_v20 = vld [vmem:[#allocation7 + $0xe8] sm:$0xff]  ;;  %v413_v22 = vpack.c.bf16 %v89_v14, %v87_v13 }
  0x4b   :  { %v239_v21 = vld [vmem:[#allocation7 + $0xf8] sm:$0xff]  ;;  %v477_v23 = vpack.c.bf16 %v234_v17, %v232_v15  ;;  %v415_v24 = vpack.c.bf16 %v94_v19, %v92_v18  ;;  %v91_v25 = vld [vmem:[#allocation5 + $0xe0] sm:$0xff]  ;;  %v93_v26 = vld [vmem:[#allocation5 + $0xf0] sm:$0xff] }
  0x4c   :  { %406 = vmatpush1.bf16.msra.mxu0 %v405_v62  ;;  %v236_v27 = vld [vmem:[#allocation7 + $0xe0] sm:$0xff]  ;;  %v479_v28 = vpack.c.bf16 %v239_v21, %v237_v20  ;;  %v238_v29 = vld [vmem:[#allocation7 + $0xf0] sm:$0xff]  ;;  %v96_v30 = vld [vmem:[#allocation5 + $0x108] sm:$0xff]  ;;  %v417_v34 = vpack.c.bf16 %v93_v26, %v91_v25 }
  0x4d   :  { %470 = vmatpush1.bf16.msra.mxu1 %v469_v63  ;;  %408 = vmatprep.subr.bf16.mxu0 %v407_v0  ;;  %v98_v31 = vld [vmem:[#allocation5 + $0x118] sm:$0xff]  ;;  %v241_v32 = vld [vmem:[#allocation7 + $0x108] sm:$0xff]  ;;  %v481_v35 = vpack.c.bf16 %v238_v29, %v236_v27  ;;  %v95_v37 = vld [vmem:[#allocation5 + $0x100] sm:$0xff] }
  0x4e   :  { %472 = vmatprep.subr.bf16.mxu1 %v471_v4  ;;  %v243_v33 = vld [vmem:[#allocation7 + $0x118] sm:$0xff]  ;;  %v419_v36 = vpack.c.bf16 %v98_v31, %v96_v30  ;;  %v97_v38 = vld [vmem:[#allocation5 + $0x110] sm:$0xff]  ;;  %v240_v39 = vld [vmem:[#allocation7 + $0x100] sm:$0xff] }
  0x4f   :  { %v483_v40 = vpack.c.bf16 %v243_v33, %v241_v32  ;;  %v242_v41 = vld [vmem:[#allocation7 + $0x110] sm:$0xff]  ;;  %v100_v42 = vld [vmem:[#allocation5 + $0x128] sm:$0xff]  ;;  %v102_v43 = vld [vmem:[#allocation5 + $0x138] sm:$0xff]  ;;  %v421_v46 = vpack.c.bf16 %v97_v38, %v95_v37 }
  0x50   :  { %410 = vmatpush1.bf16.msra.mxu0 %v409_v10  ;;  %v245_v44 = vld [vmem:[#allocation7 + $0x128] sm:$0xff]  ;;  %v247_v45 = vld [vmem:[#allocation7 + $0x138] sm:$0xff]  ;;  %v485_v47 = vpack.c.bf16 %v242_v41, %v240_v39  ;;  %v423_v48 = vpack.c.bf16 %v102_v43, %v100_v42  ;;  %v99_v49 = vld [vmem:[#allocation5 + $0x120] sm:$0xff] }
  0x51   :  { %474 = vmatpush1.bf16.msra.mxu1 %v473_v11  ;;  %412 = vmatprep.subr.bf16.mxu0 %v411_v12  ;;  %v101_v50 = vld [vmem:[#allocation5 + $0x130] sm:$0xff]  ;;  %v244_v51 = vld [vmem:[#allocation7 + $0x120] sm:$0xff]  ;;  %v487_v52 = vpack.c.bf16 %v247_v45, %v245_v44  ;;  %v104_v54 = vld [vmem:[#allocation5 + $0x148] sm:$0xff] }
  0x52   :  { %476 = vmatprep.subr.bf16.mxu1 %v475_v16  ;;  %v246_v53 = vld [vmem:[#allocation7 + $0x130] sm:$0xff]  ;;  %v106_v55 = vld [vmem:[#allocation5 + $0x158] sm:$0xff]  ;;  %v249_v56 = vld [vmem:[#allocation7 + $0x148] sm:$0xff]  ;;  %v425_v58 = vpack.c.bf16 %v101_v50, %v99_v49 }
  0x53   :  { %v251_v57 = vld [vmem:[#allocation7 + $0x158] sm:$0xff]  ;;  %v489_v59 = vpack.c.bf16 %v246_v53, %v244_v51  ;;  %v427_v60 = vpack.c.bf16 %v106_v55, %v104_v54  ;;  %v103_v61 = vld [vmem:[#allocation5 + $0x140] sm:$0xff]  ;;  %v105_v62 = vld [vmem:[#allocation5 + $0x150] sm:$0xff] }
  0x54   :  { %414 = vmatpush1.bf16.msra.mxu0 %v413_v22  ;;  %v248_v63 = vld [vmem:[#allocation7 + $0x140] sm:$0xff]  ;;  %v491_v0 = vpack.c.bf16 %v251_v57, %v249_v56  ;;  %v250_v1 = vld [vmem:[#allocation7 + $0x150] sm:$0xff]  ;;  %v108_v2 = vld [vmem:[#allocation5 + $0x168] sm:$0xff]  ;;  %v429_v6 = vpack.c.bf16 %v105_v62, %v103_v61 }
  0x55   :  { %478 = vmatpush1.bf16.msra.mxu1 %v477_v23  ;;  %416 = vmatprep.subr.bf16.mxu0 %v415_v24  ;;  %v110_v3 = vld [vmem:[#allocation5 + $0x178] sm:$0xff]  ;;  %v253_v4 = vld [vmem:[#allocation7 + $0x168] sm:$0xff]  ;;  %v107_v7 = vld [vmem:[#allocation5 + $0x160] sm:$0xff]  ;;  %v493_v8 = vpack.c.bf16 %v250_v1, %v248_v63 }
  0x56   :  { %480 = vmatprep.subr.bf16.mxu1 %v479_v28  ;;  %v255_v5 = vld [vmem:[#allocation7 + $0x178] sm:$0xff]  ;;  %v431_v9 = vpack.c.bf16 %v110_v3, %v108_v2  ;;  %v109_v10 = vld [vmem:[#allocation5 + $0x170] sm:$0xff]  ;;  %v252_v11 = vld [vmem:[#allocation7 + $0x160] sm:$0xff] }
  0x57   :  { %v254_v12 = vld [vmem:[#allocation7 + $0x170] sm:$0xff]  ;;  %v495_v13 = vpack.c.bf16 %v255_v5, %v253_v4  ;;  %v112_v14 = vld [vmem:[#allocation5 + $0x188] sm:$0xff]  ;;  %v114_v15 = vld [vmem:[#allocation5 + $0x198] sm:$0xff]  ;;  %v433_v19 = vpack.c.bf16 %v109_v10, %v107_v7 }
  0x58   :  { %418 = vmatpush1.bf16.msra.mxu0 %v417_v34  ;;  %v60_v16 = vld [vmem:[#allocation2 + $0x8] sm:$0xff]  ;;  %v259_v18 = vld [vmem:[#allocation7 + $0x198] sm:$0xff]  ;;  %v497_v20 = vpack.c.bf16 %v254_v12, %v252_v11  ;;  %v435_v21 = vpack.c.bf16 %v114_v15, %v112_v14  ;;  %v111_v22 = vld [vmem:[#allocation5 + $0x180] sm:$0xff] }
  0x59   :  { %482 = vmatpush1.bf16.msra.mxu1 %v481_v35  ;;  %420 = vmatprep.subr.bf16.mxu0 %v419_v36  ;;  %v257_v17 = vld [vmem:[#allocation7 + $0x188] sm:$0xff]  ;;  %v113_v23 = vld [vmem:[#allocation5 + $0x190] sm:$0xff]  ;;  %v256_v24 = vld [vmem:[#allocation7 + $0x180] sm:$0xff] }
  0x5a   :  { %484 = vmatprep.subr.bf16.mxu1 %v483_v40  ;;  %191 = vmatprep.mubr.f32.mxu0 %v60_v16  ;;  %v499_v25 = vpack.c.bf16 %v259_v18, %v257_v17  ;;  %v258_v26 = vld [vmem:[#allocation7 + $0x190] sm:$0xff]  ;;  %v116_v27 = vld [vmem:[#allocation5 + $0x1a8] sm:$0xff]  ;;  %v118_v28 = vld [vmem:[#allocation5 + $0x1b8] sm:$0xff]  ;;  %v437_v31 = vpack.c.bf16 %v113_v23, %v111_v22 }
  0x5b   :  { %336 = vmatprep.mubr.f32.mxu1 %v60_v16  ;;  %v261_v29 = vld [vmem:[#allocation7 + $0x1a8] sm:$0xff]  ;;  %v263_v30 = vld [vmem:[#allocation7 + $0x1b8] sm:$0xff]  ;;  %v501_v32 = vpack.c.bf16 %v258_v26, %v256_v24  ;;  %v439_v33 = vpack.c.bf16 %v118_v28, %v116_v27  ;;  %v115_v34 = vld [vmem:[#allocation5 + $0x1a0] sm:$0xff] }
  0x5c   :  { %422 = vmatpush1.bf16.msra.mxu0 %v421_v46  ;;  %v117_v35 = vld [vmem:[#allocation5 + $0x1b0] sm:$0xff]  ;;  %v260_v36 = vld [vmem:[#allocation7 + $0x1a0] sm:$0xff]  ;;  %v503_v37 = vpack.c.bf16 %v263_v30, %v261_v29  ;;  %v120_v39 = vld [vmem:[#allocation5 + $0x1c8] sm:$0xff] }
  0x5d   :  { %486 = vmatpush1.bf16.msra.mxu1 %v485_v47  ;;  %424 = vmatprep.subr.bf16.mxu0 %v423_v48  ;;  %v262_v38 = vld [vmem:[#allocation7 + $0x1b0] sm:$0xff]  ;;  %v122_v40 = vld [vmem:[#allocation5 + $0x1d8] sm:$0xff]  ;;  %v265_v41 = vld [vmem:[#allocation7 + $0x1c8] sm:$0xff]  ;;  %v441_v43 = vpack.c.bf16 %v117_v35, %v115_v34 }
  0x5e   :  { %488 = vmatprep.subr.bf16.mxu1 %v487_v52  ;;  %v267_v42 = vld [vmem:[#allocation7 + $0x1d8] sm:$0xff]  ;;  %v505_v44 = vpack.c.bf16 %v262_v38, %v260_v36  ;;  %v443_v45 = vpack.c.bf16 %v122_v40, %v120_v39  ;;  %v119_v46 = vld [vmem:[#allocation5 + $0x1c0] sm:$0xff]  ;;  %v121_v47 = vld [vmem:[#allocation5 + $0x1d0] sm:$0xff] }
  0x5f   :  { %v264_v48 = vld [vmem:[#allocation7 + $0x1c0] sm:$0xff]  ;;  %v507_v49 = vpack.c.bf16 %v267_v42, %v265_v41  ;;  %v266_v50 = vld [vmem:[#allocation7 + $0x1d0] sm:$0xff]  ;;  %v124_v51 = vld [vmem:[#allocation5 + $0x1e8] sm:$0xff]  ;;  %v445_v55 = vpack.c.bf16 %v121_v47, %v119_v46 }
  0x60   :  { %426 = vmatpush1.bf16.msra.mxu0 %v425_v58  ;;  %v126_v52 = vld [vmem:[#allocation5 + $0x1f8] sm:$0xff]  ;;  %v269_v53 = vld [vmem:[#allocation7 + $0x1e8] sm:$0xff]  ;;  %v509_v56 = vpack.c.bf16 %v266_v50, %v264_v48  ;;  %v123_v58 = vld [vmem:[#allocation5 + $0x1e0] sm:$0xff] }
  0x61   :  { %490 = vmatpush1.bf16.msra.mxu1 %v489_v59  ;;  %428 = vmatprep.subr.bf16.mxu0 %v427_v60  ;;  %v271_v54 = vld [vmem:[#allocation7 + $0x1f8] sm:$0xff]  ;;  %v447_v57 = vpack.c.bf16 %v126_v52, %v124_v51  ;;  %v125_v59 = vld [vmem:[#allocation5 + $0x1f0] sm:$0xff]  ;;  %v268_v61 = vld [vmem:[#allocation7 + $0x1e0] sm:$0xff] }
  0x62   :  { %492 = vmatprep.subr.bf16.mxu1 %v491_v0  ;;  %v511_v60 = vpack.c.bf16 %v271_v54, %v269_v53  ;;  %v270_v62 = vld [vmem:[#allocation7 + $0x1f0] sm:$0xff]  ;;  %v449_v63 = vpack.c.bf16 %v125_v59, %v123_v58  ;;  %v59_v1 = vld [vmem:[#allocation2] sm:$0xff]  ;;  %v62_v2 = vld [vmem:[#allocation2 + $0x18] sm:$0xff] }
  0x63   :  { %v513_v0 = vpack.c.bf16 %v270_v62, %v268_v61  ;;  %v61_v3 = vld [vmem:[#allocation2 + $0x10] sm:$0xff] }
  0x64   :  { %430 = vmatpush1.bf16.msra.mxu0 %v429_v6 }
  0x65   :  { %494 = vmatpush1.bf16.msra.mxu1 %v493_v8  ;;  %432 = vmatprep.subr.bf16.mxu0 %v431_v9 }
  0x66   :  { %496 = vmatprep.subr.bf16.mxu1 %v495_v13 }
  0x68   :  { %434 = vmatpush1.bf16.msra.mxu0 %v433_v19 }
  0x69   :  { %498 = vmatpush1.bf16.msra.mxu1 %v497_v20  ;;  %436 = vmatprep.subr.bf16.mxu0 %v435_v21 }
  0x6a   :  { %500 = vmatprep.subr.bf16.mxu1 %v499_v25 }
  0x6c   :  { %438 = vmatpush1.bf16.msra.mxu0 %v437_v31 }
  0x6d   :  { %502 = vmatpush1.bf16.msra.mxu1 %v501_v32  ;;  %440 = vmatprep.subr.bf16.mxu0 %v439_v33 }
  0x6e   :  { %504 = vmatprep.subr.bf16.mxu1 %v503_v37 }
  0x70   :  { %442 = vmatpush1.bf16.msra.mxu0 %v441_v43 }
  0x71   :  { %506 = vmatpush1.bf16.msra.mxu1 %v505_v44  ;;  %444 = vmatprep.subr.bf16.mxu0 %v443_v45 }
  0x72   :  { %508 = vmatprep.subr.bf16.mxu1 %v507_v49 }
  0x74   :  { %446 = vmatpush1.bf16.msra.mxu0 %v445_v55 }
  0x75   :  { %510 = vmatpush1.bf16.msra.mxu1 %v509_v56  ;;  %448 = vmatprep.subr.bf16.mxu0 %v447_v57 }
  0x76   :  { %512 = vmatprep.subr.bf16.mxu1 %v511_v60 }
  0x78   :  { %450 = vmatpush1.bf16.msra.mxu0 %v449_v63 }
  0x79   :  { %514 = vmatpush1.bf16.msra.mxu1 %v513_v0 }
  0x7b   :  { %192 = vmatmul.mubr.f32.vlgmr.msra.gmra.mrb[0].mxu0 %v59_v1 }
  0x7c   :  { %337 = vmatmul.mubr.f32.vlgmr.msra.gmra.mrb[0].mxu1 %v59_v1  ;;  %197 = vmatprep.mubr.f32.mxu0 %v62_v2 }
  0x7d   :  { %342 = vmatprep.mubr.f32.mxu1 %v62_v2 }
  0x7f   :  { %198 = vmatmul.mubr.f32.gmra.mrb[2].mxu0 %v61_v3 }
  0x80   :  { %343 = vmatmul.mubr.f32.gmra.mrb[2].mxu1 %v61_v3 }
 0x14e   :  { %v193_v4 = vpop.f32.mrb[0].mxu0 }
 0x14f   :  { %204 = vst [vmem:[#allocation8] sm:$0xff] %v193_v4  ;;  %v338_v5 = vpop.f32.mrb[0].mxu1  ;;  %v195_v6 = vpop.f32.mrb[1].mxu0 }
 0x150   :  { %349 = vst [vmem:[#allocation9] sm:$0xff] %v338_v5  ;;  %205 = vst [vmem:[#allocation8 + $0x8] sm:$0xff] %v195_v6  ;;  %v340_v7 = vpop.f32.mrb[1].mxu1 }
 0x151   :  { %350 = vst [vmem:[#allocation9 + $0x8] sm:$0xff] %v340_v7 }
 0x152   :  { %v199_v8 = vpop.f32.mrb[2].mxu0 }
 0x153   :  { %206 = vst [vmem:[#allocation8 + $0x10] sm:$0xff] %v199_v8  ;;  %v344_v9 = vpop.f32.mrb[2].mxu1  ;;  %v201_v10 = vpop.f32.mrb[3].mxu0 }
 0x154   :  { %351 = vst [vmem:[#allocation9 + $0x10] sm:$0xff] %v344_v9  ;;  %207 = vst [vmem:[#allocation8 + $0x18] sm:$0xff] %v201_v10  ;;  %v346_v11 = vpop.f32.mrb[3].mxu1 }
 0x155   :  { %352 = vst [vmem:[#allocation9 + $0x18] sm:$0xff] %v346_v11 }
 0x156   :  { %599 = shalt.err (!%p596_p0)
}
 0x157   :  { %s600_s7 = scalar_lea.hbm %s764_s3, 512 }
 0x158   :  { %p601_p1 = scmp.ne.s32.totalorder %s764_s3, %s600_s7  ;;  %p604_p2 = scmp.lt.u32.totalorder %s600_s7, %s764_s3 }
 0x15a   :  { %p606_p3 = pnand %p604_p2, %p601_p1 }
 0x15c   :  { %609 = shalt.err (!%p606_p3)
}
 0x15d   :  { %364 = dma.vmem_to_hbm [thread:$0]  %s359_s25, 512, %s764_s3, [#allocation4], %s642_s27, %s642_s27, %s643_s28  }
 0x15e   :  { %s610_s13 = scalar_lea.vmem %s724_s29, 512  ;;  %p615_p5 = scmp.lt.s32.totalorder %s724_s29, %s724_s29 }
 0x15f   :  { %p611_p4 = scmp.ne.s32.totalorder %s724_s29, %s610_s13  ;;  %p616_p6 = scmp.lt.s32.totalorder %s610_s13, %s610_s13 }
 0x161   :  { %p617_p7 = por %p616_p6, %p615_p5 }
 0x163   :  { %p618_p8 = pnand %p617_p7, %p611_p4 }
 0x165   :  { %621 = shalt.err (!%p618_p8)
}
 0x166   :  { %s622_s16 = scalar_lea.hbm %s765_s4, 512 }
 0x167   :  { %p623_p9 = scmp.ne.s32.totalorder %s765_s4, %s622_s16  ;;  %p626_p10 = scmp.lt.u32.totalorder %s622_s16, %s765_s4 }
 0x169   :  { %p628_p11 = pnand %p626_p10, %p623_p9 }
 0x16b   :  { %631 = shalt.err (!%p628_p11)
}
 0x16c   :  { %376 = dma.vmem_to_hbm [thread:$0]  %s724_s29, 512, %s765_s4, [#allocation10], %s642_s27, %s642_s27, %s643_s28  }
 0x16d   :  { %636 = dma.done.wait [#allocation4], 512  }
 0x16e   :  { %637 = vsyncadd [#allocation4], 4294966784 }
 0x16f   :  { %638 = dma.done.wait [#allocation10], 512  }
 0x170   :  { %639 = vsyncadd [#allocation10], 4294966784 }
 0x171   :  { %383 = vsyncpa [#allocation3], 1 }
 0x172   :  { %384 = vsyncpa [#allocation6], 1 }
 0x173   :  { %385 = vsyncpa [#allocation4], 1 }
 0x174   :  { %386 = vsyncpa [#allocation10], 1 }

// kernel: decoder_block.15
= control target key start
LH: loop header
LB: loop body
LE: loop exit
PB: predicated region body
PF: predicated region fallthrough
CT: control target
= control target key end

     0   :  { %12 = vsyncpa [#allocation4], 0  ;;  %s1511_s0 = inlined_call_operand.hbm [shape: f32[16,256], index: 0, kind: input, shape index: {}]   ;;  %s1512_s1 = inlined_call_operand.hbm [shape: f32[256,512], index: 1, kind: input, shape index: {}]   ;;  %s1513_s2 = inlined_call_operand.hbm [shape: f32[1,512], index: 2, kind: input, shape index: {}]   ;;  %s1514_s3 = inlined_call_operand.hbm [shape: f32[512,256], index: 3, kind: input, shape index: {}]   ;;  %s1515_s4 = inlined_call_operand.hbm [shape: f32[1,256], index: 4, kind: input, shape index: {}]   ;;  %s1516_s5 = inlined_call_operand.hbm [shape: f32[1,256], index: 5, kind: input, shape index: {}]   ;;  %s1517_s6 = inlined_call_operand.hbm [shape: f32[1,256], index: 6, kind: input, shape index: {}]   ;;  %s1518_s7 = inlined_call_operand.hbm [shape: f32[16,256], index: 7, kind: output, shape index: {}]  }
   0x1   :  { %13 = vsyncpa [#allocation7], 0 }
   0x2   :  { %14 = vsyncpa [#allocation10], 0 }
   0x3   :  { %15 = vsyncpa [#allocation13], 0 }
   0x4   :  { %16 = vsyncpa [#allocation5], 0  ;;  %s1311_s24 = smov [#allocation6]   ;;  %s1125_s28 = scalar_lea.hbm %s1512_s1, 16384 }
   0x5   :  { %s34_s25 = sshll.u32 %s1311_s24, 4  ;;  %p1126_p0 = scmp.ne.s32.totalorder %s1512_s1, %s1125_s28  ;;  %s35_s25 = int_to_ptr.vmem [resolvable:$true] %s34_s25 }
   0x6   :  { %p1129_p1 = scmp.lt.u32.totalorder %s1125_s28, %s1512_s1 }
   0x8   :  { %p1131_p2 = pnand %p1129_p1, %p1126_p0 }
   0xa   :  { %1134 = shalt.err (!%p1131_p2)
}
   0xb   :  { %s1135_s10 = scalar_lea.vmem %s35_s25, 16384  ;;  %p1140_p4 = scmp.lt.s32.totalorder %s35_s25, %s35_s25 }
   0xc   :  { %p1136_p3 = scmp.ne.s32.totalorder %s35_s25, %s1135_s10  ;;  %p1141_p5 = scmp.lt.s32.totalorder %s1135_s10, %s1135_s10 }
   0xe   :  { %p1142_p6 = por %p1141_p5, %p1140_p4 }
  0x10   :  { %p1143_p7 = pnand %p1142_p6, %p1136_p3 }
  0x12   :  { %1146 = shalt.err (!%p1143_p7)
}
  0x13   :  { %s1312_s11 = smov 512   ;;  %s1313_s12 = smov 32  }
  0x14   :  { %40 = dma.hbm_to_vmem [thread:$0]  %s1512_s1, 16384, %s35_s25, [#allocation7], %s1312_s11, %s1312_s11, %s1313_s12  }
  0x15   :  { %s1314_s15 = smov [#allocation9]   ;;  %s1315_s17 = smov [#allocation12]  }
  0x16   :  { %s56_s16 = sshll.u32 %s1314_s15, 4  ;;  %s79_s18 = sshll.u32 %s1315_s17, 4  ;;  %s57_s16 = int_to_ptr.vmem [resolvable:$true] %s56_s16  ;;  %s80_s18 = int_to_ptr.vmem [resolvable:$true] %s79_s18 }
  0x17   :  { %s1147_s21 = scalar_lea.hbm %s1514_s3, 16384 }
  0x18   :  { %p1148_p8 = scmp.ne.s32.totalorder %s1514_s3, %s1147_s21  ;;  %p1151_p9 = scmp.lt.u32.totalorder %s1147_s21, %s1514_s3 }
  0x1a   :  { %p1153_p10 = pnand %p1151_p9, %p1148_p8 }
  0x1c   :  { %1156 = shalt.err (!%p1153_p10)
}
  0x1d   :  { %s1157_s1 = scalar_lea.vmem %s57_s16, 16384  ;;  %p1162_p12 = scmp.lt.s32.totalorder %s57_s16, %s57_s16 }
  0x1e   :  { %p1158_p11 = scmp.ne.s32.totalorder %s57_s16, %s1157_s1  ;;  %p1163_p13 = scmp.lt.s32.totalorder %s1157_s1, %s1157_s1 }
  0x20   :  { %p1164_p0 = por %p1163_p13, %p1162_p12 }
  0x22   :  { %p1165_p1 = pnand %p1164_p0, %p1158_p11 }
  0x24   :  { %1168 = shalt.err (!%p1165_p1)
}
  0x25   :  { %s1316_s25 = smov 256   ;;  %s1317_s27 = smov 16  }
  0x26   :  { %62 = dma.hbm_to_vmem [thread:$0]  %s1514_s3, 16384, %s57_s16, [#allocation10], %s1316_s25, %s1316_s25, %s1317_s27  }
  0x27   :  { %s1169_s9 = scalar_lea.hbm %s1516_s5, 32 }
  0x28   :  { %p1170_p2 = scmp.ne.s32.totalorder %s1516_s5, %s1169_s9  ;;  %p1173_p3 = scmp.lt.u32.totalorder %s1169_s9, %s1516_s5 }
  0x2a   :  { %p1175_p4 = pnand %p1173_p3, %p1170_p2 }
  0x2c   :  { %1178 = shalt.err (!%p1175_p4)
}
  0x2d   :  { %s1179_s14 = scalar_lea.vmem %s80_s18, 32  ;;  %p1184_p6 = scmp.lt.s32.totalorder %s80_s18, %s80_s18 }
  0x2e   :  { %p1180_p5 = scmp.ne.s32.totalorder %s80_s18, %s1179_s14  ;;  %p1185_p7 = scmp.lt.s32.totalorder %s1179_s14, %s1179_s14 }
  0x30   :  { %p1186_p8 = por %p1185_p7, %p1184_p6 }
  0x32   :  { %p1187_p9 = pnand %p1186_p8, %p1180_p5 }
  0x34   :  { %1190 = shalt.err (!%p1187_p9)
}
  0x35   :  { %82 = dma.hbm_to_vmem [thread:$0]  %s1516_s5, 32, %s80_s18, [#allocation13]  }
  0x36   :  { %s1318_s16 = smov [#allocation3]   ;;  %s1319_s19 = smov [#allocation8]  }
  0x37   :  { %s22_s17 = sshll.u32 %s1318_s16, 4  ;;  %s47_s20 = sshll.u32 %s1319_s19, 4  ;;  %s23_s17 = int_to_ptr.vmem [resolvable:$true] %s22_s17  ;;  %s48_s20 = int_to_ptr.vmem [resolvable:$true] %s47_s20 }
  0x38   :  { %s1191_s23 = scalar_lea.hbm %s1511_s0, 512 }
  0x39   :  { %p1192_p10 = scmp.ne.s32.totalorder %s1511_s0, %s1191_s23  ;;  %p1195_p11 = scmp.lt.u32.totalorder %s1191_s23, %s1511_s0 }
  0x3b   :  { %p1197_p12 = pnand %p1195_p11, %p1192_p10 }
  0x3d   :  { %1200 = shalt.err (!%p1197_p12)
}
  0x3e   :  { %s1201_s5 = scalar_lea.vmem %s23_s17, 512  ;;  %p1206_p0 = scmp.lt.s32.totalorder %s23_s17, %s23_s17 }
  0x3f   :  { %p1202_p13 = scmp.ne.s32.totalorder %s23_s17, %s1201_s5  ;;  %p1207_p1 = scmp.lt.s32.totalorder %s1201_s5, %s1201_s5 }
  0x41   :  { %p1208_p2 = por %p1207_p1, %p1206_p0 }
  0x43   :  { %p1209_p3 = pnand %p1208_p2, %p1202_p13 }
  0x45   :  { %1212 = shalt.err (!%p1209_p3)
}
  0x46   :  { %28 = dma.hbm_to_vmem [thread:$0]  %s1511_s0, 512, %s23_s17, [#allocation4], %s1316_s25, %s1316_s25, %s1317_s27  }
  0x47   :  { %s1213_s9 = scalar_lea.hbm %s1513_s2, 64 }
  0x48   :  { %p1214_p4 = scmp.ne.s32.totalorder %s1513_s2, %s1213_s9  ;;  %p1217_p5 = scmp.lt.u32.totalorder %s1213_s9, %s1513_s2 }
  0x4a   :  { %p1219_p6 = pnand %p1217_p5, %p1214_p4 }
  0x4c   :  { %1222 = shalt.err (!%p1219_p6)
}
  0x4d   :  { %s1223_s14 = scalar_lea.vmem %s48_s20, 64  ;;  %p1228_p8 = scmp.lt.s32.totalorder %s48_s20, %s48_s20 }
  0x4e   :  { %p1224_p7 = scmp.ne.s32.totalorder %s48_s20, %s1223_s14  ;;  %p1229_p9 = scmp.lt.s32.totalorder %s1223_s14, %s1223_s14 }
  0x50   :  { %p1230_p10 = por %p1229_p9, %p1228_p8 }
  0x52   :  { %p1231_p11 = pnand %p1230_p10, %p1224_p7 }
  0x54   :  { %1234 = shalt.err (!%p1231_p11)
}
  0x55   :  { %50 = dma.hbm_to_vmem [thread:$0]  %s1513_s2, 64, %s48_s20, [#allocation7]  }
  0x56   :  { %s1320_s15 = smov [#allocation11]   ;;  %s1321_s17 = smov [#allocation14]  }
  0x57   :  { %s69_s16 = sshll.u32 %s1320_s15, 4  ;;  %s89_s19 = sshll.u32 %s1321_s17, 4  ;;  %s70_s16 = int_to_ptr.vmem [resolvable:$true] %s69_s16  ;;  %s90_s19 = int_to_ptr.vmem [resolvable:$true] %s89_s19 }
  0x58   :  { %s1235_s23 = scalar_lea.hbm %s1515_s4, 32 }
  0x59   :  { %p1236_p12 = scmp.ne.s32.totalorder %s1515_s4, %s1235_s23  ;;  %p1239_p13 = scmp.lt.u32.totalorder %s1235_s23, %s1515_s4 }
  0x5b   :  { %p1241_p0 = pnand %p1239_p13, %p1236_p12 }
  0x5d   :  { %1244 = shalt.err (!%p1241_p0)
}
  0x5e   :  { %s1245_s2 = scalar_lea.vmem %s70_s16, 32  ;;  %p1250_p2 = scmp.lt.s32.totalorder %s70_s16, %s70_s16 }
  0x5f   :  { %p1246_p1 = scmp.ne.s32.totalorder %s70_s16, %s1245_s2  ;;  %p1251_p3 = scmp.lt.s32.totalorder %s1245_s2, %s1245_s2 }
  0x61   :  { %p1252_p4 = por %p1251_p3, %p1250_p2 }
  0x63   :  { %p1253_p5 = pnand %p1252_p4, %p1246_p1 }
  0x65   :  { %1256 = shalt.err (!%p1253_p5)
}
  0x66   :  { %72 = dma.hbm_to_vmem [thread:$0]  %s1515_s4, 32, %s70_s16, [#allocation10]  }
  0x67   :  { %s1257_s30 = scalar_lea.hbm %s1517_s6, 32 }
  0x68   :  { %p1258_p6 = scmp.ne.s32.totalorder %s1517_s6, %s1257_s30  ;;  %p1261_p7 = scmp.lt.u32.totalorder %s1257_s30, %s1517_s6 }
  0x6a   :  { %p1263_p8 = pnand %p1261_p7, %p1258_p6 }
  0x6c   :  { %1266 = shalt.err (!%p1263_p8)
}
  0x6d   :  { %s1267_s12 = scalar_lea.vmem %s90_s19, 32  ;;  %p1272_p10 = scmp.lt.s32.totalorder %s90_s19, %s90_s19 }
  0x6e   :  { %p1268_p9 = scmp.ne.s32.totalorder %s90_s19, %s1267_s12  ;;  %p1273_p11 = scmp.lt.s32.totalorder %s1267_s12, %s1267_s12 }
  0x70   :  { %p1274_p12 = por %p1273_p11, %p1272_p10 }
  0x72   :  { %p1275_p13 = pnand %p1274_p12, %p1268_p9 }
  0x74   :  { %1278 = shalt.err (!%p1275_p13)
}
  0x75   :  { %92 = dma.hbm_to_vmem [thread:$0]  %s1517_s6, 32, %s90_s19, [#allocation13]  }
  0x76   :  { %1301 = dma.done.wait [#allocation4], 512  }
  0x77   :  { %1302 = vsyncadd [#allocation4], 4294966784 }
  0x78   :  { %1303 = dma.done.wait [#allocation7], 16448  }
  0x79   :  { %1304 = vsyncadd [#allocation7], 4294950848 }
  0x7a   :  { %1305 = dma.done.wait [#allocation10], 16416  }
  0x7b   :  { %1306 = vsyncadd [#allocation10], 4294950880 }
  0x7c   :  { %1307 = dma.done.wait [#allocation13], 64  }
  0x7d   :  { %1308 = vsyncadd [#allocation13], 4294967232  ;;  %v127_v0 = vld [vmem:[#allocation6 + $0x8] sm:$0xff]  ;;  %v126_v2 = vld [vmem:[#allocation6] sm:$0xff]  ;;  %s1322_s6 = smov [#allocation15]  }
  0x7e   :  { %v131_v1 = vld [vmem:[#allocation6 + $0x28] sm:$0xff]  ;;  %v130_v4 = vld [vmem:[#allocation6 + $0x20] sm:$0xff]  ;;  %s833_s14 = sshll.u32 %s1322_s6, 4  ;;  %s834_s14 = int_to_ptr.vmem [resolvable:$true] %s833_s14 }
  0x7f   :  { %v848_v3 = vpack.c.bf16 %v131_v1, %v127_v0  ;;  %v135_v5 = vld [vmem:[#allocation6 + $0x48] sm:$0xff]  ;;  %v850_v7 = vpack.c.bf16 %v130_v4, %v126_v2  ;;  %v134_v9 = vld [vmem:[#allocation6 + $0x40] sm:$0xff]  ;;  %s1279_s0 = scalar_lea.vmem %s834_s14, 512  ;;  %p1284_p1 = scmp.lt.s32.totalorder %s834_s14, %s834_s14 }
  0x80   :  { %v139_v6 = vld [vmem:[#allocation6 + $0x68] sm:$0xff]  ;;  %v138_v10 = vld [vmem:[#allocation6 + $0x60] sm:$0xff]  ;;  %p1280_p0 = scmp.ne.s32.totalorder %s834_s14, %s1279_s0  ;;  %p1285_p2 = scmp.lt.s32.totalorder %s1279_s0, %s1279_s0 }
  0x81   :  { %v852_v8 = vpack.c.bf16 %v139_v6, %v135_v5  ;;  %v143_v11 = vld [vmem:[#allocation6 + $0x88] sm:$0xff]  ;;  %849 = vmatprep.subr.bf16.mxu1 %v848_v3  ;;  %v854_v13 = vpack.c.bf16 %v138_v10, %v134_v9  ;;  %v142_v15 = vld [vmem:[#allocation6 + $0x80] sm:$0xff] }
  0x82   :  { %v147_v12 = vld [vmem:[#allocation6 + $0xa8] sm:$0xff]  ;;  %851 = vmatpush1.bf16.msra.mxu1 %v850_v7  ;;  %v146_v16 = vld [vmem:[#allocation6 + $0xa0] sm:$0xff]  ;;  %p1286_p3 = por %p1285_p2, %p1284_p1 }
  0x83   :  { %853 = vmatprep.subr.bf16.mxu1 %v852_v8  ;;  %v856_v14 = vpack.c.bf16 %v147_v12, %v143_v11  ;;  %v151_v17 = vld [vmem:[#allocation6 + $0xc8] sm:$0xff]  ;;  %v858_v19 = vpack.c.bf16 %v146_v16, %v142_v15  ;;  %v150_v21 = vld [vmem:[#allocation6 + $0xc0] sm:$0xff] }
  0x84   :  { %v155_v18 = vld [vmem:[#allocation6 + $0xe8] sm:$0xff]  ;;  %v154_v22 = vld [vmem:[#allocation6 + $0xe0] sm:$0xff]  ;;  %p1287_p4 = pnand %p1286_p3, %p1280_p0 }
  0x85   :  { %v860_v20 = vpack.c.bf16 %v155_v18, %v151_v17  ;;  %v159_v23 = vld [vmem:[#allocation6 + $0x108] sm:$0xff]  ;;  %v862_v25 = vpack.c.bf16 %v154_v22, %v150_v21  ;;  %v158_v27 = vld [vmem:[#allocation6 + $0x100] sm:$0xff] }
  0x86   :  { %855 = vmatpush1.bf16.msra.mxu1 %v854_v13  ;;  %v163_v24 = vld [vmem:[#allocation6 + $0x128] sm:$0xff]  ;;  %v162_v28 = vld [vmem:[#allocation6 + $0x120] sm:$0xff] }
  0x87   :  { %857 = vmatprep.subr.bf16.mxu1 %v856_v14  ;;  %v864_v26 = vpack.c.bf16 %v163_v24, %v159_v23  ;;  %v167_v29 = vld [vmem:[#allocation6 + $0x148] sm:$0xff]  ;;  %v866_v31 = vpack.c.bf16 %v162_v28, %v158_v27  ;;  %v166_v33 = vld [vmem:[#allocation6 + $0x140] sm:$0xff] }
  0x88   :  { %v171_v30 = vld [vmem:[#allocation6 + $0x168] sm:$0xff]  ;;  %v170_v34 = vld [vmem:[#allocation6 + $0x160] sm:$0xff] }
  0x89   :  { %v868_v32 = vpack.c.bf16 %v171_v30, %v167_v29  ;;  %v175_v35 = vld [vmem:[#allocation6 + $0x188] sm:$0xff]  ;;  %v870_v37 = vpack.c.bf16 %v170_v34, %v166_v33  ;;  %v174_v39 = vld [vmem:[#allocation6 + $0x180] sm:$0xff] }
  0x8a   :  { %859 = vmatpush1.bf16.msra.mxu1 %v858_v19  ;;  %v179_v36 = vld [vmem:[#allocation6 + $0x1a8] sm:$0xff]  ;;  %v178_v40 = vld [vmem:[#allocation6 + $0x1a0] sm:$0xff] }
  0x8b   :  { %861 = vmatprep.subr.bf16.mxu1 %v860_v20  ;;  %v872_v38 = vpack.c.bf16 %v179_v36, %v175_v35  ;;  %v1453_v41 = vld [vmem:[#allocation3 + $0x8] sm:$0xff]  ;;  %v874_v44 = vpack.c.bf16 %v178_v40, %v174_v39  ;;  %v182_v46 = vld [vmem:[#allocation6 + $0x1c0] sm:$0xff]  ;;  %v444_v20 = vld [vmem:[#allocation9 + $0x10] sm:$0xff] }
  0x8c   :  { %v183_v42 = vld [vmem:[#allocation6 + $0x1c8] sm:$0xff]  ;;  %340 = vmatprep.mubr.f32.mxu1 %v1453_v41  ;;  %v186_v47 = vld [vmem:[#allocation6 + $0x1e0] sm:$0xff] }
  0x8d   :  { %v187_v43 = vld [vmem:[#allocation6 + $0x1e8] sm:$0xff]  ;;  %v878_v50 = vpack.c.bf16 %v186_v47, %v182_v46  ;;  %v190_v52 = vld [vmem:[#allocation6 + $0x200] sm:$0xff] }
  0x8e   :  { %863 = vmatpush1.bf16.msra.mxu1 %v862_v25  ;;  %v876_v45 = vpack.c.bf16 %v187_v43, %v183_v42  ;;  %v191_v48 = vld [vmem:[#allocation6 + $0x208] sm:$0xff]  ;;  %v194_v53 = vld [vmem:[#allocation6 + $0x220] sm:$0xff] }
  0x8f   :  { %865 = vmatprep.subr.bf16.mxu1 %v864_v26  ;;  %v195_v49 = vld [vmem:[#allocation6 + $0x228] sm:$0xff]  ;;  %v882_v56 = vpack.c.bf16 %v194_v53, %v190_v52  ;;  %v198_v58 = vld [vmem:[#allocation6 + $0x240] sm:$0xff]  ;;  %v448_v26 = vld [vmem:[#allocation9 + $0x30] sm:$0xff] }
  0x90   :  { %v880_v51 = vpack.c.bf16 %v195_v49, %v191_v48  ;;  %v199_v54 = vld [vmem:[#allocation6 + $0x248] sm:$0xff]  ;;  %v202_v59 = vld [vmem:[#allocation6 + $0x260] sm:$0xff] }
  0x91   :  { %v203_v55 = vld [vmem:[#allocation6 + $0x268] sm:$0xff]  ;;  %v886_v62 = vpack.c.bf16 %v202_v59, %v198_v58  ;;  %v206_v0 = vld [vmem:[#allocation6 + $0x280] sm:$0xff]  ;;  %v129_v59 = vld [vmem:[#allocation6 + $0x18] sm:$0xff] }
  0x92   :  { %867 = vmatpush1.bf16.msra.mxu1 %v866_v31  ;;  %v884_v57 = vpack.c.bf16 %v203_v55, %v199_v54  ;;  %v207_v60 = vld [vmem:[#allocation6 + $0x288] sm:$0xff]  ;;  %v210_v1 = vld [vmem:[#allocation6 + $0x2a0] sm:$0xff] }
  0x93   :  { %869 = vmatprep.subr.bf16.mxu1 %v868_v32  ;;  %v211_v61 = vld [vmem:[#allocation6 + $0x2a8] sm:$0xff]  ;;  %v890_v4 = vpack.c.bf16 %v210_v1, %v206_v0  ;;  %v214_v6 = vld [vmem:[#allocation6 + $0x2c0] sm:$0xff] }
  0x94   :  { %v888_v63 = vpack.c.bf16 %v211_v61, %v207_v60  ;;  %v215_v2 = vld [vmem:[#allocation6 + $0x2c8] sm:$0xff]  ;;  %v218_v7 = vld [vmem:[#allocation6 + $0x2e0] sm:$0xff] }
  0x95   :  { %v219_v3 = vld [vmem:[#allocation6 + $0x2e8] sm:$0xff]  ;;  %v222_v10 = vld [vmem:[#allocation6 + $0x300] sm:$0xff]  ;;  %v894_v12 = vpack.c.bf16 %v218_v7, %v214_v6  ;;  %v132_v6 = vld [vmem:[#allocation6 + $0x30] sm:$0xff] }
  0x96   :  { %871 = vmatpush1.bf16.msra.mxu1 %v870_v37  ;;  %v892_v5 = vpack.c.bf16 %v219_v3, %v215_v2  ;;  %v223_v8 = vld [vmem:[#allocation6 + $0x308] sm:$0xff]  ;;  %v226_v11 = vld [vmem:[#allocation6 + $0x320] sm:$0xff]  ;;  %v452_v37 = vld [vmem:[#allocation9 + $0x50] sm:$0xff] }
  0x97   :  { %873 = vmatprep.subr.bf16.mxu1 %v872_v38  ;;  %v227_v9 = vld [vmem:[#allocation6 + $0x328] sm:$0xff]  ;;  %v445_v16 = vld [vmem:[#allocation9 + $0x18] sm:$0xff]  ;;  %v898_v29 = vpack.c.bf16 %v226_v11, %v222_v10  ;;  %v464_v11 = vld [vmem:[#allocation9 + $0xb0] sm:$0xff] }
  0x98   :  { %v231_v13 = vld [vmem:[#allocation6 + $0x348] sm:$0xff]  ;;  %v896_v18 = vpack.c.bf16 %v227_v9, %v223_v8  ;;  %v449_v22 = vld [vmem:[#allocation9 + $0x38] sm:$0xff] }
  0x99   :  { %v235_v14 = vld [vmem:[#allocation6 + $0x368] sm:$0xff]  ;;  %v453_v28 = vld [vmem:[#allocation9 + $0x58] sm:$0xff] }
  0x9a   :  { %875 = vmatpush1.bf16.msra.mxu1 %v874_v44  ;;  %v443_v15 = vld [vmem:[#allocation9 + $0x8] sm:$0xff]  ;;  %v442_v17 = vld [vmem:[#allocation9] sm:$0xff]  ;;  %v900_v33 = vpack.c.bf16 %v235_v14, %v231_v13  ;;  %v457_v40 = vld [vmem:[#allocation9 + $0x78] sm:$0xff] }
  0x9b   :  { %877 = vmatprep.subr.bf16.mxu1 %v876_v45  ;;  %v976_v19 = vpack.c.bf16 %v445_v16, %v443_v15  ;;  %v447_v21 = vld [vmem:[#allocation9 + $0x28] sm:$0xff]  ;;  %v978_v23 = vpack.c.bf16 %v444_v20, %v442_v17  ;;  %v446_v25 = vld [vmem:[#allocation9 + $0x20] sm:$0xff]  ;;  %v461_v53 = vld [vmem:[#allocation9 + $0x98] sm:$0xff] }
  0x9c   :  { %v980_v24 = vpack.c.bf16 %v449_v22, %v447_v21  ;;  %v451_v27 = vld [vmem:[#allocation9 + $0x48] sm:$0xff]  ;;  %v230_v30 = vld [vmem:[#allocation6 + $0x340] sm:$0xff]  ;;  %v982_v32 = vpack.c.bf16 %v448_v26, %v446_v25  ;;  %v137_v7 = vld [vmem:[#allocation6 + $0x58] sm:$0xff] }
  0x9d   :  { %977 = vmatprep.subr.bf16.mxu0 %v976_v19  ;;  %v234_v31 = vld [vmem:[#allocation6 + $0x360] sm:$0xff]  ;;  %v239_v34 = vld [vmem:[#allocation6 + $0x388] sm:$0xff]  ;;  %v984_v35 = vpack.c.bf16 %v453_v28, %v451_v27  ;;  %v141_v9 = vld [vmem:[#allocation6 + $0x78] sm:$0xff] }
  0x9e   :  { %879 = vmatpush1.bf16.msra.mxu1 %v878_v50  ;;  %979 = vmatpush1.bf16.msra.mxu0 %v978_v23  ;;  %v450_v36 = vld [vmem:[#allocation9 + $0x40] sm:$0xff]  ;;  %v455_v39 = vld [vmem:[#allocation9 + $0x68] sm:$0xff]  ;;  %v902_v42 = vpack.c.bf16 %v234_v31, %v230_v30  ;;  %v456_v50 = vld [vmem:[#allocation9 + $0x70] sm:$0xff]  ;;  %v916_v17 = vpack.c.bf16 %v141_v9, %v137_v7 }
  0x9f   :  { %881 = vmatprep.subr.bf16.mxu1 %v880_v51  ;;  %981 = vmatprep.subr.bf16.mxu0 %v980_v24  ;;  %v243_v38 = vld [vmem:[#allocation6 + $0x3a8] sm:$0xff]  ;;  %v238_v43 = vld [vmem:[#allocation6 + $0x380] sm:$0xff]  ;;  %v986_v45 = vpack.c.bf16 %v452_v37, %v450_v36  ;;  %v988_v48 = vpack.c.bf16 %v457_v40, %v455_v39  ;;  %v136_v16 = vld [vmem:[#allocation6 + $0x50] sm:$0xff] }
  0xa0   :  { %v242_v44 = vld [vmem:[#allocation6 + $0x3a0] sm:$0xff]  ;;  %v904_v46 = vpack.c.bf16 %v243_v38, %v239_v34  ;;  %v247_v47 = vld [vmem:[#allocation6 + $0x3c8] sm:$0xff]  ;;  %v145_v19 = vld [vmem:[#allocation6 + $0x98] sm:$0xff] }
  0xa1   :  { %v454_v49 = vld [vmem:[#allocation9 + $0x60] sm:$0xff]  ;;  %v459_v52 = vld [vmem:[#allocation9 + $0x88] sm:$0xff]  ;;  %v906_v54 = vpack.c.bf16 %v242_v44, %v238_v43  ;;  %v465_v1 = vld [vmem:[#allocation9 + $0xb8] sm:$0xff] }
  0xa2   :  { %883 = vmatpush1.bf16.msra.mxu1 %v882_v56  ;;  %983 = vmatpush1.bf16.msra.mxu0 %v982_v32  ;;  %v251_v51 = vld [vmem:[#allocation6 + $0x3e8] sm:$0xff]  ;;  %v246_v55 = vld [vmem:[#allocation6 + $0x3c0] sm:$0xff]  ;;  %v992_v60 = vpack.c.bf16 %v461_v53, %v459_v52  ;;  %v1458_v20 = vld [vmem:[#allocation3 + $0x18] sm:$0xff] }
  0xa3   :  { %885 = vmatprep.subr.bf16.mxu1 %v884_v57  ;;  %985 = vmatprep.subr.bf16.mxu0 %v984_v35  ;;  %v250_v56 = vld [vmem:[#allocation6 + $0x3e0] sm:$0xff]  ;;  %v990_v57 = vpack.c.bf16 %v456_v50, %v454_v49  ;;  %v908_v58 = vpack.c.bf16 %v251_v51, %v247_v47  ;;  %v463_v0 = vld [vmem:[#allocation9 + $0xa8] sm:$0xff]  ;;  %v149_v22 = vld [vmem:[#allocation6 + $0xb8] sm:$0xff] }
  0xa4   :  { %v458_v61 = vld [vmem:[#allocation9 + $0x80] sm:$0xff]  ;;  %v910_v2 = vpack.c.bf16 %v250_v56, %v246_v55  ;;  %v996_v8 = vpack.c.bf16 %v465_v1, %v463_v0  ;;  %v469_v13 = vld [vmem:[#allocation9 + $0xd8] sm:$0xff]  ;;  %v468_v25 = vld [vmem:[#allocation9 + $0xd0] sm:$0xff]  ;;  %v920_v30 = vpack.c.bf16 %v149_v22, %v145_v19 }
  0xa5   :  { %v462_v10 = vld [vmem:[#allocation9 + $0xa0] sm:$0xff]  ;;  %v471_v26 = vld [vmem:[#allocation9 + $0xe8] sm:$0xff]  ;;  %v473_v27 = vld [vmem:[#allocation9 + $0xf8] sm:$0xff] }
  0xa6   :  { %887 = vmatpush1.bf16.msra.mxu1 %v886_v62  ;;  %987 = vmatpush1.bf16.msra.mxu0 %v986_v45  ;;  %v460_v62 = vld [vmem:[#allocation9 + $0x90] sm:$0xff]  ;;  %v1456_v14 = vld [vmem:[#allocation3] sm:$0xff]  ;;  %v998_v21 = vpack.c.bf16 %v464_v11, %v462_v10  ;;  %v1004_v36 = vpack.c.bf16 %v473_v27, %v471_v26  ;;  %v475_v39 = vld [vmem:[#allocation9 + $0x108] sm:$0xff] }
  0xa7   :  { %889 = vmatprep.subr.bf16.mxu1 %v888_v63  ;;  %989 = vmatprep.subr.bf16.mxu0 %v988_v48  ;;  %v133_v63 = vld [vmem:[#allocation6 + $0x38] sm:$0xff]  ;;  %v994_v3 = vpack.c.bf16 %v460_v62, %v458_v61  ;;  %v466_v24 = vld [vmem:[#allocation9 + $0xc0] sm:$0xff]  ;;  %v144_v31 = vld [vmem:[#allocation6 + $0x90] sm:$0xff] }
  0xa8   :  { %v148_v32 = vld [vmem:[#allocation6 + $0xb0] sm:$0xff]  ;;  %v1002_v34 = vpack.c.bf16 %v468_v25, %v466_v24  ;;  %v157_v35 = vld [vmem:[#allocation6 + $0xf8] sm:$0xff]  ;;  %v470_v37 = vld [vmem:[#allocation9 + $0xe0] sm:$0xff] }
  0xa9   :  { %v472_v38 = vld [vmem:[#allocation9 + $0xf0] sm:$0xff]  ;;  %v477_v40 = vld [vmem:[#allocation9 + $0x118] sm:$0xff]  ;;  %v474_v50 = vld [vmem:[#allocation9 + $0x100] sm:$0xff] }
  0xaa   :  { %891 = vmatpush1.bf16.msra.mxu1 %v890_v4  ;;  %991 = vmatpush1.bf16.msra.mxu0 %v990_v57  ;;  %v912_v4 = vpack.c.bf16 %v133_v63, %v129_v59  ;;  %v152_v44 = vld [vmem:[#allocation6 + $0xd0] sm:$0xff]  ;;  %v1006_v47 = vpack.c.bf16 %v472_v38, %v470_v37  ;;  %v165_v48 = vld [vmem:[#allocation6 + $0x138] sm:$0xff]  ;;  %v1008_v49 = vpack.c.bf16 %v477_v40, %v475_v39  ;;  %v478_v61 = vld [vmem:[#allocation9 + $0x120] sm:$0xff] }
  0xab   :  { %893 = vmatprep.subr.bf16.mxu1 %v892_v5  ;;  %v128_v5 = vld [vmem:[#allocation6 + $0x10] sm:$0xff]  ;;  %993 = vmatprep.subr.bf16.mxu0 %v992_v60  ;;  %v481_v53 = vld [vmem:[#allocation9 + $0x138] sm:$0xff]  ;;  %v482_v9 = vld [vmem:[#allocation9 + $0x140] sm:$0xff] }
  0xac   :  { %v914_v15 = vpack.c.bf16 %v132_v6, %v128_v5  ;;  %v156_v45 = vld [vmem:[#allocation6 + $0xf0] sm:$0xff]  ;;  %v169_v57 = vld [vmem:[#allocation6 + $0x158] sm:$0xff] }
  0xad   :  { %v476_v51 = vld [vmem:[#allocation9 + $0x110] sm:$0xff]  ;;  %v479_v52 = vld [vmem:[#allocation9 + $0x128] sm:$0xff]  ;;  %v485_v0 = vld [vmem:[#allocation9 + $0x158] sm:$0xff] }
  0xae   :  { %895 = vmatpush1.bf16.msra.mxu1 %v894_v12  ;;  %v467_v12 = vld [vmem:[#allocation9 + $0xc8] sm:$0xff]  ;;  %995 = vmatpush1.bf16.msra.mxu0 %v994_v3  ;;  %v173_v59 = vld [vmem:[#allocation6 + $0x178] sm:$0xff]  ;;  %v1012_v60 = vpack.c.bf16 %v481_v53, %v479_v52 }
  0xaf   :  { %897 = vmatprep.subr.bf16.mxu1 %v896_v18  ;;  %v140_v18 = vld [vmem:[#allocation6 + $0x70] sm:$0xff]  ;;  %997 = vmatprep.subr.bf16.mxu0 %v996_v8  ;;  %v1000_v23 = vpack.c.bf16 %v469_v13, %v467_v12  ;;  %v177_v5 = vld [vmem:[#allocation6 + $0x198] sm:$0xff] }
  0xb0   :  { %v918_v28 = vpack.c.bf16 %v140_v18, %v136_v16  ;;  %v160_v56 = vld [vmem:[#allocation6 + $0x110] sm:$0xff]  ;;  %v181_v7 = vld [vmem:[#allocation6 + $0x1b8] sm:$0xff] }
  0xb1   :  { %v480_v62 = vld [vmem:[#allocation9 + $0x130] sm:$0xff]  ;;  %v483_v63 = vld [vmem:[#allocation9 + $0x148] sm:$0xff]  ;;  %v489_v12 = vld [vmem:[#allocation9 + $0x178] sm:$0xff] }
  0xb2   :  { %899 = vmatpush1.bf16.msra.mxu1 %v898_v29  ;;  %v1462_v29 = vld [vmem:[#allocation3 + $0x10] sm:$0xff]  ;;  %999 = vmatpush1.bf16.msra.mxu0 %v998_v21  ;;  %v1014_v6 = vpack.c.bf16 %v480_v62, %v478_v61  ;;  %v1016_v8 = vpack.c.bf16 %v485_v0, %v483_v63  ;;  %v185_v18 = vld [vmem:[#allocation6 + $0x1d8] sm:$0xff] }
  0xb3   :  { %901 = vmatprep.subr.bf16.mxu1 %v900_v33  ;;  %v153_v33 = vld [vmem:[#allocation6 + $0xd8] sm:$0xff]  ;;  %1001 = vmatprep.subr.bf16.mxu0 %v1000_v23  ;;  %v168_v3 = vld [vmem:[#allocation6 + $0x150] sm:$0xff]  ;;  %v486_v23 = vld [vmem:[#allocation9 + $0x160] sm:$0xff] }
  0xb4   :  { %v924_v43 = vpack.c.bf16 %v157_v35, %v153_v33  ;;  %v484_v10 = vld [vmem:[#allocation9 + $0x150] sm:$0xff]  ;;  %v487_v11 = vld [vmem:[#allocation9 + $0x168] sm:$0xff]  ;;  %v493_v26 = vld [vmem:[#allocation9 + $0x198] sm:$0xff] }
  0xb5   :  { %v176_v16 = vld [vmem:[#allocation6 + $0x190] sm:$0xff]  ;;  %v1018_v19 = vpack.c.bf16 %v484_v10, %v482_v9  ;;  %v189_v21 = vld [vmem:[#allocation6 + $0x1f8] sm:$0xff]  ;;  %v1020_v22 = vpack.c.bf16 %v489_v12, %v487_v11 }
  0xb6   :  { %903 = vmatpush1.bf16.msra.mxu1 %v902_v42  ;;  %v922_v42 = vpack.c.bf16 %v148_v32, %v144_v31  ;;  %1003 = vmatpush1.bf16.msra.mxu0 %v1002_v34  ;;  %v488_v24 = vld [vmem:[#allocation9 + $0x170] sm:$0xff]  ;;  %v491_v25 = vld [vmem:[#allocation9 + $0x188] sm:$0xff]  ;;  %v497_v39 = vld [vmem:[#allocation9 + $0x1b8] sm:$0xff] }
  0xb7   :  { %905 = vmatprep.subr.bf16.mxu1 %v904_v46  ;;  %v161_v46 = vld [vmem:[#allocation6 + $0x118] sm:$0xff]  ;;  %1005 = vmatprep.subr.bf16.mxu0 %v1004_v36  ;;  %v188_v31 = vld [vmem:[#allocation6 + $0x1f0] sm:$0xff]  ;;  %v1022_v33 = vpack.c.bf16 %v488_v24, %v486_v23  ;;  %v1024_v35 = vpack.c.bf16 %v493_v26, %v491_v25  ;;  %v490_v36 = vld [vmem:[#allocation9 + $0x180] sm:$0xff] }
  0xb8   :  { %v928_v55 = vpack.c.bf16 %v165_v48, %v161_v46  ;;  %v193_v32 = vld [vmem:[#allocation6 + $0x218] sm:$0xff]  ;;  %v495_v38 = vld [vmem:[#allocation9 + $0x1a8] sm:$0xff] }
  0xb9   :  { %v197_v34 = vld [vmem:[#allocation6 + $0x238] sm:$0xff]  ;;  %v1028_v48 = vpack.c.bf16 %v497_v39, %v495_v38  ;;  %v208_v62 = vld [vmem:[#allocation6 + $0x290] sm:$0xff] }
  0xba   :  { %907 = vmatpush1.bf16.msra.mxu1 %v906_v54  ;;  %v926_v54 = vpack.c.bf16 %v156_v45, %v152_v44  ;;  %1007 = vmatpush1.bf16.msra.mxu0 %v1006_v47  ;;  %v492_v37 = vld [vmem:[#allocation9 + $0x190] sm:$0xff]  ;;  %v501_v52 = vld [vmem:[#allocation9 + $0x1d8] sm:$0xff] }
  0xbb   :  { %909 = vmatprep.subr.bf16.mxu1 %v908_v58  ;;  %v1010_v58 = vpack.c.bf16 %v476_v51, %v474_v50  ;;  %1009 = vmatprep.subr.bf16.mxu0 %v1008_v49  ;;  %v196_v44 = vld [vmem:[#allocation6 + $0x230] sm:$0xff]  ;;  %v201_v45 = vld [vmem:[#allocation6 + $0x258] sm:$0xff]  ;;  %v1026_v46 = vpack.c.bf16 %v492_v37, %v490_v36  ;;  %v494_v49 = vld [vmem:[#allocation9 + $0x1a0] sm:$0xff] }
  0xbc   :  { %v205_v47 = vld [vmem:[#allocation6 + $0x278] sm:$0xff]  ;;  %v499_v51 = vld [vmem:[#allocation9 + $0x1c8] sm:$0xff] }
  0xbd   :  { %v496_v50 = vld [vmem:[#allocation9 + $0x1b0] sm:$0xff]  ;;  %v503_v37 = vld [vmem:[#allocation9 + $0x1e8] sm:$0xff]  ;;  %v505_v38 = vld [vmem:[#allocation9 + $0x1f8] sm:$0xff] }
  0xbe   :  { %911 = vmatpush1.bf16.msra.mxu1 %v910_v2  ;;  %v932_v2 = vpack.c.bf16 %v173_v59, %v169_v57  ;;  %1011 = vmatpush1.bf16.msra.mxu0 %v1010_v58  ;;  %v209_v57 = vld [vmem:[#allocation6 + $0x298] sm:$0xff]  ;;  %v1032_v59 = vpack.c.bf16 %v501_v52, %v499_v51  ;;  %v212_v63 = vld [vmem:[#allocation6 + $0x2b0] sm:$0xff]  ;;  %v1036_v39 = vpack.c.bf16 %v505_v38, %v503_v37 }
  0xbf   :  { %913 = vmatprep.subr.bf16.mxu1 %v912_v4  ;;  %v172_v4 = vld [vmem:[#allocation6 + $0x170] sm:$0xff]  ;;  %1013 = vmatprep.subr.bf16.mxu0 %v1012_v60  ;;  %v213_v58 = vld [vmem:[#allocation6 + $0x2b8] sm:$0xff] }
  0xc0   :  { %v934_v13 = vpack.c.bf16 %v172_v4, %v168_v3  ;;  %v952_v61 = vpack.c.bf16 %v213_v58, %v209_v57  ;;  %v217_v0 = vld [vmem:[#allocation6 + $0x2d8] sm:$0xff]  ;;  %v216_v4 = vld [vmem:[#allocation6 + $0x2d0] sm:$0xff] }
  0xc1   :  { %341 = vmatmul.mubr.f32.vlgmr.msra.gmra.mrb[0].mxu1 %v1456_v14  ;;  %v224_v10 = vld [vmem:[#allocation6 + $0x310] sm:$0xff]  ;;  %v233_v12 = vld [vmem:[#allocation6 + $0x358] sm:$0xff] }
  0xc2   :  { %915 = vmatpush1.bf16.msra.mxu1 %v914_v15  ;;  %346 = vmatprep.mubr.f32.mxu1 %v1458_v20  ;;  %v936_v15 = vpack.c.bf16 %v181_v7, %v177_v5  ;;  %v220_v5 = vld [vmem:[#allocation6 + $0x2f0] sm:$0xff]  ;;  %v229_v7 = vld [vmem:[#allocation6 + $0x338] sm:$0xff] }
  0xc3   :  { %917 = vmatprep.subr.bf16.mxu1 %v916_v17  ;;  %v180_v17 = vld [vmem:[#allocation6 + $0x1b0] sm:$0xff]  ;;  %1015 = vmatpush1.bf16.msra.mxu0 %v1014_v6  ;;  %v225_v6 = vld [vmem:[#allocation6 + $0x318] sm:$0xff] }
  0xc4   :  { %1017 = vmatprep.subr.bf16.mxu0 %v1016_v8  ;;  %v938_v27 = vpack.c.bf16 %v180_v17, %v176_v16  ;;  %v958_v8 = vpack.c.bf16 %v220_v5, %v216_v4  ;;  %v960_v9 = vpack.c.bf16 %v229_v7, %v225_v6  ;;  %v228_v11 = vld [vmem:[#allocation6 + $0x330] sm:$0xff]  ;;  %v249_v26 = vld [vmem:[#allocation6 + $0x3d8] sm:$0xff] }
  0xc5   :  { %347 = vmatmul.mubr.f32.gmra.mrb[2].mxu1 %v1462_v29  ;;  %v232_v17 = vld [vmem:[#allocation6 + $0x350] sm:$0xff]  ;;  %v517_v7 = vld [vmem:[#allocation9 + $0x258] sm:$0xff] }
  0xc6   :  { %919 = vmatpush1.bf16.msra.mxu1 %v918_v28  ;;  %417 = vmatprep.mubr.f32.mxu1 %v1453_v41  ;;  %v164_v41 = vld [vmem:[#allocation6 + $0x130] sm:$0xff]  ;;  %v940_v28 = vpack.c.bf16 %v189_v21, %v185_v18  ;;  %v245_v21 = vld [vmem:[#allocation6 + $0x3b8] sm:$0xff] }
  0xc7   :  { %921 = vmatprep.subr.bf16.mxu1 %v920_v30  ;;  %v930_v1 = vpack.c.bf16 %v164_v41, %v160_v56  ;;  %v184_v30 = vld [vmem:[#allocation6 + $0x1d0] sm:$0xff]  ;;  %1019 = vmatpush1.bf16.msra.mxu0 %v1018_v19  ;;  %v1030_v41 = vpack.c.bf16 %v496_v50, %v494_v49  ;;  %v241_v19 = vld [vmem:[#allocation6 + $0x398] sm:$0xff]  ;;  %v1474_v50 = vld [vmem:[#allocation8] sm:$0xf] }
  0xc8   :  { %1021 = vmatprep.subr.bf16.mxu0 %v1020_v22  ;;  %v942_v40 = vpack.c.bf16 %v188_v31, %v184_v30  ;;  %v204_v56 = vld [vmem:[#allocation6 + $0x270] sm:$0xff]  ;;  %v968_v23 = vpack.c.bf16 %v245_v21, %v241_v19  ;;  %v518_v21 = vld [vmem:[#allocation9 + $0x260] sm:$0xff]  ;;  %v533_v37 = vld [vmem:[#allocation9 + $0x2d8] sm:$0xff] }
  0xc9   :  { %v236_v18 = vld [vmem:[#allocation6 + $0x370] sm:$0xff] }
  0xca   :  { %923 = vmatpush1.bf16.msra.mxu1 %v922_v42  ;;  %v944_v42 = vpack.c.bf16 %v197_v34, %v193_v32  ;;  %v966_v22 = vpack.c.bf16 %v236_v18, %v232_v17  ;;  %v240_v24 = vld [vmem:[#allocation6 + $0x390] sm:$0xff]  ;;  %v498_v34 = vld [vmem:[#allocation9 + $0x1c0] sm:$0xff]  ;;  %v521_v17 = vld [vmem:[#allocation9 + $0x278] sm:$0xff] }
  0xcb   :  { %925 = vmatprep.subr.bf16.mxu1 %v924_v43  ;;  %v192_v43 = vld [vmem:[#allocation6 + $0x210] sm:$0xff]  ;;  %1023 = vmatpush1.bf16.msra.mxu0 %v1022_v33 }
  0xcc   :  { %1025 = vmatprep.subr.bf16.mxu0 %v1024_v35  ;;  %v946_v53 = vpack.c.bf16 %v196_v44, %v192_v43  ;;  %v244_v25 = vld [vmem:[#allocation6 + $0x3b0] sm:$0xff] }
  0xcd   :  { %v248_v31 = vld [vmem:[#allocation6 + $0x3d0] sm:$0xff] }
  0xce   :  { %927 = vmatpush1.bf16.msra.mxu1 %v926_v54  ;;  %v948_v54 = vpack.c.bf16 %v205_v47, %v201_v45  ;;  %v252_v32 = vld [vmem:[#allocation6 + $0x3f0] sm:$0xff]  ;;  %v509_v45 = vld [vmem:[#allocation9 + $0x218] sm:$0xff]  ;;  %v256_v47 = vlaneseq }
  0xcf   :  { %929 = vmatprep.subr.bf16.mxu1 %v928_v55  ;;  %v200_v55 = vld [vmem:[#allocation6 + $0x250] sm:$0xff]  ;;  %1027 = vmatpush1.bf16.msra.mxu0 %v1026_v46  ;;  %v974_v33 = vpack.c.bf16 %v252_v32, %v248_v31  ;;  %v529_v31 = vld [vmem:[#allocation9 + $0x2b8] sm:$0xff] }
  0xd0   :  { %1029 = vmatprep.subr.bf16.mxu0 %v1028_v48  ;;  %v950_v60 = vpack.c.bf16 %v204_v56, %v200_v55  ;;  %v500_v35 = vld [vmem:[#allocation9 + $0x1d0] sm:$0xff]  ;;  %v507_v44 = vld [vmem:[#allocation9 + $0x208] sm:$0xff]  ;;  %v1469_v48 = vshrl.u32 %v256_v47, 7  ;;  %v534_v47 = vld [vmem:[#allocation9 + $0x2e0] sm:$0xff] }
  0xd1   :  { %v1034_v36 = vpack.c.bf16 %v500_v35, %v498_v34  ;;  %v1040_v46 = vpack.c.bf16 %v509_v45, %v507_v44  ;;  %v508_v57 = vld [vmem:[#allocation9 + $0x210] sm:$0xff]  ;;  %v515_v6 = vld [vmem:[#allocation9 + $0x248] sm:$0xff]  ;;  %v526_v34 = vld [vmem:[#allocation9 + $0x2a0] sm:$0xff] }
  0xd2   :  { %931 = vmatpush1.bf16.msra.mxu1 %v930_v1  ;;  %v221_v1 = vld [vmem:[#allocation6 + $0x2f8] sm:$0xff]  ;;  %v1472_v49 = vsub.s32 0, %v1469_v48  ;;  %v1477_v51 = vsub.s32 1, %v1469_v48 }
  0xd3   :  { %933 = vmatprep.subr.bf16.mxu1 %v932_v2  ;;  %1031 = vmatpush1.bf16.msra.mxu0 %v1030_v41  ;;  %v954_v2 = vpack.c.bf16 %v212_v63, %v208_v62  ;;  %v956_v3 = vpack.c.bf16 %v221_v1, %v217_v0  ;;  %v506_v41 = vld [vmem:[#allocation9 + $0x200] sm:$0xff]  ;;  %v528_v35 = vld [vmem:[#allocation9 + $0x2b0] sm:$0xff]  ;;  %v537_v44 = vld [vmem:[#allocation9 + $0x2f8] sm:$0xff] }
  0xd4   :  { %1033 = vmatprep.subr.bf16.mxu0 %v1032_v59  ;;  %v259_v52 = vrot.slane %v1474_v50, %v1472_v49  ;;  %v511_v59 = vld [vmem:[#allocation9 + $0x228] sm:$0xff]  ;;  %v1042_v63 = vpack.c.bf16 %v508_v57, %v506_v41  ;;  %v1062_v38 = vpack.c.bf16 %v528_v35, %v526_v34  ;;  %v538_v41 = vld [vmem:[#allocation9 + $0x300] sm:$0xff]  ;;  %v540_v57 = vld [vmem:[#allocation9 + $0x310] sm:$0xff]  ;;  %v270_v34 = vsub.s32 3, %v1469_v48 }
  0xd5   :  { %v567_v35 = vld [vmem:[#allocation9 + $0x3e8] sm:$0xff] }
  0xd6   :  { %935 = vmatpush1.bf16.msra.mxu1 %v934_v13  ;;  %v237_v13 = vld [vmem:[#allocation6 + $0x378] sm:$0xff] }
  0xd7   :  { %937 = vmatprep.subr.bf16.mxu1 %v936_v15  ;;  %v962_v15 = vpack.c.bf16 %v228_v11, %v224_v10  ;;  %v964_v16 = vpack.c.bf16 %v237_v13, %v233_v12  ;;  %1035 = vmatpush1.bf16.msra.mxu0 %v1034_v36  ;;  %v1048_v12 = vpack.c.bf16 %v517_v7, %v515_v6  ;;  %v514_v13 = vld [vmem:[#allocation9 + $0x240] sm:$0xff]  ;;  %v531_v36 = vld [vmem:[#allocation9 + $0x2c8] sm:$0xff]  ;;  %v553_v7 = vld [vmem:[#allocation9 + $0x378] sm:$0xff] }
  0xd8   :  { %1037 = vmatprep.subr.bf16.mxu0 %v1036_v39  ;;  %v1064_v39 = vpack.c.bf16 %v533_v37, %v531_v36  ;;  %v551_v6 = vld [vmem:[#allocation9 + $0x368] sm:$0xff]  ;;  %v569_v36 = vld [vmem:[#allocation9 + $0x3f8] sm:$0xff] }
  0xda   :  { %939 = vmatpush1.bf16.msra.mxu1 %v938_v27  ;;  %v253_v27 = vld [vmem:[#allocation6 + $0x3f8] sm:$0xff] }
  0xdb   :  { %941 = vmatprep.subr.bf16.mxu1 %v940_v28  ;;  %v970_v28 = vpack.c.bf16 %v244_v25, %v240_v24  ;;  %v972_v30 = vpack.c.bf16 %v253_v27, %v249_v26  ;;  %v525_v24 = vld [vmem:[#allocation9 + $0x298] sm:$0xff]  ;;  %v522_v27 = vld [vmem:[#allocation9 + $0x280] sm:$0xff] }
  0xde   :  { %943 = vmatpush1.bf16.msra.mxu1 %v942_v40  ;;  %v502_v40 = vld [vmem:[#allocation9 + $0x1e0] sm:$0xff] }
  0xdf   :  { %945 = vmatprep.subr.bf16.mxu1 %v944_v42  ;;  %v504_v42 = vld [vmem:[#allocation9 + $0x1f0] sm:$0xff] }
  0xe0   :  { %v1038_v43 = vpack.c.bf16 %v504_v42, %v502_v40  ;;  %v530_v40 = vld [vmem:[#allocation9 + $0x2c0] sm:$0xff]  ;;  %v532_v42 = vld [vmem:[#allocation9 + $0x2d0] sm:$0xff] }
  0xe1   :  { %v1066_v45 = vpack.c.bf16 %v532_v42, %v530_v40  ;;  %v566_v40 = vld [vmem:[#allocation9 + $0x3e0] sm:$0xff]  ;;  %v568_v42 = vld [vmem:[#allocation9 + $0x3f0] sm:$0xff] }
  0xe2   :  { %947 = vmatpush1.bf16.msra.mxu1 %v946_v53  ;;  %1039 = vmatpush1.bf16.msra.mxu0 %v1038_v43  ;;  %v263_v53 = vrot.slane %v1474_v50, %v1477_v51  ;;  %v535_v43 = vld [vmem:[#allocation9 + $0x2e8] sm:$0xff] }
  0xe3   :  { %949 = vmatprep.subr.bf16.mxu1 %v948_v54  ;;  %1041 = vmatprep.subr.bf16.mxu0 %v1040_v46  ;;  %v1068_v46 = vpack.c.bf16 %v537_v44, %v535_v43  ;;  %v271_v43 = vrot.slane %v1474_v50, %v270_v34 }
  0xe6   :  { %951 = vmatpush1.bf16.msra.mxu1 %v950_v60  ;;  %v513_v60 = vld [vmem:[#allocation9 + $0x238] sm:$0xff] }
  0xe7   :  { %953 = vmatprep.subr.bf16.mxu1 %v952_v61  ;;  %v1044_v1 = vpack.c.bf16 %v513_v60, %v511_v59  ;;  %v545_v59 = vld [vmem:[#allocation9 + $0x338] sm:$0xff]  ;;  %v1074_v60 = vpack.c.bf16 %v540_v57, %v538_v41 }
  0xea   :  { %955 = vmatpush1.bf16.msra.mxu1 %v954_v2  ;;  %v510_v2 = vld [vmem:[#allocation9 + $0x220] sm:$0xff] }
  0xeb   :  { %957 = vmatprep.subr.bf16.mxu1 %v956_v3  ;;  %v512_v3 = vld [vmem:[#allocation9 + $0x230] sm:$0xff] }
  0xec   :  { %v1046_v10 = vpack.c.bf16 %v512_v3, %v510_v2 }
  0xee   :  { %959 = vmatpush1.bf16.msra.mxu1 %v958_v8 }
  0xef   :  { %961 = vmatprep.subr.bf16.mxu1 %v960_v9 }
  0xf2   :  { %963 = vmatpush1.bf16.msra.mxu1 %v962_v15  ;;  %v516_v15 = vld [vmem:[#allocation9 + $0x250] sm:$0xff] }
  0xf3   :  { %965 = vmatprep.subr.bf16.mxu1 %v964_v16  ;;  %v519_v16 = vld [vmem:[#allocation9 + $0x268] sm:$0xff]  ;;  %v1050_v18 = vpack.c.bf16 %v516_v15, %v514_v13  ;;  %v557_v13 = vld [vmem:[#allocation9 + $0x398] sm:$0xff] }
  0xf4   :  { %v1052_v19 = vpack.c.bf16 %v521_v17, %v519_v16  ;;  %v554_v17 = vld [vmem:[#allocation9 + $0x380] sm:$0xff] }
  0xf6   :  { %967 = vmatpush1.bf16.msra.mxu1 %v966_v22  ;;  %v520_v22 = vld [vmem:[#allocation9 + $0x270] sm:$0xff] }
  0xf7   :  { %969 = vmatprep.subr.bf16.mxu1 %v968_v23  ;;  %v523_v23 = vld [vmem:[#allocation9 + $0x288] sm:$0xff]  ;;  %v1054_v25 = vpack.c.bf16 %v520_v22, %v518_v21  ;;  %v561_v21 = vld [vmem:[#allocation9 + $0x3b8] sm:$0xff] }
  0xf8   :  { %v1056_v26 = vpack.c.bf16 %v525_v24, %v523_v23  ;;  %v558_v24 = vld [vmem:[#allocation9 + $0x3a0] sm:$0xff] }
  0xfa   :  { %971 = vmatpush1.bf16.msra.mxu1 %v970_v28  ;;  %v524_v28 = vld [vmem:[#allocation9 + $0x290] sm:$0xff] }
  0xfb   :  { %973 = vmatprep.subr.bf16.mxu1 %v972_v30  ;;  %v527_v30 = vld [vmem:[#allocation9 + $0x2a8] sm:$0xff]  ;;  %v1058_v32 = vpack.c.bf16 %v524_v28, %v522_v27  ;;  %v565_v27 = vld [vmem:[#allocation9 + $0x3d8] sm:$0xff] }
  0xfe   :  { %975 = vmatpush1.bf16.msra.mxu1 %v974_v33  ;;  %v1060_v33 = vpack.c.bf16 %v529_v31, %v527_v30  ;;  %v266_v31 = vsub.s32 2, %v1469_v48 }
 0x101   :  { %418 = vmatmul.mubr.f32.vlgmr.msra.gmra.mrb[4].mxu1 %v1456_v14 }
 0x102   :  { %423 = vmatprep.mubr.f32.mxu1 %v1458_v20 }
 0x105   :  { %424 = vmatmul.mubr.f32.gmra.mrb[6].mxu1 %v1462_v29 }
 0x194   :  { %v342_v54 = vpop.f32.mrb[0].mxu1 }
 0x195   :  { %v343_v55 = vadd.f32 %v342_v54, %v259_v52  ;;  %v344_v56 = vpop.f32.mrb[1].mxu1  ;;  %v541_v54 = vld [vmem:[#allocation9 + $0x318] sm:$0xff] }
 0x196   :  { %v345_v58 = vadd.f32 %v344_v56, %v263_v53 }
 0x197   :  { %v430_v61 = vmax.f32 %v343_v55, 0.0 }
 0x198   :  { %v431_v62 = vmax.f32 %v345_v58, 0.0  ;;  %v348_v0 = vpop.f32.mrb[2].mxu1  ;;  %v543_v58 = vld [vmem:[#allocation9 + $0x328] sm:$0xff] }
 0x199   :  { %v349_v4 = vadd.f32 %v348_v0, %v259_v52  ;;  %v350_v5 = vpop.f32.mrb[3].mxu1  ;;  %v536_v52 = vld [vmem:[#allocation9 + $0x2f0] sm:$0xff]  ;;  %v547_v0 = vld [vmem:[#allocation9 + $0x348] sm:$0xff] }
 0x19a   :  { %634 = vmatprep.mubr.f32.mxu0 %v431_v62  ;;  %v351_v8 = vadd.f32 %v350_v5, %v263_v53  ;;  %v539_v53 = vld [vmem:[#allocation9 + $0x308] sm:$0xff]  ;;  %v1070_v55 = vpack.c.bf16 %v536_v52, %v534_v47  ;;  %v542_v62 = vld [vmem:[#allocation9 + $0x320] sm:$0xff]  ;;  %v548_v5 = vld [vmem:[#allocation9 + $0x350] sm:$0xff] }
 0x19b   :  { %635 = vmatmul.mubr.f32.vlgmr.msra.gmra.mrb[0].mxu0 %v430_v61  ;;  %v434_v9 = vmax.f32 %v349_v4, 0.0  ;;  %v1072_v56 = vpack.c.bf16 %v541_v54, %v539_v53  ;;  %v1076_v61 = vpack.c.bf16 %v545_v59, %v543_v58  ;;  %v546_v4 = vld [vmem:[#allocation9 + $0x340] sm:$0xff] }
 0x19c   :  { %1043 = vmatpush1.bf16.msra.mxu0 %v1042_v63  ;;  %v435_v11 = vmax.f32 %v351_v8, 0.0  ;;  %v544_v63 = vld [vmem:[#allocation9 + $0x330] sm:$0xff]  ;;  %v1082_v8 = vpack.c.bf16 %v548_v5, %v546_v4 }
 0x19d   :  { %1045 = vmatprep.subr.bf16.mxu0 %v1044_v1  ;;  %v549_v1 = vld [vmem:[#allocation9 + $0x358] sm:$0xff]  ;;  %v1078_v2 = vpack.c.bf16 %v544_v63, %v542_v62 }
 0x19e   :  { %640 = vmatprep.mubr.f32.mxu0 %v435_v11  ;;  %v1080_v3 = vpack.c.bf16 %v549_v1, %v547_v0  ;;  %v552_v11 = vld [vmem:[#allocation9 + $0x370] sm:$0xff] }
 0x19f   :  { %641 = vmatmul.mubr.f32.gmra.mrb[2].mxu0 %v434_v9  ;;  %v1084_v9 = vpack.c.bf16 %v553_v7, %v551_v6 }
 0x1a0   :  { %1047 = vmatpush1.bf16.msra.mxu0 %v1046_v10  ;;  %v550_v10 = vld [vmem:[#allocation9 + $0x360] sm:$0xff] }
 0x1a1   :  { %1049 = vmatprep.subr.bf16.mxu0 %v1048_v12  ;;  %v555_v12 = vld [vmem:[#allocation9 + $0x388] sm:$0xff]  ;;  %v1086_v15 = vpack.c.bf16 %v552_v11, %v550_v10 }
 0x1a2   :  { %v1088_v16 = vpack.c.bf16 %v557_v13, %v555_v12 }
 0x1a4   :  { %1051 = vmatpush1.bf16.msra.mxu0 %v1050_v18  ;;  %v556_v18 = vld [vmem:[#allocation9 + $0x390] sm:$0xff] }
 0x1a5   :  { %1053 = vmatprep.subr.bf16.mxu0 %v1052_v19  ;;  %v559_v19 = vld [vmem:[#allocation9 + $0x3a8] sm:$0xff]  ;;  %v1090_v22 = vpack.c.bf16 %v556_v18, %v554_v17 }
 0x1a6   :  { %v1092_v23 = vpack.c.bf16 %v561_v21, %v559_v19 }
 0x1a8   :  { %1055 = vmatpush1.bf16.msra.mxu0 %v1054_v25  ;;  %v560_v25 = vld [vmem:[#allocation9 + $0x3b0] sm:$0xff] }
 0x1a9   :  { %1057 = vmatprep.subr.bf16.mxu0 %v1056_v26  ;;  %v563_v26 = vld [vmem:[#allocation9 + $0x3c8] sm:$0xff]  ;;  %v1094_v28 = vpack.c.bf16 %v560_v25, %v558_v24 }
 0x1aa   :  { %v1096_v30 = vpack.c.bf16 %v565_v27, %v563_v26 }
 0x1ac   :  { %1059 = vmatpush1.bf16.msra.mxu0 %v1058_v32  ;;  %v562_v32 = vld [vmem:[#allocation9 + $0x3c0] sm:$0xff] }
 0x1ad   :  { %1061 = vmatprep.subr.bf16.mxu0 %v1060_v33  ;;  %v564_v33 = vld [vmem:[#allocation9 + $0x3d0] sm:$0xff] }
 0x1ae   :  { %v1098_v37 = vpack.c.bf16 %v564_v33, %v562_v32  ;;  %v792_v32 = vld [vmem:[#allocation12] sm:$0x3]  ;;  %v808_v33 = vld [vmem:[#allocation14] sm:$0x3] }
 0x1af   :  { %v797_v34 = vrot.slane %v792_v32, %v1472_v49 }
 0x1b0   :  { %1063 = vmatpush1.bf16.msra.mxu0 %v1062_v38  ;;  %v267_v38 = vrot.slane %v1474_v50, %v266_v31  ;;  %v739_v50 = vld [vmem:[#allocation11] sm:$0x3] }
 0x1b1   :  { %1065 = vmatprep.subr.bf16.mxu0 %v1064_v39  ;;  %v1100_v39 = vpack.c.bf16 %v569_v36, %v567_v35  ;;  %v744_v59 = vrot.slane %v739_v50, %v1472_v49  ;;  %v801_v35 = vrot.slane %v792_v32, %v1477_v51 }
 0x1b4   :  { %1067 = vmatpush1.bf16.msra.mxu0 %v1066_v45  ;;  %v1102_v45 = vpack.c.bf16 %v568_v42, %v566_v40  ;;  %v817_v40 = vrot.slane %v808_v33, %v1477_v51 }
 0x1b5   :  { %1069 = vmatprep.subr.bf16.mxu0 %v1068_v46 }
 0x1b8   :  { %1071 = vmatpush1.bf16.msra.mxu0 %v1070_v55 }
 0x1b9   :  { %1073 = vmatprep.subr.bf16.mxu0 %v1072_v56 }
 0x1bc   :  { %1075 = vmatpush1.bf16.msra.mxu0 %v1074_v60  ;;  %v748_v60 = vrot.slane %v739_v50, %v1477_v51 }
 0x1bd   :  { %1077 = vmatprep.subr.bf16.mxu0 %v1076_v61 }
 0x1c0   :  { %1079 = vmatpush1.bf16.msra.mxu0 %v1078_v2 }
 0x1c1   :  { %1081 = vmatprep.subr.bf16.mxu0 %v1080_v3  ;;  %v1124_v3 = vld [vmem:[#allocation3 + $0x8] sm:$0xff] }
 0x1c4   :  { %1083 = vmatpush1.bf16.msra.mxu0 %v1082_v8 }
 0x1c5   :  { %1085 = vmatprep.subr.bf16.mxu0 %v1084_v9 }
 0x1c8   :  { %1087 = vmatpush1.bf16.msra.mxu0 %v1086_v15 }
 0x1c9   :  { %1089 = vmatprep.subr.bf16.mxu0 %v1088_v16 }
 0x1cc   :  { %1091 = vmatpush1.bf16.msra.mxu0 %v1090_v22 }
 0x1cd   :  { %1093 = vmatprep.subr.bf16.mxu0 %v1092_v23 }
 0x1d0   :  { %1095 = vmatpush1.bf16.msra.mxu0 %v1094_v28 }
 0x1d1   :  { %1097 = vmatprep.subr.bf16.mxu0 %v1096_v30 }
 0x1d4   :  { %v419_v44 = vpop.f32.mrb[4].mxu1  ;;  %1099 = vmatpush1.bf16.msra.mxu0 %v1098_v37 }
 0x1d5   :  { %v420_v46 = vadd.f32 %v419_v44, %v267_v38  ;;  %v421_v47 = vpop.f32.mrb[5].mxu1  ;;  %1101 = vmatprep.subr.bf16.mxu0 %v1100_v39  ;;  %v813_v39 = vrot.slane %v808_v33, %v1472_v49 }
 0x1d6   :  { %v422_v52 = vadd.f32 %v421_v47, %v271_v43 }
 0x1d7   :  { %v432_v54 = vmax.f32 %v420_v46, 0.0 }
 0x1d8   :  { %v433_v48 = vmax.f32 %v422_v52, 0.0  ;;  %v425_v53 = vpop.f32.mrb[6].mxu1  ;;  %1103 = vmatpush1.bf16.msra.mxu0 %v1102_v45 }
 0x1d9   :  { %v426_v55 = vadd.f32 %v425_v53, %v267_v38  ;;  %v427_v56 = vpop.f32.mrb[7].mxu1 }
 0x1da   :  { %v428_v41 = vadd.f32 %v427_v56, %v271_v43  ;;  %711 = vmatprep.mubr.f32.mxu0 %v433_v48 }
 0x1db   :  { %712 = vmatmul.mubr.f32.vlgmr.msra.gmra.mrb[0].mxu0 %v432_v54  ;;  %v436_v58 = vmax.f32 %v426_v55, 0.0 }
 0x1dc   :  { %v437_v57 = vmax.f32 %v428_v41, 0.0 }
 0x1de   :  { %717 = vmatprep.mubr.f32.mxu0 %v437_v57 }
 0x1df   :  { %718 = vmatmul.mubr.f32.gmra.mrb[2].mxu0 %v436_v58 }
 0x2ae   :  { %v713_v61 = vpop.f32.mrb[0].mxu0 }
 0x2af   :  { %v751_v62 = vadd.f32 %v744_v59, %v713_v61  ;;  %v715_v63 = vpop.f32.mrb[1].mxu0 }
 0x2b0   :  { %v752_v0 = vadd.f32 %v748_v60, %v715_v63 }
 0x2b1   :  { %v755_v1 = vadd.f32 %v751_v62, %v1456_v14 }
 0x2b2   :  { %v719_v2 = vpop.f32.mrb[2].mxu0  ;;  %v756_v4 = vadd.f32 %v1124_v3, %v752_v0 }
 0x2b3   :  { %v753_v5 = vadd.f32 %v744_v59, %v719_v2  ;;  %v721_v6 = vpop.f32.mrb[3].mxu0 }
 0x2b4   :  { %v754_v7 = vadd.f32 %v748_v60, %v721_v6  ;;  %v759_v8 = vadd.f32 %v756_v4, %v755_v1 }
 0x2b5   :  { %v757_v9 = vadd.f32 %v753_v5, %v1462_v29 }
 0x2b6   :  { %v758_v10 = vadd.f32 %v754_v7, %v1458_v20  ;;  %760 = vadd.xlane.f32.xlu0 %v759_v8 }
 0x2b8   :  { %v762_v11 = vadd.f32 %v758_v10, %v757_v9 }
 0x2ba   :  { %763 = vadd.xlane.f32.xlu0 %v762_v11 }
 0x343   :  { %v761_v12 = vpop.xlane.xlu0 %760 }
 0x344   :  { %v766_v13 = vmul.f32 0.00390625, %v761_v12 }
 0x346   :  { %v768_v15 = vsub.f32 %v755_v1, %v766_v13  ;;  %v769_v16 = vsub.f32 %v756_v4, %v766_v13 }
 0x347   :  { %v764_v17 = vpop.xlane.xlu0 %763 }
 0x348   :  { %v767_v14 = vmul.f32 0.00390625, %v764_v17  ;;  %v772_v18 = vmul.f32 %v768_v15, %v768_v15  ;;  %v773_v19 = vmul.f32 %v769_v16, %v769_v16 }
 0x34a   :  { %v770_v21 = vsub.f32 %v757_v9, %v767_v14  ;;  %v771_v22 = vsub.f32 %v758_v10, %v767_v14  ;;  %v776_v23 = vadd.f32 %v773_v19, %v772_v18 }
 0x34c   :  { %777 = vadd.xlane.f32.xlu1 %v776_v23  ;;  %v774_v24 = vmul.f32 %v770_v21, %v770_v21  ;;  %v775_v25 = vmul.f32 %v771_v22, %v771_v22 }
 0x34e   :  { %v779_v29 = vadd.f32 %v775_v25, %v774_v24 }
 0x350   :  { %780 = vadd.xlane.f32.xlu1 %v779_v29 }
 0x3d9   :  { %v778_v20 = vpop.xlane.xlu1 %777 }
 0x3da   :  { %v782_v26 = vmul.f32 0.00390625, %v778_v20 }
 0x3dc   :  { %v784_v27 = vadd.f32 1e-05, %v782_v26 }
 0x3dd   :  { %v781_v28 = vpop.xlane.xlu1 %780 }
 0x3de   :  { %1120 = vrsqrt.f32 %v784_v27  ;;  %v783_v30 = vmul.f32 0.00390625, %v781_v28 }
 0x3e0   :  { %v785_v31 = vadd.f32 1e-05, %v783_v30 }
 0x3e2   :  { %1122 = vrsqrt.f32 %v785_v31 }
 0x3e8   :  { %v1121_v36 = vpop.eup %1120 }
 0x3e9   :  { %v788_v37 = vmul.f32 %v1121_v36, %v768_v15  ;;  %v789_v38 = vmul.f32 %v1121_v36, %v769_v16 }
 0x3eb   :  { %v804_v42 = vmul.f32 %v797_v34, %v788_v37  ;;  %v805_v43 = vmul.f32 %v801_v35, %v789_v38 }
 0x3ec   :  { %v1123_v44 = vpop.eup %1122 }
 0x3ed   :  { %v790_v45 = vmul.f32 %v1123_v44, %v770_v21  ;;  %v791_v46 = vmul.f32 %v1123_v44, %v771_v22  ;;  %v820_v47 = vadd.f32 %v813_v39, %v804_v42  ;;  %v821_v52 = vadd.f32 %v817_v40, %v805_v43 }
 0x3ef   :  { %v806_v48 = vmul.f32 %v797_v34, %v790_v45  ;;  %v807_v53 = vmul.f32 %v801_v35, %v791_v46  ;;  %824 = vst [vmem:[#allocation15] sm:$0xff] %v820_v47  ;;  %825 = vst [vmem:[#allocation15 + $0x8] sm:$0xff] %v821_v52 }
 0x3f1   :  { %v822_v54 = vadd.f32 %v813_v39, %v806_v48  ;;  %v823_v55 = vadd.f32 %v817_v40, %v807_v53 }
 0x3f3   :  { %826 = vst [vmem:[#allocation15 + $0x10] sm:$0xff] %v822_v54  ;;  %827 = vst [vmem:[#allocation15 + $0x18] sm:$0xff] %v823_v55 }
 0x3f4   :  { %1290 = shalt.err (!%p1287_p4)
}
 0x3f5   :  { %s1291_s16 = scalar_lea.hbm %s1518_s7, 512 }
 0x3f6   :  { %p1292_p5 = scmp.ne.s32.totalorder %s1518_s7, %s1291_s16  ;;  %p1295_p6 = scmp.lt.u32.totalorder %s1291_s16, %s1518_s7 }
 0x3f8   :  { %p1297_p7 = pnand %p1295_p6, %p1292_p5 }
 0x3fa   :  { %1300 = shalt.err (!%p1297_p7)
}
 0x3fb   :  { %839 = dma.vmem_to_hbm [thread:$0]  %s834_s14, 512, %s1518_s7, [#allocation5], %s1316_s25, %s1316_s25, %s1317_s27  }
 0x3fc   :  { %1309 = dma.done.wait [#allocation5], 512  }
 0x3fd   :  { %1310 = vsyncadd [#allocation5], 4294966784 }
 0x3fe   :  { %843 = vsyncpa [#allocation4], 1 }
 0x3ff   :  { %844 = vsyncpa [#allocation7], 1 }
 0x400   :  { %845 = vsyncpa [#allocation10], 1 }
 0x401   :  { %846 = vsyncpa [#allocation13], 1 }
 0x402   :  { %847 = vsyncpa [#allocation5], 1 }

</bundles_post_ra>
